<compile_context>
chip_gen: v7x
topology: tpu7x:2x2x1
jax: 0.10.0
libtpu: 0.0.40
codegen_flags: <defaults>
</compile_context>

<pallas_src>
import jax
import jax.numpy as jnp
from jax.experimental import pallas as pl
from jax.experimental.pallas import tpu as pltpu

HIDDEN = 600            # logical hidden width (matches the PyTorch module)
HIDDEN_PAD = 640        # lane-aligned padded width (multiple of 128)
LAYERS_PER_STEP = 2     # hidden (H->H) layers streamed per grid step
N_HIDDEN = 8            # enc1, enc2, v0..v2, a0..a2


def dddqn_kernel(
    x_ref,                      # (Bp, S)            f32, resident
    w_in_ref, b_in_ref,         # (S, Hp) bf16, (1, Hp) f32, resident
    w_stk_ref,                  # (2, Hp, Hp) bf16, streamed (2 layers / step)
    b_stk_ref,                  # (8, 1, Hp)  f32, fully resident
    w_vout_ref, b_vout_ref,     # (1, Hp) f32, (1, 1) f32, resident
    w_aout_ref, b_aout_ref,     # (Hp, A) bf16, (1, A) f32, resident
    out_ref,                    # (Bp, A) f32
    act_scr,                    # (2, Bp, Hp) bf16 scratch: slot 0 = value
                                # stream, slot 1 = advantage stream
):
    step = pl.program_id(0)
    n_actions = out_ref.shape[1]

    def hidden(h_bf16, j):
        # One Linear(Hp->Hp) + ReLU using this step's j-th streamed weight
        # slice; biases are resident, indexed by global layer id (2*step+j).
        y = jnp.dot(h_bf16, w_stk_ref[j], preferred_element_type=jnp.float32)
        y = y + b_stk_ref[step * LAYERS_PER_STEP + j]
        return jnp.maximum(y, 0.0).astype(jnp.bfloat16)

    # step 0: input layer (S -> H) + the two remaining encoder layers, then
    # seed both dueling streams with the shared encoder output.
    @pl.when(step == 0)
    def _():
        xb = x_ref[...].astype(jnp.bfloat16)
        h = jnp.dot(xb, w_in_ref[...], preferred_element_type=jnp.float32)
        h = jnp.maximum(h + b_in_ref[...], 0.0).astype(jnp.bfloat16)
        h = hidden(h, 0)            # encoder layer 1
        h = hidden(h, 1)            # encoder layer 2
        act_scr[0] = h              # value stream input
        act_scr[1] = h              # advantage stream input

    # steps 1..3: advance value (slot 0, j=0) and advantage (slot 1, j=1)
    # streams by one Linear+ReLU each, using the streamed (2, Hp, Hp) block.
    @pl.when(step > 0)
    def _():
        act_scr[0] = hidden(act_scr[0], 0)
        act_scr[1] = hidden(act_scr[1], 1)

    # last step: tiny heads + dueling combine. This reads the act_scr slots
    # written just above in the SAME step; the blocks are traced in program
    # order on the same ref, so the read-after-write ordering is guaranteed.
    @pl.when(step == pl.num_programs(0) - 1)
    def _():
        # value head (H -> 1): VPU multiply + lane reduction (padded lanes of
        # w_vout are zero) instead of an N=1 MXU matmul.
        v = act_scr[0].astype(jnp.float32)
        value = jnp.sum(v * w_vout_ref[...], axis=1, keepdims=True)
        value = value + b_vout_ref[...]
        # advantage head (H -> A) on the MXU.
        adv = jnp.dot(act_scr[1], w_aout_ref[...],
                      preferred_element_type=jnp.float32)
        adv = adv + b_aout_ref[...]
        adv_mean = jnp.sum(adv, axis=1, keepdims=True) * (1.0 / n_actions)
        out_ref[...] = (value + (adv - adv_mean)).astype(out_ref.dtype)


def init_params(key, state_dim, action_dim):
    """Deterministic parameter init (f32, unpadded). Weights stored as (in, out)."""
    dims = [
        # encoder
        (state_dim, HIDDEN), (HIDDEN, HIDDEN), (HIDDEN, HIDDEN),
        # value
        (HIDDEN, HIDDEN), (HIDDEN, HIDDEN), (HIDDEN, HIDDEN), (HIDDEN, 1),
        # advantage
        (HIDDEN, HIDDEN), (HIDDEN, HIDDEN), (HIDDEN, HIDDEN), (HIDDEN, action_dim),
    ]
    params = []
    keys = jax.random.split(key, 2 * len(dims))
    for i, (fan_in, fan_out) in enumerate(dims):
        scale = 1.0 / jnp.sqrt(jnp.float32(fan_in))
        w = jax.random.uniform(keys[2 * i], (fan_in, fan_out), jnp.float32,
                               minval=-scale, maxval=scale)
        b = jax.random.uniform(keys[2 * i + 1], (1, fan_out), jnp.float32,
                               minval=-scale, maxval=scale)
        params.append((w, b))
    return params


def pack_params(params):
    """Pad 600->640 with zeros, cast big weights to bf16, and stack the eight
    (H,H) hidden layers in the per-grid-step streaming order:
        step 0: (enc1, enc2)   step 1: (v0, a0)
        step 2: (v1, a1)       step 3: (v2, a2)
    Padded lanes of weights AND biases are exactly zero so padded activation
    lanes stay zero (value head / adv-mean are unpolluted)."""
    (ew0, eb0), (ew1, eb1), (ew2, eb2) = params[0:3]
    (vw0, vb0), (vw1, vb1), (vw2, vb2), (vw3, vb3) = params[3:7]
    (aw0, ab0), (aw1, ab1), (aw2, ab2), (aw3, ab3) = params[7:11]

    pc = HIDDEN_PAD - HIDDEN

    def pad_cols(w):   # (in, H) -> (in, Hp)
        return jnp.pad(w, ((0, 0), (0, pc)))

    def pad_both(w):   # (H, H) -> (Hp, Hp)
        return jnp.pad(w, ((0, pc), (0, pc)))

    def pad_rows(w):   # (H, out) -> (Hp, out)
        return jnp.pad(w, ((0, pc), (0, 0)))

    w_in = pad_cols(ew0).astype(jnp.bfloat16)      # (S, Hp)  bf16
    b_in = pad_cols(eb0)                           # (1, Hp)  f32

    hidden_ws = [ew1, ew2, vw0, aw0, vw1, aw1, vw2, aw2]
    hidden_bs = [eb1, eb2, vb0, ab0, vb1, ab1, vb2, ab2]
    w_stk = jnp.stack([pad_both(w) for w in hidden_ws]).astype(jnp.bfloat16)  # (8, Hp, Hp)
    b_stk = jnp.stack([pad_cols(b) for b in hidden_bs])                        # (8, 1, Hp) f32

    w_vout = pad_cols(vw3.T)                       # (1, Hp)  f32 (used on VPU)
    b_vout = vb3                                   # (1, 1)   f32
    w_aout = pad_rows(aw3).astype(jnp.bfloat16)    # (Hp, A)  bf16
    b_aout = ab3                                   # (1, A)   f32

    return (w_in, b_in, w_stk, b_stk, w_vout, b_vout, w_aout, b_aout)


def dddqn_forward(x, packed, action_dim):
    batch, state_dim = x.shape
    (w_in, b_in, w_stk, b_stk, w_vout, b_vout, w_aout, b_aout) = packed

    # Pad batch to a multiple of 16 rows (bf16 sublane packing); padded rows
    # are discarded below. The weight stream is per-call, so larger batches
    # (128-512) amortize it nearly for free.
    bp = max(16, -(-batch // 16) * 16)
    xp = jnp.pad(x, ((0, bp - batch), (0, 0))) if bp != batch else x

    n_hidden = w_stk.shape[0]                    # 8
    n_steps = n_hidden // LAYERS_PER_STEP        # 4

    grid_spec = pltpu.PrefetchScalarGridSpec(
        num_scalar_prefetch=0,
        grid=(n_steps,),
        in_specs=[
            pl.BlockSpec((bp, state_dim), lambda l: (0, 0)),               # x (resident)
            pl.BlockSpec((state_dim, HIDDEN_PAD), lambda l: (0, 0)),       # w_in
            pl.BlockSpec((1, HIDDEN_PAD), lambda l: (0, 0)),               # b_in
            pl.BlockSpec((LAYERS_PER_STEP, HIDDEN_PAD, HIDDEN_PAD),
                         lambda l: (l, 0, 0)),                             # w_stk (streamed, 2 layers/step)
            pl.BlockSpec((N_HIDDEN, 1, HIDDEN_PAD), lambda l: (0, 0, 0)),  # b_stk (fully resident)
            pl.BlockSpec((1, HIDDEN_PAD), lambda l: (0, 0)),               # w_vout
            pl.BlockSpec((1, 1), lambda l: (0, 0)),                        # b_vout
            pl.BlockSpec((HIDDEN_PAD, action_dim), lambda l: (0, 0)),      # w_aout
            pl.BlockSpec((1, action_dim), lambda l: (0, 0)),               # b_aout
        ],
        out_specs=pl.BlockSpec((bp, action_dim), lambda l: (0, 0)),
        scratch_shapes=[
            pltpu.VMEM((2, bp, HIDDEN_PAD), jnp.bfloat16),  # value / advantage streams
        ],
    )
    out = pl.pallas_call(
        dddqn_kernel,
        out_shape=jax.ShapeDtypeStruct((bp, action_dim), jnp.float32),
        grid_spec=grid_spec,
        compiler_params=pltpu.CompilerParams(
            # layer axis is a sequential dependency chain
            dimension_semantics=("arbitrary",),
            # working set < 4 MiB; stays well under v7x's 64 MiB physical VMEM
            vmem_limit_bytes=32 * 1024 * 1024,
        ),
    )(xp, w_in, b_in, w_stk, b_stk, w_vout, b_vout, w_aout, b_aout)
    return out[:batch]


def dddqn_reference(x, params):
    """Pure-JAX reference mirroring the PyTorch forward (f32 math)."""
    def lin(h, p):
        return h @ p[0] + p[1]

    h = x
    for p in params[0:3]:
        h = jax.nn.relu(lin(h, p))
    v = h
    for p in params[3:6]:
        v = jax.nn.relu(lin(v, p))
    v = lin(v, params[6])
    a = h
    for p in params[7:10]:
        a = jax.nn.relu(lin(a, p))
    a = lin(a, params[10])
    return v + (a - a.mean(axis=1, keepdims=True))


if __name__ == "__main__":
    batch, state_dim, action_dim = 2, 16, 4

    key = jax.random.PRNGKey(0)
    k_x, k_p = jax.random.split(key)
    x = jax.random.normal(k_x, (batch, state_dim), dtype=jnp.float32)
    params = init_params(k_p, state_dim, action_dim)

    packed = pack_params(params)
    q = dddqn_forward(x, packed, action_dim)
    q = jax.block_until_ready(q)

    # Reference uses the same bf16-rounded weights the kernel actually uses,
    # with f32 activations — isolates kernel correctness from the intentional
    # bf16 weight/activation casts.
    params_bf16 = [(w.astype(jnp.bfloat16).astype(jnp.float32), b) for w, b in params]
    q_ref = dddqn_reference(x, params_bf16)

    assert q.shape == (batch, action_dim)
    assert jnp.allclose(q, q_ref, atol=3e-2, rtol=3e-2), (
        f"mismatch: max abs err {jnp.max(jnp.abs(q - q_ref))}")

    print("KERNEL_OK")
</pallas_src>

<mosaic_0001>
module attributes {stable_mosaic.version = 11 : i64} {
  func.func @dddqn_kernel(%arg0: i32, %arg1: memref<16x16xf32, #tpu.memory_space<vmem>>, %arg2: memref<16x640xbf16, #tpu.memory_space<vmem>>, %arg3: memref<1x640xf32, #tpu.memory_space<vmem>>, %arg4: memref<2x640x640xbf16, #tpu.memory_space<vmem>>, %arg5: memref<8x1x640xf32, #tpu.memory_space<vmem>>, %arg6: memref<1x640xf32, #tpu.memory_space<vmem>>, %arg7: memref<1x1xf32, #tpu.memory_space<vmem>>, %arg8: memref<640x4xbf16, #tpu.memory_space<vmem>>, %arg9: memref<1x4xf32, #tpu.memory_space<vmem>>, %arg10: memref<16x4xf32, #tpu.memory_space<vmem>>, %arg11: memref<2x16x640xbf16, #tpu.memory_space<vmem>>) attributes {dimension_semantics = [#tpu.dimension_semantics<arbitrary>], iteration_bounds = array<i64: 4>, scalar_prefetch = 0 : i64, scratch_operands = 1 : i64, tpu.core_type = #tpu.core_type<tc>, window_params = [{pipeline_mode = #tpu.pipeline_mode<synchronous>, transform_indices = @transform_0, window_bounds = array<i64: 16, 16>}, {pipeline_mode = #tpu.pipeline_mode<synchronous>, transform_indices = @transform_1, window_bounds = array<i64: 16, 640>}, {pipeline_mode = #tpu.pipeline_mode<synchronous>, transform_indices = @transform_2, window_bounds = array<i64: 1, 640>}, {transform_indices = @transform_3, window_bounds = array<i64: 2, 640, 640>}, {pipeline_mode = #tpu.pipeline_mode<synchronous>, transform_indices = @transform_4, window_bounds = array<i64: 8, 1, 640>}, {pipeline_mode = #tpu.pipeline_mode<synchronous>, transform_indices = @transform_5, window_bounds = array<i64: 1, 640>}, {pipeline_mode = #tpu.pipeline_mode<synchronous>, transform_indices = @transform_6, window_bounds = array<i64: 1, 1>}, {pipeline_mode = #tpu.pipeline_mode<synchronous>, transform_indices = @transform_7, window_bounds = array<i64: 640, 4>}, {pipeline_mode = #tpu.pipeline_mode<synchronous>, transform_indices = @transform_8, window_bounds = array<i64: 1, 4>}, {pipeline_mode = #tpu.pipeline_mode<synchronous>, transform_indices = @transform_9, window_bounds = array<i64: 16, 4>}]} {
    %c0_i32 = arith.constant 0 : i32
    %0 = arith.cmpi eq, %arg0, %c0_i32 : i32
    %1 = arith.extui %0 : i1 to i32
    %c0_i32_0 = arith.constant 0 : i32
    %2 = arith.cmpi ne, %1, %c0_i32_0 : i32
    scf.if %2 {
      %c0 = arith.constant 0 : index
      %c0_4 = arith.constant 0 : index
      %9 = vector.load %arg1[%c0, %c0_4] : memref<16x16xf32, #tpu.memory_space<vmem>>, vector<16x16xf32>
      %10 = arith.truncf %9 : vector<16x16xf32> to vector<16x16xbf16>
      %c0_5 = arith.constant 0 : index
      %c0_6 = arith.constant 0 : index
      %11 = vector.load %arg2[%c0_5, %c0_6] : memref<16x640xbf16, #tpu.memory_space<vmem>>, vector<16x640xbf16>
      %cst = arith.constant dense<0.000000e+00> : vector<16x640xf32>
      %12 = tpu.matmul %10, %11, %cst {dimension_numbers = #tpu.dot_dimension_numbers<[1], [0], [0], [1], [0, 0, 1, 1], [], []>} : vector<16x16xbf16>, vector<16x640xbf16>, vector<16x640xf32> -> vector<16x640xf32>
      %c0_7 = arith.constant 0 : index
      %c0_8 = arith.constant 0 : index
      %13 = vector.load %arg3[%c0_7, %c0_8] : memref<1x640xf32, #tpu.memory_space<vmem>>, vector<1x640xf32>
      %14 = vector.broadcast %13 : vector<1x640xf32> to vector<16x640xf32>
      %15 = arith.addf %12, %14 : vector<16x640xf32>
      %cst_9 = arith.constant 0.000000e+00 : f32
      %16 = vector.broadcast %cst_9 : f32 to vector<16x640xf32>
      %17 = arith.maximumf %15, %16 : vector<16x640xf32>
      %18 = arith.truncf %17 : vector<16x640xf32> to vector<16x640xbf16>
      %c0_10 = arith.constant 0 : index
      %c0_11 = arith.constant 0 : index
      %c0_12 = arith.constant 0 : index
      %19 = vector.load %arg4[%c0_10, %c0_11, %c0_12] : memref<2x640x640xbf16, #tpu.memory_space<vmem>>, vector<1x640x640xbf16>
      %20 = vector.shape_cast %19 : vector<1x640x640xbf16> to vector<640x640xbf16>
      %cst_13 = arith.constant dense<0.000000e+00> : vector<16x640xf32>
      %21 = tpu.matmul %18, %20, %cst_13 {dimension_numbers = #tpu.dot_dimension_numbers<[1], [0], [0], [1], [0, 0, 1, 1], [], []>} : vector<16x640xbf16>, vector<640x640xbf16>, vector<16x640xf32> -> vector<16x640xf32>
      %c2_i32 = arith.constant 2 : i32
      %22 = arith.muli %arg0, %c2_i32 : i32
      %c0_i32_14 = arith.constant 0 : i32
      %23 = arith.addi %22, %c0_i32_14 : i32
      %24 = arith.index_cast %23 : i32 to index
      %c0_15 = arith.constant 0 : index
      %c0_16 = arith.constant 0 : index
      %25 = vector.load %arg5[%24, %c0_15, %c0_16] : memref<8x1x640xf32, #tpu.memory_space<vmem>>, vector<1x1x640xf32>
      %26 = vector.shape_cast %25 : vector<1x1x640xf32> to vector<1x640xf32>
      %27 = vector.broadcast %26 : vector<1x640xf32> to vector<16x640xf32>
      %28 = arith.addf %21, %27 : vector<16x640xf32>
      %cst_17 = arith.constant 0.000000e+00 : f32
      %29 = vector.broadcast %cst_17 : f32 to vector<16x640xf32>
      %30 = arith.maximumf %28, %29 : vector<16x640xf32>
      %31 = arith.truncf %30 : vector<16x640xf32> to vector<16x640xbf16>
      %c1 = arith.constant 1 : index
      %c0_18 = arith.constant 0 : index
      %c0_19 = arith.constant 0 : index
      %32 = vector.load %arg4[%c1, %c0_18, %c0_19] : memref<2x640x640xbf16, #tpu.memory_space<vmem>>, vector<1x640x640xbf16>
      %33 = vector.shape_cast %32 : vector<1x640x640xbf16> to vector<640x640xbf16>
      %cst_20 = arith.constant dense<0.000000e+00> : vector<16x640xf32>
      %34 = tpu.matmul %31, %33, %cst_20 {dimension_numbers = #tpu.dot_dimension_numbers<[1], [0], [0], [1], [0, 0, 1, 1], [], []>} : vector<16x640xbf16>, vector<640x640xbf16>, vector<16x640xf32> -> vector<16x640xf32>
      %c2_i32_21 = arith.constant 2 : i32
      %35 = arith.muli %arg0, %c2_i32_21 : i32
      %c1_i32 = arith.constant 1 : i32
      %36 = arith.addi %35, %c1_i32 : i32
      %37 = arith.index_cast %36 : i32 to index
      %c0_22 = arith.constant 0 : index
      %c0_23 = arith.constant 0 : index
      %38 = vector.load %arg5[%37, %c0_22, %c0_23] : memref<8x1x640xf32, #tpu.memory_space<vmem>>, vector<1x1x640xf32>
      %39 = vector.shape_cast %38 : vector<1x1x640xf32> to vector<1x640xf32>
      %40 = vector.broadcast %39 : vector<1x640xf32> to vector<16x640xf32>
      %41 = arith.addf %34, %40 : vector<16x640xf32>
      %cst_24 = arith.constant 0.000000e+00 : f32
      %42 = vector.broadcast %cst_24 : f32 to vector<16x640xf32>
      %43 = arith.maximumf %41, %42 : vector<16x640xf32>
      %44 = arith.truncf %43 : vector<16x640xf32> to vector<16x640xbf16>
      %c0_25 = arith.constant 0 : index
      %c0_26 = arith.constant 0 : index
      %c0_27 = arith.constant 0 : index
      %45 = vector.load %arg11[%c0_25, %c0_26, %c0_27] : memref<2x16x640xbf16, #tpu.memory_space<vmem>>, vector<1x16x640xbf16>
      %46 = vector.shape_cast %45 : vector<1x16x640xbf16> to vector<16x640xbf16>
      %47 = vector.shape_cast %44 : vector<16x640xbf16> to vector<1x16x640xbf16>
      tpu.vector_store %arg11[%c0_25, %c0_26, %c0_27], %47 {strides = array<i32>} : memref<2x16x640xbf16, #tpu.memory_space<vmem>>, vector<1x16x640xbf16>,
      %c1_28 = arith.constant 1 : index
      %c0_29 = arith.constant 0 : index
      %c0_30 = arith.constant 0 : index
      %48 = vector.load %arg11[%c1_28, %c0_29, %c0_30] : memref<2x16x640xbf16, #tpu.memory_space<vmem>>, vector<1x16x640xbf16>
      %49 = vector.shape_cast %48 : vector<1x16x640xbf16> to vector<16x640xbf16>
      %50 = vector.shape_cast %44 : vector<16x640xbf16> to vector<1x16x640xbf16>
      tpu.vector_store %arg11[%c1_28, %c0_29, %c0_30], %50 {strides = array<i32>} : memref<2x16x640xbf16, #tpu.memory_space<vmem>>, vector<1x16x640xbf16>,
    } else {
    }
    %c0_i32_1 = arith.constant 0 : i32
    %3 = arith.cmpi sgt, %arg0, %c0_i32_1 : i32
    %4 = arith.extui %3 : i1 to i32
    %c0_i32_2 = arith.constant 0 : i32
    %5 = arith.cmpi ne, %4, %c0_i32_2 : i32
    scf.if %5 {
      %c0 = arith.constant 0 : index
      %c0_4 = arith.constant 0 : index
      %c0_5 = arith.constant 0 : index
      %9 = vector.load %arg11[%c0, %c0_4, %c0_5] : memref<2x16x640xbf16, #tpu.memory_space<vmem>>, vector<1x16x640xbf16>
      %10 = vector.shape_cast %9 : vector<1x16x640xbf16> to vector<16x640xbf16>
      %c0_6 = arith.constant 0 : index
      %c0_7 = arith.constant 0 : index
      %c0_8 = arith.constant 0 : index
      %11 = vector.load %arg4[%c0_6, %c0_7, %c0_8] : memref<2x640x640xbf16, #tpu.memory_space<vmem>>, vector<1x640x640xbf16>
      %12 = vector.shape_cast %11 : vector<1x640x640xbf16> to vector<640x640xbf16>
      %cst = arith.constant dense<0.000000e+00> : vector<16x640xf32>
      %13 = tpu.matmul %10, %12, %cst {dimension_numbers = #tpu.dot_dimension_numbers<[1], [0], [0], [1], [0, 0, 1, 1], [], []>} : vector<16x640xbf16>, vector<640x640xbf16>, vector<16x640xf32> -> vector<16x640xf32>
      %c2_i32 = arith.constant 2 : i32
      %14 = arith.muli %arg0, %c2_i32 : i32
      %c0_i32_9 = arith.constant 0 : i32
      %15 = arith.addi %14, %c0_i32_9 : i32
      %16 = arith.index_cast %15 : i32 to index
      %c0_10 = arith.constant 0 : index
      %c0_11 = arith.constant 0 : index
      %17 = vector.load %arg5[%16, %c0_10, %c0_11] : memref<8x1x640xf32, #tpu.memory_space<vmem>>, vector<1x1x640xf32>
      %18 = vector.shape_cast %17 : vector<1x1x640xf32> to vector<1x640xf32>
      %19 = vector.broadcast %18 : vector<1x640xf32> to vector<16x640xf32>
      %20 = arith.addf %13, %19 : vector<16x640xf32>
      %cst_12 = arith.constant 0.000000e+00 : f32
      %21 = vector.broadcast %cst_12 : f32 to vector<16x640xf32>
      %22 = arith.maximumf %20, %21 : vector<16x640xf32>
      %23 = arith.truncf %22 : vector<16x640xf32> to vector<16x640xbf16>
      %c0_13 = arith.constant 0 : index
      %c0_14 = arith.constant 0 : index
      %c0_15 = arith.constant 0 : index
      %24 = vector.load %arg11[%c0_13, %c0_14, %c0_15] : memref<2x16x640xbf16, #tpu.memory_space<vmem>>, vector<1x16x640xbf16>
      %25 = vector.shape_cast %24 : vector<1x16x640xbf16> to vector<16x640xbf16>
      %26 = vector.shape_cast %23 : vector<16x640xbf16> to vector<1x16x640xbf16>
      tpu.vector_store %arg11[%c0_13, %c0_14, %c0_15], %26 {strides = array<i32>} : memref<2x16x640xbf16, #tpu.memory_space<vmem>>, vector<1x16x640xbf16>,
      %c1 = arith.constant 1 : index
      %c0_16 = arith.constant 0 : index
      %c0_17 = arith.constant 0 : index
      %27 = vector.load %arg11[%c1, %c0_16, %c0_17] : memref<2x16x640xbf16, #tpu.memory_space<vmem>>, vector<1x16x640xbf16>
      %28 = vector.shape_cast %27 : vector<1x16x640xbf16> to vector<16x640xbf16>
      %c1_18 = arith.constant 1 : index
      %c0_19 = arith.constant 0 : index
      %c0_20 = arith.constant 0 : index
      %29 = vector.load %arg4[%c1_18, %c0_19, %c0_20] : memref<2x640x640xbf16, #tpu.memory_space<vmem>>, vector<1x640x640xbf16>
      %30 = vector.shape_cast %29 : vector<1x640x640xbf16> to vector<640x640xbf16>
      %cst_21 = arith.constant dense<0.000000e+00> : vector<16x640xf32>
      %31 = tpu.matmul %28, %30, %cst_21 {dimension_numbers = #tpu.dot_dimension_numbers<[1], [0], [0], [1], [0, 0, 1, 1], [], []>} : vector<16x640xbf16>, vector<640x640xbf16>, vector<16x640xf32> -> vector<16x640xf32>
      %c2_i32_22 = arith.constant 2 : i32
      %32 = arith.muli %arg0, %c2_i32_22 : i32
      %c1_i32 = arith.constant 1 : i32
      %33 = arith.addi %32, %c1_i32 : i32
      %34 = arith.index_cast %33 : i32 to index
      %c0_23 = arith.constant 0 : index
      %c0_24 = arith.constant 0 : index
      %35 = vector.load %arg5[%34, %c0_23, %c0_24] : memref<8x1x640xf32, #tpu.memory_space<vmem>>, vector<1x1x640xf32>
      %36 = vector.shape_cast %35 : vector<1x1x640xf32> to vector<1x640xf32>
      %37 = vector.broadcast %36 : vector<1x640xf32> to vector<16x640xf32>
      %38 = arith.addf %31, %37 : vector<16x640xf32>
      %cst_25 = arith.constant 0.000000e+00 : f32
      %39 = vector.broadcast %cst_25 : f32 to vector<16x640xf32>
      %40 = arith.maximumf %38, %39 : vector<16x640xf32>
      %41 = arith.truncf %40 : vector<16x640xf32> to vector<16x640xbf16>
      %c1_26 = arith.constant 1 : index
      %c0_27 = arith.constant 0 : index
      %c0_28 = arith.constant 0 : index
      %42 = vector.load %arg11[%c1_26, %c0_27, %c0_28] : memref<2x16x640xbf16, #tpu.memory_space<vmem>>, vector<1x16x640xbf16>
      %43 = vector.shape_cast %42 : vector<1x16x640xbf16> to vector<16x640xbf16>
      %44 = vector.shape_cast %41 : vector<16x640xbf16> to vector<1x16x640xbf16>
      tpu.vector_store %arg11[%c1_26, %c0_27, %c0_28], %44 {strides = array<i32>} : memref<2x16x640xbf16, #tpu.memory_space<vmem>>, vector<1x16x640xbf16>,
    } else {
    }
    %c3_i32 = arith.constant 3 : i32
    %6 = arith.cmpi eq, %arg0, %c3_i32 : i32
    %7 = arith.extui %6 : i1 to i32
    %c0_i32_3 = arith.constant 0 : i32
    %8 = arith.cmpi ne, %7, %c0_i32_3 : i32
    scf.if %8 {
      %c0 = arith.constant 0 : index
      %c0_4 = arith.constant 0 : index
      %c0_5 = arith.constant 0 : index
      %9 = vector.load %arg11[%c0, %c0_4, %c0_5] : memref<2x16x640xbf16, #tpu.memory_space<vmem>>, vector<1x16x640xbf16>
      %10 = vector.shape_cast %9 : vector<1x16x640xbf16> to vector<16x640xbf16>
      %11 = arith.extf %10 : vector<16x640xbf16> to vector<16x640xf32>
      %c0_6 = arith.constant 0 : index
      %c0_7 = arith.constant 0 : index
      %12 = vector.load %arg6[%c0_6, %c0_7] : memref<1x640xf32, #tpu.memory_space<vmem>>, vector<1x640xf32>
      %13 = vector.broadcast %12 : vector<1x640xf32> to vector<16x640xf32>
      %14 = arith.mulf %11, %13 : vector<16x640xf32>
      %cst = arith.constant dense<0.000000e+00> : vector<16xf32>
      %15 = vector.multi_reduction <add>, %14, %cst [1] : vector<16x640xf32> to vector<16xf32>
      %16 = vector.shape_cast %15 : vector<16xf32> to vector<16x1xf32>
      %c0_8 = arith.constant 0 : index
      %c0_9 = arith.constant 0 : index
      %17 = vector.load %arg7[%c0_8, %c0_9] : memref<1x1xf32, #tpu.memory_space<vmem>>, vector<1x1xf32>
      %18 = vector.broadcast %17 : vector<1x1xf32> to vector<16x1xf32>
      %19 = arith.addf %16, %18 : vector<16x1xf32>
      %c1 = arith.constant 1 : index
      %c0_10 = arith.constant 0 : index
      %c0_11 = arith.constant 0 : index
      %20 = vector.load %arg11[%c1, %c0_10, %c0_11] : memref<2x16x640xbf16, #tpu.memory_space<vmem>>, vector<1x16x640xbf16>
      %21 = vector.shape_cast %20 : vector<1x16x640xbf16> to vector<16x640xbf16>
      %c0_12 = arith.constant 0 : index
      %c0_13 = arith.constant 0 : index
      %22 = vector.load %arg8[%c0_12, %c0_13] : memref<640x4xbf16, #tpu.memory_space<vmem>>, vector<640x4xbf16>
      %cst_14 = arith.constant dense<0.000000e+00> : vector<16x4xf32>
      %23 = tpu.matmul %21, %22, %cst_14 {dimension_numbers = #tpu.dot_dimension_numbers<[1], [0], [0], [1], [0, 0, 1, 1], [], []>} : vector<16x640xbf16>, vector<640x4xbf16>, vector<16x4xf32> -> vector<16x4xf32>
      %c0_15 = arith.constant 0 : index
      %c0_16 = arith.constant 0 : index
      %24 = vector.load %arg9[%c0_15, %c0_16] : memref<1x4xf32, #tpu.memory_space<vmem>>, vector<1x4xf32>
      %25 = vector.broadcast %24 : vector<1x4xf32> to vector<16x4xf32>
      %26 = arith.addf %23, %25 : vector<16x4xf32>
      %cst_17 = arith.constant dense<0.000000e+00> : vector<16xf32>
      %27 = vector.multi_reduction <add>, %26, %cst_17 [1] : vector<16x4xf32> to vector<16xf32>
      %28 = vector.shape_cast %27 : vector<16xf32> to vector<16x1xf32>
      %cst_18 = arith.constant 2.500000e-01 : f32
      %29 = vector.broadcast %cst_18 : f32 to vector<16x1xf32>
      %30 = arith.mulf %28, %29 : vector<16x1xf32>
      %31 = vector.broadcast %30 : vector<16x1xf32> to vector<16x4xf32>
      %32 = arith.subf %26, %31 : vector<16x4xf32>
      %33 = vector.broadcast %19 : vector<16x1xf32> to vector<16x4xf32>
      %34 = arith.addf %33, %32 : vector<16x4xf32>
      %c0_19 = arith.constant 0 : index
      %c0_20 = arith.constant 0 : index
      %35 = vector.load %arg10[%c0_19, %c0_20] : memref<16x4xf32, #tpu.memory_space<vmem>>, vector<16x4xf32>
      tpu.vector_store %arg10[%c0_19, %c0_20], %34 {strides = array<i32>} : memref<16x4xf32, #tpu.memory_space<vmem>>, vector<16x4xf32>,
    } else {
    }
    return
  }
  func.func @transform_0(%arg0: i32) -> (i32, i32) {
    %c0_i32 = arith.constant 0 : i32
    %c0_i32_0 = arith.constant 0 : i32
    %c0_i32_1 = arith.constant 0 : i32
    return %c0_i32, %c0_i32_0 : i32, i32
  }
  func.func @transform_1(%arg0: i32) -> (i32, i32) {
    %c0_i32 = arith.constant 0 : i32
    %c0_i32_0 = arith.constant 0 : i32
    %c0_i32_1 = arith.constant 0 : i32
    return %c0_i32, %c0_i32_0 : i32, i32
  }
  func.func @transform_2(%arg0: i32) -> (i32, i32) {
    %c0_i32 = arith.constant 0 : i32
    %c0_i32_0 = arith.constant 0 : i32
    %c0_i32_1 = arith.constant 0 : i32
    return %c0_i32, %c0_i32_0 : i32, i32
  }
  func.func @transform_3(%arg0: i32) -> (i32, i32, i32) {
    %c0_i32 = arith.constant 0 : i32
    %c0_i32_0 = arith.constant 0 : i32
    %c0_i32_1 = arith.constant 0 : i32
    return %arg0, %c0_i32, %c0_i32_0 : i32, i32, i32
  }
  func.func @transform_4(%arg0: i32) -> (i32, i32, i32) {
    %c0_i32 = arith.constant 0 : i32
    %c0_i32_0 = arith.constant 0 : i32
    %c0_i32_1 = arith.constant 0 : i32
    %c0_i32_2 = arith.constant 0 : i32
    return %c0_i32, %c0_i32_0, %c0_i32_1 : i32, i32, i32
  }
  func.func @transform_5(%arg0: i32) -> (i32, i32) {
    %c0_i32 = arith.constant 0 : i32
    %c0_i32_0 = arith.constant 0 : i32
    %c0_i32_1 = arith.constant 0 : i32
    return %c0_i32, %c0_i32_0 : i32, i32
  }
  func.func @transform_6(%arg0: i32) -> (i32, i32) {
    %c0_i32 = arith.constant 0 : i32
    %c0_i32_0 = arith.constant 0 : i32
    %c0_i32_1 = arith.constant 0 : i32
    return %c0_i32, %c0_i32_0 : i32, i32
  }
  func.func @transform_7(%arg0: i32) -> (i32, i32) {
    %c0_i32 = arith.constant 0 : i32
    %c0_i32_0 = arith.constant 0 : i32
    %c0_i32_1 = arith.constant 0 : i32
    return %c0_i32, %c0_i32_0 : i32, i32
  }
  func.func @transform_8(%arg0: i32) -> (i32, i32) {
    %c0_i32 = arith.constant 0 : i32
    %c0_i32_0 = arith.constant 0 : i32
    %c0_i32_1 = arith.constant 0 : i32
    return %c0_i32, %c0_i32_0 : i32, i32
  }
  func.func @transform_9(%arg0: i32) -> (i32, i32) {
    %c0_i32 = arith.constant 0 : i32
    %c0_i32_0 = arith.constant 0 : i32
    %c0_i32_1 = arith.constant 0 : i32
    return %c0_i32, %c0_i32_0 : i32, i32
  }
}

</mosaic_0001>

<bundles_post_ra>
// kernel: tpu_custom_call.1
= control target key start
LH: loop header
LB: loop body
LE: loop exit
PB: predicated region body
PF: predicated region fallthrough
CT: control target
= control target key end

     0   :  { %s13072_s0 = inlined_call_operand.hbm [shape: f32[16,16], index: 0, kind: input, shape index: {}]   ;;  %s13073_s1 = inlined_call_operand.hbm [shape: bf16[16,640], index: 1, kind: input, shape index: {}]   ;;  %s13074_s2 = inlined_call_operand.hbm [shape: f32[1,640], index: 2, kind: input, shape index: {}]   ;;  %s13075_s3 = inlined_call_operand.hbm [shape: bf16[8,640,640], index: 3, kind: input, shape index: {}]   ;;  %s13076_s4 = inlined_call_operand.hbm [shape: f32[8,1,640], index: 4, kind: input, shape index: {}]   ;;  %s13077_s5 = inlined_call_operand.hbm [shape: f32[1,640], index: 5, kind: input, shape index: {}]   ;;  %s13078_s6 = inlined_call_operand.<no memory space> [shape: f32[1,1], index: 6, kind: input, shape index: {}]   ;;  %s13079_s7 = inlined_call_operand.vmem [shape: bf16[640,4], index: 7, kind: input, shape index: {}]   ;;  %s13080_s8 = inlined_call_operand.hbm [shape: f32[1,4], index: 8, kind: input, shape index: {}]   ;;  %s13081_s9 = inlined_call_operand.vmem [shape: f32[16,4], index: 9, kind: output, shape index: {}]  }
   0x1   :  { %v14_v0 = vstv %s13078_s6 }
   0x2   :  { %15 = vst [vmem:[#allocation3] sm:$0x1] %v14_v0 }
   0x3   :  { %16 = vsyncpa [#allocation5], 0 }
   0x4   :  { %17 = vsyncpa [#allocation7], 0 }
   0x5   :  { %18 = vsyncpa [#allocation10], 0 }
   0x6   :  { %20 = vsyncpa [#allocation10 + $0x1], 0 }
   0x7   :  { %21 = vsyncpa [#allocation13], 0  ;;  %s11611_s11 = smov 0   ;;  %s11613_s12 = smov 0  }
   0x8   :  { %s11615_s13 = smov 0   ;;  %s11617_s14 = smov 0  }
   0x9 LB: > { %s11536_s6 = smov [#allocation6]   ;;  %s11632_s16 = sadd.s32 4294967295, %s11534_s14   ;;  %s11534_s14 = sphi %s11617_s14, %s13107_s14   ;;  %s11530_s13 = sphi %s11615_s13, %s13106_s13   ;;  %s11526_s12 = sphi %s11613_s12, %s13105_s12   ;;  %s11522_s11 = sphi %s11611_s11, %s13104_s11  }
   0xa   : > { %s272_s15 = sshll.u32 %s11536_s6, 4  ;;  %p8167_p0 = scmp.ge.s32.totalorder %s11534_s14, 1  ;;  %s11638_s15 = int_to_ptr.vmem [resolvable:$true] %s272_s15 }
   0xb   : > { %p13083_p1 = scmp.eq.s32.totalorder %s11632_s16, 0  ;;  %p247_p2 = scmp.lt.s32.totalorder %s11534_s14, 5 }
   0xc   : > { %s11537_s18 = smov [#allocation11]   ;;  %s11538_s21 = smov [#allocation12]  }
   0xd   : > { %p11640_p4 = pnand %p8167_p0, %p247_p2  ;;  %s296_s19 = sshll.u32 %s11537_s18, 4  ;;  %s11652_s19 = int_to_ptr.vmem [resolvable:$true] %s296_s19 }
   0xe   : > { %s11654_s22 = sshll.u32 %s11538_s21, 4  ;;  %s11286_s25 = scalar_lea.hbm %s13073_s1, 640  ;;  %s311_s22 = int_to_ptr.vmem [resolvable:$true] %s11654_s22 }
   0xf   : > { %s13086_s17 = scalar_select %p11640_p4, 1, 0 }
  0x10   : > { %p10028_p5 = pneg %p11640_p4  ;;  %p11287_p7 = scmp.ne.s32.totalorder %s13073_s1, %s11286_s25 }
  0x11   : > { %p11293_p11 = scmp.lt.u32.totalorder %s11286_s25, %s13073_s1 }
  0x12   : > { %p11648_p6 = pnand %p10028_p5, %p13083_p1 }
  0x14   : > { %p11664_p8 = pneg %p11648_p6 }
  0x16   : > { %p11289_p9 = pnand %p11664_p8, %p11287_p7 }
  0x18   : > { %p11290_p10 = pneg %p11289_p9 }
  0x1a   : > { %p11295_p12 = pnand %p11293_p11, %p11290_p10 }
  0x1c   : > { %11298 = shalt.err (!%p11295_p12)
}
  0x1d   : > { %s11299_s10 = scalar_lea.vmem %s11638_s15, 640  ;;  %p11307_p5 = scmp.lt.s32.totalorder %s11638_s15, %s11638_s15 }
  0x1e   : > { %p11300_p13 = scmp.ne.s32.totalorder %s11638_s15, %s11299_s10  ;;  %p11308_p3 = scmp.lt.s32.totalorder %s11299_s10, %s11299_s10 }
  0x20   : > { %p11302_p0 = pnand %p11300_p13, %p11664_p8  ;;  %p11309_p7 = por %p11308_p3, %p11307_p5 }
  0x22   : > { %p11303_p2 = pneg %p11302_p0 }
  0x24   : > { %p11310_p9 = pnand %p11309_p7, %p11303_p2 }
  0x26   : > { %11313 = shalt.err (!%p11310_p9)
}
  0x27   : > { %s13082_s6 = smov 320   ;;  %s13085_s18 = smov 20  }
  0x28   : > { %10034 = dma.hbm_to_vmem [thread:$0]  (!%p11648_p6), %s13073_s1, 640, %s11638_s15, [#allocation7], %s13082_s6, %s13082_s6, %s13085_s18  }
  0x29   : > { %s11314_s26 = scalar_lea.hbm %s13076_s4, 640 }
  0x2a   : > { %p11315_p3 = scmp.ne.s32.totalorder %s13076_s4, %s11314_s26  ;;  %p11321_p12 = scmp.lt.u32.totalorder %s11314_s26, %s13076_s4 }
  0x2c   : > { %p11317_p10 = pnand %p11315_p3, %p11664_p8 }
  0x2e   : > { %p11318_p11 = pneg %p11317_p10 }
  0x30   : > { %p11323_p13 = pnand %p11321_p12, %p11318_p11 }
  0x32   : > { %11326 = shalt.err (!%p11323_p13)
}
  0x33   : > { %s11327_s15 = scalar_lea.vmem %s11652_s19, 640  ;;  %p11335_p7 = scmp.lt.s32.totalorder %s11652_s19, %s11652_s19 }
  0x34   : > { %p11328_p0 = scmp.ne.s32.totalorder %s11652_s19, %s11327_s15  ;;  %p11336_p9 = scmp.lt.s32.totalorder %s11327_s15, %s11327_s15 }
  0x36   : > { %p11330_p2 = pnand %p11328_p0, %p11664_p8  ;;  %p11337_p3 = por %p11336_p9, %p11335_p7 }
  0x38   : > { %p11331_p5 = pneg %p11330_p2 }
  0x3a   : > { %p11338_p10 = pnand %p11337_p3, %p11331_p5 }
  0x3c   : > { %11341 = shalt.err (!%p11338_p10)
}
  0x3d   : > { %s11541_s21 = smov 80   ;;  %s11542_s23 = smov 5  }
  0x3e   : > { %10040 = dma.hbm_to_vmem [thread:$0]  (!%p11648_p6), %s13076_s4, 640, %s11652_s19, [#allocation10], %s11541_s21, %s11541_s21, %s11542_s23  }
  0x3f   : > { %s11342_s29 = scalar_lea.hbm %s13077_s5, 80 }
  0x40   : > { %p11343_p11 = scmp.ne.s32.totalorder %s13077_s5, %s11342_s29  ;;  %p11349_p0 = scmp.lt.u32.totalorder %s11342_s29, %s13077_s5 }
  0x42   : > { %p11345_p12 = pnand %p11343_p11, %p11664_p8 }
  0x44   : > { %p11346_p13 = pneg %p11345_p12 }
  0x46   : > { %p11351_p2 = pnand %p11349_p0, %p11346_p13 }
  0x48   : > { %11354 = shalt.err (!%p11351_p2)
}
  0x49   : > { %s11355_s24 = scalar_lea.vmem %s311_s22, 80  ;;  %s11362_s19 = scalar_lea.vmem %s311_s22, 96 }
  0x4a   : > { %p11356_p5 = scmp.ne.s32.totalorder %s311_s22, %s11355_s24  ;;  %p11363_p3 = scmp.lt.s32.totalorder %s311_s22, %s311_s22 }
  0x4b   : > { %p11364_p10 = scmp.lt.s32.totalorder %s11362_s19, %s11355_s24 }
  0x4c   : > { %p11358_p7 = pnand %p11356_p5, %p11664_p8 }
  0x4d   : > { %p11365_p1 = por %p11364_p10, %p11363_p3 }
  0x4e   : > { %p11359_p9 = pneg %p11358_p7 }
  0x50   : > { %p11366_p4 = pnand %p11365_p1, %p11359_p9 }
  0x52   : > { %11369 = shalt.err (!%p11366_p4)
}
  0x53   : > { %10043 = dma.hbm_to_vmem [thread:$0]  (!%p11648_p6), %s13077_s5, 80, %s311_s22, [#allocation13]  }
  0x54   : > { %s11543_s6 = smov [#allocation4]   ;;  %s11370_s29 = scalar_lea.hbm %s13072_s0, 256 }
  0x55   : > { %s259_s25 = sshll.u32 %s11543_s6, 4  ;;  %p11371_p11 = scmp.ne.s32.totalorder %s13072_s0, %s11370_s29  ;;  %s260_s25 = int_to_ptr.vmem [resolvable:$true] %s259_s25 }
  0x56   : > { %p11377_p12 = scmp.lt.u32.totalorder %s11370_s29, %s13072_s0 }
  0x57   : > { %p11373_p1 = pnand %p11371_p11, %p11664_p8 }
  0x59   : > { %p11374_p4 = pneg %p11373_p1 }
  0x5b   : > { %p11379_p13 = pnand %p11377_p12, %p11374_p4 }
  0x5d   : > { %11382 = shalt.err (!%p11379_p13)
}
  0x5e   : > { %s11383_s22 = scalar_lea.vmem %s260_s25, 256  ;;  %p11391_p7 = scmp.lt.s32.totalorder %s260_s25, %s260_s25 }
  0x5f   : > { %p11384_p0 = scmp.ne.s32.totalorder %s260_s25, %s11383_s22  ;;  %p11392_p9 = scmp.lt.s32.totalorder %s11383_s22, %s11383_s22 }
  0x61   : > { %p11386_p2 = pnand %p11384_p0, %p11664_p8  ;;  %p11393_p3 = por %p11392_p9, %p11391_p7 }
  0x63   : > { %p11387_p5 = pneg %p11386_p2 }
  0x65   : > { %p11394_p10 = pnand %p11393_p3, %p11387_p5 }
  0x67   : > { %11397 = shalt.err (!%p11394_p10)
}
  0x68   : > { %s11544_s19 = smov 128   ;;  %s11545_s21 = smov 8  }
  0x69   : > { %10031 = dma.hbm_to_vmem [thread:$0]  (!%p11648_p6), %s13072_s0, 256, %s260_s25, [#allocation5], %s11544_s19, %s11544_s19, %s11545_s21  }
  0x6a   : > { %s11546_s26 = smov [#allocation8]   ;;  %s11547_s29 = smov [#allocation14]  }
  0x6b   : > { %s286_s27 = sshll.u32 %s11546_s26, 4  ;;  %s327_s30 = sshll.u32 %s11547_s29, 4  ;;  %s287_s27 = int_to_ptr.vmem [resolvable:$true] %s286_s27  ;;  %s11748_s30 = int_to_ptr.vmem [resolvable:$true] %s327_s30 }
  0x6c   : > { %s11398_s24 = scalar_lea.hbm %s13074_s2, 80 }
  0x6d   : > { %p11399_p11 = scmp.ne.s32.totalorder %s13074_s2, %s11398_s24  ;;  %p11405_p12 = scmp.lt.u32.totalorder %s11398_s24, %s13074_s2 }
  0x6f   : > { %p11401_p1 = pnand %p11399_p11, %p11664_p8 }
  0x71   : > { %p11402_p4 = pneg %p11401_p1 }
  0x73   : > { %p11407_p13 = pnand %p11405_p12, %p11402_p4 }
  0x75   : > { %11410 = shalt.err (!%p11407_p13)
}
  0x76   : > { %s11411_s19 = scalar_lea.vmem %s287_s27, 80  ;;  %s11418_s21 = scalar_lea.vmem %s287_s27, 96 }
  0x77   : > { %p11412_p0 = scmp.ne.s32.totalorder %s287_s27, %s11411_s19  ;;  %p11419_p7 = scmp.lt.s32.totalorder %s287_s27, %s287_s27 }
  0x78   : > { %p11420_p9 = scmp.lt.s32.totalorder %s11418_s21, %s11411_s19 }
  0x79   : > { %p11414_p2 = pnand %p11412_p0, %p11664_p8 }
  0x7a   : > { %p11421_p3 = por %p11420_p9, %p11419_p7 }
  0x7b   : > { %p11415_p5 = pneg %p11414_p2 }
  0x7d   : > { %p11422_p10 = pnand %p11421_p3, %p11415_p5 }
  0x7f   : > { %11425 = shalt.err (!%p11422_p10)
}
  0x80   : > { %10037 = dma.hbm_to_vmem [thread:$0]  (!%p11648_p6), %s13074_s2, 80, %s287_s27, [#allocation7]  }
  0x81   : > { %s11426_s10 = scalar_lea.hbm %s13080_s8, 16 }
  0x82   : > { %p11427_p11 = scmp.ne.s32.totalorder %s13080_s8, %s11426_s10  ;;  %p11433_p12 = scmp.lt.u32.totalorder %s11426_s10, %s13080_s8 }
  0x84   : > { %p11429_p1 = pnand %p11427_p11, %p11664_p8 }
  0x86   : > { %p11430_p4 = pneg %p11429_p1 }
  0x88   : > { %p11435_p13 = pnand %p11433_p12, %p11430_p4 }
  0x8a   : > { %11438 = shalt.err (!%p11435_p13)
}
  0x8b   : > { %s11439_s27 = scalar_lea.vmem %s11748_s30, 16  ;;  %s11446_s25 = scalar_lea.vmem %s11748_s30, 32 }
  0x8c   : > { %p11440_p0 = scmp.ne.s32.totalorder %s11748_s30, %s11439_s27  ;;  %p11447_p7 = scmp.lt.s32.totalorder %s11748_s30, %s11748_s30 }
  0x8d   : > { %p11448_p9 = scmp.lt.s32.totalorder %s11446_s25, %s11439_s27 }
  0x8e   : > { %p11442_p2 = pnand %p11440_p0, %p11664_p8 }
  0x8f   : > { %p11449_p3 = por %p11448_p9, %p11447_p7 }
  0x90   : > { %p11443_p5 = pneg %p11442_p2 }
  0x92   : > { %p11450_p10 = pnand %p11449_p3, %p11443_p5 }
  0x94   : > { %11453 = shalt.err (!%p11450_p10)
}
  0x95   : > { %10046 = dma.hbm_to_vmem [thread:$0]  (!%p11648_p6), %s13080_s8, 16, %s11748_s30, [#allocation13]  }
  0x96   : > { %s11793_s20 = sadd.s32 1, %s11534_s14   ;;  %s97_s28 = sadd.s32 1, %s11530_s13 }
  0x97   : > { %s94_s18 = ssub.s32 %s11534_s14, %s11793_s20  ;;  %p104_p8 = scmp.ne.s32.totalorder %s11530_s13, %s11526_s12 }
  0x98   : > { %p95_p11 = scmp.eq.s32.totalorder %s94_s18, 0  ;;  %p105_p1 = scmp.eq.s32.totalorder %s11534_s14, 0 }
  0x99   : > { %p110_p4 = scmp.ne.s32.totalorder %s11526_s12, %s11522_s11  ;;  %p10057_p12 = scmp.lt.s32.totalorder %s11534_s14, 4 }
  0x9a   : > { %s11805_s6 = scalar_select %p95_p11, %s11530_s13, %s97_s28  }
  0x9b   : > { %p106_p13 = por %p105_p1, %p104_p8  ;;  %p13089_p0 = scmp.eq.s32.totalorder %s11632_s16, 0 }
  0x9c   : > { %s338_s29 = sand.u32 1, %s11534_s14   ;;  %s340_s30 = sand.u32 1, %s11530_s13  }
  0x9d   : > { %p11809_p2 = por %p13089_p0, %p110_p4  ;;  %s9999_s10 = smul.u32 3200, %s340_s30 }
  0x9e   : > { %s10000_s15 = smul.u32 51200, %s11534_s14  ;;  %p11816_p6 = pnand %p10057_p12, %p106_p13 }
  0x9f   : > { %s342_s27 = scalar_lea.vmem [#allocation9], %s9999_s10  ;;  %s11827_s14 = scalar_lea.sflag [#allocation10], %s338_s29 }
  0xa0   : > { %s11823_s11 = scalar_lea.hbm %s13075_s3, %s10000_s15  ;;  %s350_s25 = sshll.u32 %s342_s27, 4  ;;  %s11825_s25 = int_to_ptr.vmem [resolvable:$true] %s350_s25 }
  0xa1   : > { %s11454_s19 = scalar_lea.hbm %s11823_s11, 51200  ;;  %p11456_p7 = pneg %p11816_p6 }
  0xa2   : > { %p11455_p5 = scmp.ne.s32.totalorder %s11823_s11, %s11454_s19  ;;  %s11459_s18 = scalar_lea.hbm %s13075_s3, 204800 }
  0xa3   : > { %p11460_p10 = scmp.lt.u32.totalorder %s11823_s11, %s13075_s3  ;;  %p11461_p8 = scmp.lt.u32.totalorder %s11459_s18, %s11454_s19 }
  0xa4   : > { %p11457_p9 = pnand %p11456_p7, %p11455_p5  ;;  %p11463_p1 = scmp.lt.u32.totalorder %s11454_s19, %s11823_s11 }
  0xa5   : > { %p11462_p11 = por %p11461_p8, %p11460_p10 }
  0xa6   : > { %p11458_p3 = pneg %p11457_p9 }
  0xa7   : > { %p11464_p4 = por %p11463_p1, %p11462_p11 }
  0xa9   : > { %p11465_p12 = pnand %p11464_p4, %p11458_p3 }
  0xab   : > { %11468 = shalt.err (!%p11465_p12)
}
  0xac   : > { %s11469_s29 = scalar_lea.vmem %s11825_s25, 51200  ;;  %s11548_s10 = smov [#allocation9]  }
  0xad   : > { %p11470_p13 = scmp.ne.s32.totalorder %s11825_s25, %s11469_s29  ;;  %s11474_s22 = sshll.u32 %s11548_s10, 4  ;;  %s11475_s22 = int_to_ptr.vmem [resolvable:$false] %s11474_s22 }
  0xae   : > { %s11476_s23 = scalar_lea.vmem %s11475_s22, 102400  ;;  %p11477_p9 = scmp.lt.s32.totalorder %s11825_s25, %s11475_s22 }
  0xaf   : > { %p11472_p0 = pnand %p11470_p13, %p11456_p7  ;;  %p11478_p10 = scmp.lt.s32.totalorder %s11476_s23, %s11469_s29 }
  0xb1   : > { %p11473_p5 = pneg %p11472_p0  ;;  %p11479_p8 = por %p11478_p10, %p11477_p9 }
  0xb3   : > { %p11480_p11 = pnand %p11479_p8, %p11473_p5 }
  0xb5   : > { %11483 = shalt.err (!%p11480_p11)
}
  0xb6   : > { %s13092_s27 = smov 20   ;;  %s13093_s19 = smov 320  }
  0xb7   : > { %10050 = dma.hbm_to_vmem [thread:$0]  (!%p11816_p6), %s11823_s11, 51200, %s11825_s25, %s11827_s14, %s13093_s19, %s13093_s19, %s13092_s27  }
  0xb8   : > { %p13094_p7 = scmp.ne.s32.totalorder %s13086_s17, 0 }
  0xb9   : > { %p13095_p3 = scmp.eq.s32.totalorder (!%p13094_p7), %s11632_s16, 0 }
  0xba   : > { %362 = sbr.rel (%p13094_p7) target bundleno = 2215 (0x8a7), region = 56 }
  0xc1   : > { %11501 = dma.done.wait (%p13095_p3), [#allocation5], 256   ;;  %p13096_p1 = pmov %p13095_p3 }
  0xc3   : > { %11503 = vsyncadd (%p13096_p1), [#allocation5], 4294967040  ;;  %p13097_p4 = pmov %p13096_p1 }
  0xc4   : > { %p13098_p12 = pmov %p13096_p1 }
  0xc5   : > { %11505 = dma.done.wait (%p13097_p4), [#allocation7], 720  }
  0xc6   : > { %11507 = vsyncadd (%p13098_p12), [#allocation7], 4294966576  ;;  %s376_s24 = sand.u32 1, %s11632_s16   ;;  %s378_s11 = sand.u32 1, %s11526_s12  }
  0xc7   : > { %s10001_s25 = smul.u32 3200, %s378_s11  ;;  %s377_s17 = scalar_lea.sflag [#allocation10], %s376_s24 }
  0xc9   : > { %s11870_s14 = scalar_lea.vmem [#allocation9], %s10001_s25 }
  0xca   : > { %11509 = dma.done.wait (%p11809_p2), %s377_s17, 51200  }
  0xcb   : > { %11511 = vsyncadd (%p11809_p2), %s377_s17, 4294916096  ;;  %p13099_p6 = pmov %p13096_p1 }
  0xcc   : > { %p13100_p13 = pmov %p13096_p1 }
  0xcd   : > { %11513 = dma.done.wait (%p13099_p6), [#allocation10], 640  }
  0xce   : > { %11515 = vsyncadd (%p13100_p13), [#allocation10], 4294966656  ;;  %p13101_p0 = pmov %p13096_p1 }
  0xd0   : > { %11517 = dma.done.wait (%p13101_p0), [#allocation13], 96   ;;  %p13102_p5 = pmov %p13101_p0 }
  0xd1   : > { %p13103_p9 = scmp.ne.s32.totalorder %s11632_s16, 0 }
  0xd2   : > { %11519 = vsyncadd (%p13102_p5), [#allocation13], 4294967200  ;;  %v10117_v1 = vld [vmem:[#allocation6 + $0x4] ss:$20 sps:$4 sm:$0xff] (!%p13103_p9)   ;;  %v10119_v2 = vld [vmem:[#allocation6] ss:$20 sps:$4 sm:$0xff] (!%p13103_p9)  }
  0xd3   : > { %427 = sbr.rel (%p13103_p9) target bundleno = 1137 (0x471), region = 88  ;;  %v11549_v3 = vmov (!%p13103_p9), 0   ;;  %v428_v4 = vld [vmem:[#allocation4] sm:$0xff] (!%p13103_p9)  ;;  %v429_v5 = vld [vmem:[#allocation4 + $0x8] sm:$0xff] (!%p13103_p9)  ;;  %494 = vmatprep.subr.bf16.mxu0 (!%p13103_p9), %v10117_v1  ;;  %vm490_vm0 = vcmask (!%p13103_p9), 130048   ;;  %v11550_v9 = vmov (!%p13103_p9), 0.0  }
  0xd4   : > { %526 = vmatprep.mubr.bf16.mxu0 (!%p13103_p9), %v11549_v3  ;;  %569 = vmatprep.mubr.bf16.mxu1 (!%p13103_p9), %v11549_v3  ;;  %v430_v6 = vpack.c.bf16 (!%p13103_p9), %v429_v5, %v428_v4  ;;  %v10120_v7 = vld [vmem:[#allocation6 + $0xc] ss:$20 sps:$4 sm:$0xff] (!%p13103_p9)   ;;  %v10122_v8 = vld [vmem:[#allocation6 + $0x8] ss:$20 sps:$4 sm:$0xff] (!%p13103_p9)   ;;  %v10123_v10 = vld [vmem:[#allocation6 + $0x10] ss:$20 sps:$4 sm:$0xff] (!%p13103_p9)  }
  0xd5   : > { %495 = vmatpush1.bf16.msra.mxu0 (!%p13103_p9), %v10119_v2  ;;  %537 = vmatprep.subr.bf16.mxu1 (!%p13103_p9), %v10120_v7  ;;  %v10124_v11 = vld [vmem:[%s11870_s14] ss:$20 sps:$4 sm:$0xff] (!%p13103_p9)   ;;  %v10126_v12 = vld [vmem:[%s11870_s14 + $0x4] ss:$20 sps:$4 sm:$0xff] (!%p13103_p9)   ;;  %vm11551_vm1 = vmmov (!%p13103_p9), 0   ;;  %s8195_s26 = smul.u32 (!%p13103_p9), 10, %s11632_s16 }
  0xd6   : > { %9797 = vmatprep.subr.bf16.mxu0 (!%p13103_p9), %v11550_v9  ;;  %538 = vmatpush1.bf16.msra.mxu1 (!%p13103_p9), %v10122_v8  ;;  %v10129_v13 = vld [vmem:[%s11870_s14 + $0xc] ss:$20 sps:$4 sm:$0xff] (!%p13103_p9)   ;;  %v10130_v15 = vld [vmem:[%s11870_s14 + $0x28] ss:$20 sps:$4 sm:$0xff] (!%p13103_p9)   ;;  %v10136_v19 = vld [vmem:[%s11870_s14 + $0x50] ss:$20 sps:$4 sm:$0xff] (!%p13103_p9)  }
  0xd7   : > { %1946 = vmatprep.subr.bf16.mxu1 (!%p13103_p9), %v10126_v12  ;;  %v10132_v14 = vld [vmem:[%s11870_s14 + $0x2c] ss:$20 sps:$4 sm:$0xff] (!%p13103_p9)   ;;  %v10138_v16 = vld [vmem:[%s11870_s14 + $0x54] ss:$20 sps:$4 sm:$0xff] (!%p13103_p9)   ;;  %v10144_v20 = vld [vmem:[%s11870_s14 + $0x7c] ss:$20 sps:$4 sm:$0xff] (!%p13103_p9)  }
  0xd8   : > { %8191 = vmatmul.mubr.msk.bf16.vlgmr.msra.gmra.mrb[0].mxu0 (!%p13103_p9), %vm490_vm0, %v430_v6  ;;  %v10127_v17 = vld [vmem:[%s11870_s14 + $0x8] ss:$20 sps:$4 sm:$0xff] (!%p13103_p9)   ;;  %v10133_v21 = vld [vmem:[%s11870_s14 + $0x30] ss:$20 sps:$4 sm:$0xff] (!%p13103_p9)   ;;  %v10142_v23 = vld [vmem:[%s11870_s14 + $0x78] ss:$20 sps:$4 sm:$0xff] (!%p13103_p9)  }
  0xd9   : > { %9798 = vmatpush3.bf16.msra.mxu0 (!%p13103_p9), %v10123_v10  ;;  %9799 = vmatprep.mubr.msk.bf16.mxu0 (!%p13103_p9), %vm11551_vm1, %v11550_v9  ;;  %v10135_v18 = vld [vmem:[%s11870_s14 + $0x34] ss:$20 sps:$4 sm:$0xff] (!%p13103_p9)   ;;  %v10141_v22 = vld [vmem:[%s11870_s14 + $0x5c] ss:$20 sps:$4 sm:$0xff] (!%p13103_p9)   ;;  %v10150_v24 = vld [vmem:[%s11870_s14 + $0xa4] ss:$20 sps:$4 sm:$0xff] (!%p13103_p9)  }
  0xda   : > { %8192 = vmatmul.mubr.msk.bf16.vlgmr.msra.gmra.mrb[0].mxu1 %vm490_vm0, %v430_v6  ;;  %2075 = vmatprep.subr.bf16.mxu0 %v10129_v13  ;;  %v10139_v25 = vld [vmem:[%s11870_s14 + $0x58] ss:$20 sps:$4 sm:$0xff]   ;;  %v10148_v27 = vld [vmem:[%s11870_s14 + $0xa0] ss:$20 sps:$4 sm:$0xff]   ;;  %v10154_v31 = vld [vmem:[%s11870_s14 + $0xc8] ss:$20 sps:$4 sm:$0xff]  }
  0xdb   : > { %1947 = vmatpush1.bf16.msra.mxu1 %v10124_v11  ;;  %v10147_v26 = vld [vmem:[%s11870_s14 + $0x84] ss:$20 sps:$4 sm:$0xff]   ;;  %v10156_v28 = vld [vmem:[%s11870_s14 + $0xcc] ss:$20 sps:$4 sm:$0xff]   ;;  %v10162_v32 = vld [vmem:[%s11870_s14 + $0xf4] ss:$20 sps:$4 sm:$0xff]  }
  0xdc   : > { %1948 = vmatprep.subr.bf16.mxu1 %v10132_v14  ;;  %v10145_v29 = vld [vmem:[%s11870_s14 + $0x80] ss:$20 sps:$4 sm:$0xff]   ;;  %v10151_v33 = vld [vmem:[%s11870_s14 + $0xa8] ss:$20 sps:$4 sm:$0xff]   ;;  %v10160_v35 = vld [vmem:[%s11870_s14 + $0xf0] ss:$20 sps:$4 sm:$0xff]  }
  0xdd   : > { %v10153_v30 = vld [vmem:[%s11870_s14 + $0xac] ss:$20 sps:$4 sm:$0xff]   ;;  %v10159_v34 = vld [vmem:[%s11870_s14 + $0xd4] ss:$20 sps:$4 sm:$0xff]   ;;  %v10168_v36 = vld [vmem:[%s11870_s14 + $0x11c] ss:$20 sps:$4 sm:$0xff]  }
  0xde   : > { %v10157_v37 = vld [vmem:[%s11870_s14 + $0xd0] ss:$20 sps:$4 sm:$0xff]   ;;  %v10166_v39 = vld [vmem:[%s11870_s14 + $0x118] ss:$20 sps:$4 sm:$0xff]   ;;  %v10172_v43 = vld [vmem:[%s11870_s14 + $0x140] ss:$20 sps:$4 sm:$0xff]  }
  0xdf   : > { %1949 = vmatpush1.bf16.msra.mxu1 %v10130_v15  ;;  %v10165_v38 = vld [vmem:[%s11870_s14 + $0xfc] ss:$20 sps:$4 sm:$0xff]   ;;  %v10174_v40 = vld [vmem:[%s11870_s14 + $0x144] ss:$20 sps:$4 sm:$0xff]   ;;  %v10180_v44 = vld [vmem:[%s11870_s14 + $0x16c] ss:$20 sps:$4 sm:$0xff]   ;;  %v439_v15 = vlaneseq }
  0xe0   : > { %9800 = vmatmul.mubr.msk.bf16.vlgmr.msra.gmra.mrb[4].mxu0 %vm490_vm0, %v430_v6  ;;  %1950 = vmatprep.subr.bf16.mxu1 %v10138_v16  ;;  %v10163_v41 = vld [vmem:[%s11870_s14 + $0xf8] ss:$20 sps:$4 sm:$0xff]   ;;  %v10169_v45 = vld [vmem:[%s11870_s14 + $0x120] ss:$20 sps:$4 sm:$0xff]   ;;  %v10175_v47 = vld [vmem:[%s11870_s14 + $0x148] ss:$20 sps:$4 sm:$0xff]  }
  0xe1   : > { %2076 = vmatpush1.bf16.msra.mxu0 %v10127_v17  ;;  %v10171_v42 = vld [vmem:[%s11870_s14 + $0x124] ss:$20 sps:$4 sm:$0xff]   ;;  %v10177_v46 = vld [vmem:[%s11870_s14 + $0x14c] ss:$20 sps:$4 sm:$0xff]   ;;  %v10178_v48 = vld [vmem:[%s11870_s14 + $0x168] ss:$20 sps:$4 sm:$0xff]  }
  0xe2   : > { %2077 = vmatprep.subr.bf16.mxu0 %v10135_v18  ;;  %v10186_v49 = vld [vmem:[%s11870_s14 + $0x194] ss:$20 sps:$4 sm:$0xff]   ;;  %v10184_v51 = vld [vmem:[%s11870_s14 + $0x190] ss:$20 sps:$4 sm:$0xff]   ;;  %v10190_v55 = vld [vmem:[%s11870_s14 + $0x1b8] ss:$20 sps:$4 sm:$0xff]  }
  0xe3   : > { %1951 = vmatpush1.bf16.msra.mxu1 %v10136_v19  ;;  %v10183_v50 = vld [vmem:[%s11870_s14 + $0x174] ss:$20 sps:$4 sm:$0xff]   ;;  %v10192_v52 = vld [vmem:[%s11870_s14 + $0x1bc] ss:$20 sps:$4 sm:$0xff]   ;;  %v10198_v56 = vld [vmem:[%s11870_s14 + $0x1e4] ss:$20 sps:$4 sm:$0xff]  }
  0xe4   : > { %1952 = vmatprep.subr.bf16.mxu1 %v10144_v20  ;;  %v10181_v53 = vld [vmem:[%s11870_s14 + $0x170] ss:$20 sps:$4 sm:$0xff]   ;;  %v10187_v57 = vld [vmem:[%s11870_s14 + $0x198] ss:$20 sps:$4 sm:$0xff]   ;;  %v10196_v59 = vld [vmem:[%s11870_s14 + $0x1e0] ss:$20 sps:$4 sm:$0xff]  }
  0xe5   : > { %2078 = vmatpush1.bf16.msra.mxu0 %v10133_v21  ;;  %v10189_v54 = vld [vmem:[%s11870_s14 + $0x19c] ss:$20 sps:$4 sm:$0xff]   ;;  %v10195_v58 = vld [vmem:[%s11870_s14 + $0x1c4] ss:$20 sps:$4 sm:$0xff]   ;;  %v10204_v60 = vld [vmem:[%s11870_s14 + $0x20c] ss:$20 sps:$4 sm:$0xff]  }
  0xe6   : > { %2079 = vmatprep.subr.bf16.mxu0 %v10141_v22  ;;  %v10193_v61 = vld [vmem:[%s11870_s14 + $0x1c0] ss:$20 sps:$4 sm:$0xff]   ;;  %v10202_v63 = vld [vmem:[%s11870_s14 + $0x208] ss:$20 sps:$4 sm:$0xff]   ;;  %v10205_v2 = vld [vmem:[%s11870_s14 + $0x210] ss:$20 sps:$4 sm:$0xff]  }
  0xe7   : > { %1953 = vmatpush1.bf16.msra.mxu1 %v10142_v23  ;;  %v10201_v62 = vld [vmem:[%s11870_s14 + $0x1ec] ss:$20 sps:$4 sm:$0xff]   ;;  %v10199_v0 = vld [vmem:[%s11870_s14 + $0x1e8] ss:$20 sps:$4 sm:$0xff]   ;;  %v10208_v6 = vld [vmem:[%s11870_s14 + $0x230] ss:$20 sps:$4 sm:$0xff]  }
  0xe8   : > { %1954 = vmatprep.subr.bf16.mxu1 %v10150_v24  ;;  %v10207_v1 = vld [vmem:[%s11870_s14 + $0x214] ss:$20 sps:$4 sm:$0xff]   ;;  %v10213_v5 = vld [vmem:[%s11870_s14 + $0x23c] ss:$20 sps:$4 sm:$0xff]   ;;  %v10211_v7 = vld [vmem:[%s11870_s14 + $0x238] ss:$20 sps:$4 sm:$0xff]  }
  0xe9   : > { %2080 = vmatpush1.bf16.msra.mxu0 %v10139_v25  ;;  %v10210_v4 = vld [vmem:[%s11870_s14 + $0x234] ss:$20 sps:$4 sm:$0xff]   ;;  %v10216_v8 = vld [vmem:[%s11870_s14 + $0x25c] ss:$20 sps:$4 sm:$0xff]   ;;  %v10219_v10 = vld [vmem:[%s11870_s14 + $0x264] ss:$20 sps:$4 sm:$0xff]  }
  0xea   : > { %2081 = vmatprep.subr.bf16.mxu0 %v10147_v26  ;;  %v10214_v11 = vld [vmem:[%s11870_s14 + $0x258] ss:$20 sps:$4 sm:$0xff]   ;;  %v10217_v12 = vld [vmem:[%s11870_s14 + $0x260] ss:$20 sps:$4 sm:$0xff]   ;;  %v440_v16 = vshrl.u32 %v439_v15, 7  ;;  %s12213_s21 = scalar_lea.vmem [#allocation11], %s8195_s26 }
  0xeb   : > { %1955 = vmatpush1.bf16.msra.mxu1 %v10148_v27  ;;  %v10222_v13 = vld [vmem:[%s11870_s14 + $0x284] ss:$20 sps:$4 sm:$0xff]   ;;  %v10225_v14 = vld [vmem:[%s11870_s14 + $0x28c] ss:$20 sps:$4 sm:$0xff]  }
  0xec   : > { %1956 = vmatprep.subr.bf16.mxu1 %v10156_v28  ;;  %v437_v17 = vld [vmem:[#allocation8] sm:$0x1f]  ;;  %v11960_v18 = vsub.s32 0, %v440_v16  ;;  %v11962_v19 = vsub.s32 1, %v440_v16  ;;  %v11964_v20 = vsub.s32 2, %v440_v16  ;;  %v11966_v21 = vsub.s32 3, %v440_v16 }
  0xed   : > { %2082 = vmatpush1.bf16.msra.mxu0 %v10145_v29  ;;  %v11972_v27 = vsub.s32 4, %v440_v16  ;;  %v10238_v15 = vld [vmem:[%s11870_s14 + $0x2f8] ss:$20 sps:$4 sm:$0xff]   ;;  %v10241_v16 = vld [vmem:[%s11870_s14 + $0x300] ss:$20 sps:$4 sm:$0xff]  }
  0xee   : > { %2083 = vmatprep.subr.bf16.mxu0 %v10153_v30  ;;  %v442_v22 = vrot.slane %v437_v17, %v11960_v18  ;;  %v446_v23 = vrot.slane %v437_v17, %v11962_v19  ;;  %v450_v24 = vrot.slane %v437_v17, %v11964_v20  ;;  %v454_v26 = vrot.slane %v437_v17, %v11966_v21 }
  0xef   : > { %1957 = vmatpush1.bf16.msra.mxu1 %v10154_v31 }
  0xf0   : > { %1958 = vmatprep.subr.bf16.mxu1 %v10162_v32 }
  0xf1   : > { %2084 = vmatpush1.bf16.msra.mxu0 %v10151_v33 }
  0xf2   : > { %2085 = vmatprep.subr.bf16.mxu0 %v10159_v34 }
  0xf3   : > { %1959 = vmatpush1.bf16.msra.mxu1 %v10160_v35 }
  0xf4   : > { %1960 = vmatprep.subr.bf16.mxu1 %v10168_v36 }
  0xf5   : > { %2086 = vmatpush1.bf16.msra.mxu0 %v10157_v37 }
  0xf6   : > { %2087 = vmatprep.subr.bf16.mxu0 %v10165_v38 }
  0xf7   : > { %1961 = vmatpush1.bf16.msra.mxu1 %v10166_v39 }
  0xf8   : > { %1962 = vmatprep.subr.bf16.mxu1 %v10174_v40  ;;  %v458_v40 = vrot.slane %v437_v17, %v11972_v27  ;;  %v10246_v17 = vld [vmem:[%s11870_s14 + $0x324] ss:$20 sps:$4 sm:$0xff]  }
  0xf9   : > { %2088 = vmatpush1.bf16.msra.mxu0 %v10163_v41 }
  0xfa   : > { %2089 = vmatprep.subr.bf16.mxu0 %v10171_v42 }
  0xfb   : > { %1963 = vmatpush1.bf16.msra.mxu1 %v10172_v43 }
  0xfc   : > { %1964 = vmatprep.subr.bf16.mxu1 %v10180_v44 }
  0xfd   : > { %2090 = vmatpush1.bf16.msra.mxu0 %v10169_v45 }
  0xfe   : > { %2091 = vmatprep.subr.bf16.mxu0 %v10177_v46 }
  0xff   : > { %1965 = vmatpush1.bf16.msra.mxu1 %v10178_v48  ;;  %v10220_v48 = vld [vmem:[%s11870_s14 + $0x280] ss:$20 sps:$4 sm:$0xff]  }
 0x100   : > { %1966 = vmatprep.subr.bf16.mxu1 %v10186_v49  ;;  %v10223_v49 = vld [vmem:[%s11870_s14 + $0x288] ss:$20 sps:$4 sm:$0xff]  }
 0x101   : > { %2092 = vmatpush1.bf16.msra.mxu0 %v10175_v47 }
 0x102   : > { %2093 = vmatprep.subr.bf16.mxu0 %v10183_v50 }
 0x103   : > { %1967 = vmatpush1.bf16.msra.mxu1 %v10184_v51 }
 0x104   : > { %1968 = vmatprep.subr.bf16.mxu1 %v10192_v52 }
 0x105   : > { %2094 = vmatpush1.bf16.msra.mxu0 %v10181_v53  ;;  %v10228_v53 = vld [vmem:[%s11870_s14 + $0x2ac] ss:$20 sps:$4 sm:$0xff]  }
 0x106   : > { %2095 = vmatprep.subr.bf16.mxu0 %v10189_v54  ;;  %v10231_v54 = vld [vmem:[%s11870_s14 + $0x2b4] ss:$20 sps:$4 sm:$0xff]  }
 0x107   : > { %1969 = vmatpush1.bf16.msra.mxu1 %v10190_v55 }
 0x108   : > { %1970 = vmatprep.subr.bf16.mxu1 %v10198_v56 }
 0x109   : > { %2096 = vmatpush1.bf16.msra.mxu0 %v10187_v57 }
 0x10a   : > { %2097 = vmatprep.subr.bf16.mxu0 %v10195_v58 }
 0x10b   : > { %1971 = vmatpush1.bf16.msra.mxu1 %v10196_v59 }
 0x10c   : > { %1972 = vmatprep.subr.bf16.mxu1 %v10204_v60 }
 0x10d   : > { %2098 = vmatpush1.bf16.msra.mxu0 %v10193_v61 }
 0x10e   : > { %2099 = vmatprep.subr.bf16.mxu0 %v10201_v62  ;;  %v10226_v62 = vld [vmem:[%s11870_s14 + $0x2a8] ss:$20 sps:$4 sm:$0xff]  }
 0x10f   : > { %1973 = vmatpush1.bf16.msra.mxu1 %v10202_v63  ;;  %v10229_v63 = vld [vmem:[%s11870_s14 + $0x2b0] ss:$20 sps:$4 sm:$0xff]  }
 0x110   : > { %1974 = vmatprep.subr.bf16.mxu1 %v10210_v4 }
 0x111   : > { %2100 = vmatpush1.bf16.msra.mxu0 %v10199_v0 }
 0x112   : > { %2101 = vmatprep.subr.bf16.mxu0 %v10207_v1 }
 0x113   : > { %1975 = vmatpush1.bf16.msra.mxu1 %v10208_v6 }
 0x114   : > { %1976 = vmatprep.subr.bf16.mxu1 %v10216_v8 }
 0x115   : > { %2102 = vmatpush1.bf16.msra.mxu0 %v10205_v2  ;;  %v10234_v2 = vld [vmem:[%s11870_s14 + $0x2d4] ss:$20 sps:$4 sm:$0xff]  }
 0x116   : > { %2103 = vmatprep.subr.bf16.mxu0 %v10213_v5 }
 0x117   : > { %1977 = vmatpush1.bf16.msra.mxu1 %v10214_v11  ;;  %v10235_v11 = vld [vmem:[%s11870_s14 + $0x2d8] ss:$20 sps:$4 sm:$0xff]  }
 0x118   : > { %1989 = vmatprep.subr.bf16.mxu1 %v10222_v13 }
 0x119   : > { %2104 = vmatpush1.bf16.msra.mxu0 %v10211_v7  ;;  %v10237_v7 = vld [vmem:[%s11870_s14 + $0x2dc] ss:$20 sps:$4 sm:$0xff]  }
 0x11a   : > { %2105 = vmatprep.subr.bf16.mxu0 %v10219_v10  ;;  %v10232_v10 = vld [vmem:[%s11870_s14 + $0x2d0] ss:$20 sps:$4 sm:$0xff]  }
 0x11d   : > { %2106 = vmatpush1.bf16.msra.mxu0 %v10217_v12  ;;  %v10240_v12 = vld [vmem:[%s11870_s14 + $0x2fc] ss:$20 sps:$4 sm:$0xff]  }
 0x11e   : > { %2118 = vmatprep.subr.bf16.mxu0 %v10225_v14  ;;  %v10243_v14 = vld [vmem:[%s11870_s14 + $0x304] ss:$20 sps:$4 sm:$0xff]  }
 0x1ab   : > { %v528_v25 = vpop.f32.mrb[0].mxu0 }
 0x1ac   : > { %v529_v28 = vadd.f32 %v528_v25, %v442_v22  ;;  %v530_v29 = vpop.f32.mrb[1].mxu0  ;;  %v10252_v25 = vld [vmem:[%s11870_s14 + $0x34c] ss:$20 sps:$4 sm:$0xff]  }
 0x1ad   : > { %v531_v30 = vadd.f32 %v530_v29, %v446_v23  ;;  %v532_v31 = vpop.f32.mrb[2].mxu0  ;;  %v571_v32 = vpop.f32.mrb[0].mxu1  ;;  %v10253_v29 = vld [vmem:[%s11870_s14 + $0x350] ss:$20 sps:$4 sm:$0xff]  }
 0x1ae   : > { %v533_v33 = vadd.f32 %v532_v31, %v442_v22  ;;  %v534_v34 = vpop.f32.mrb[3].mxu0  ;;  %v572_v35 = vadd.f32 %v571_v32, %v450_v24  ;;  %v573_v36 = vpop.f32.mrb[1].mxu1  ;;  %v621_v41 = vmax.f32 %v529_v28, 0.0  ;;  %v10249_v22 = vld [vmem:[%s11870_s14 + $0x32c] ss:$20 sps:$4 sm:$0xff]  }
 0x1af   : > { %v535_v37 = vadd.f32 %v534_v34, %v446_v23  ;;  %v574_v38 = vadd.f32 %v573_v36, %v454_v26  ;;  %v575_v39 = vpop.f32.mrb[2].mxu1  ;;  %v622_v46 = vmax.f32 %v531_v30, 0.0  ;;  %v10244_v23 = vld [vmem:[%s11870_s14 + $0x320] ss:$20 sps:$4 sm:$0xff]   ;;  %v10250_v28 = vld [vmem:[%s11870_s14 + $0x348] ss:$20 sps:$4 sm:$0xff]  }
 0x1b0   : > { %v626_v42 = vmax.f32 %v533_v33, 0.0  ;;  %v623_v43 = vmax.f32 %v572_v35, 0.0  ;;  %v576_v44 = vadd.f32 %v575_v39, %v450_v24  ;;  %v577_v45 = vpop.f32.mrb[3].mxu1  ;;  %v10247_v24 = vld [vmem:[%s11870_s14 + $0x328] ss:$20 sps:$4 sm:$0xff]  }
 0x1b1   : > { %v627_v47 = vmax.f32 %v535_v37, 0.0  ;;  %v624_v50 = vmax.f32 %v574_v38, 0.0  ;;  %v578_v51 = vadd.f32 %v577_v45, %v454_v26  ;;  %v10255_v26 = vld [vmem:[%s11870_s14 + $0x354] ss:$20 sps:$4 sm:$0xff]   ;;  %v10261_v31 = vld [vmem:[%s11870_s14 + $0x37c] ss:$20 sps:$4 sm:$0xff]  }
 0x1b2   : > { %v11977_v52 = vpack.c.bf16 %v626_v42, %v621_v41  ;;  %v628_v55 = vmax.f32 %v576_v44, 0.0  ;;  %v10258_v30 = vld [vmem:[%s11870_s14 + $0x374] ss:$20 sps:$4 sm:$0xff]   ;;  %v10256_v32 = vld [vmem:[%s11870_s14 + $0x370] ss:$20 sps:$4 sm:$0xff]  }
 0x1b3   : > { %v11981_v56 = vpack.c.bf16 %v627_v47, %v622_v46  ;;  %v629_v57 = vmax.f32 %v578_v51, 0.0  ;;  %v614_v58 = vpop.f32.mrb[4].mxu0  ;;  %v10259_v33 = vld [vmem:[%s11870_s14 + $0x378] ss:$20 sps:$4 sm:$0xff]   ;;  %v10264_v34 = vld [vmem:[%s11870_s14 + $0x39c] ss:$20 sps:$4 sm:$0xff]  }
 0x1b4   : > { %v11983_v59 = vpack.c.bf16 %v628_v55, %v623_v43  ;;  %v615_v60 = vadd.f32 %v614_v58, %v458_v40  ;;  %v9801_v61 = vpop.f32.mrb[5].mxu0  ;;  %v10267_v35 = vld [vmem:[%s11870_s14 + $0x3a4] ss:$20 sps:$4 sm:$0xff]   ;;  %v10265_v37 = vld [vmem:[%s11870_s14 + $0x3a0] ss:$20 sps:$4 sm:$0xff]  }
 0x1b5   : > { %1978 = vmatprep.mubr.bf16.mxu1 %v11981_v56  ;;  %2107 = vmatprep.mubr.bf16.mxu0 %v11981_v56  ;;  %v11989_v0 = vpack.c.bf16 %v629_v57, %v624_v50  ;;  %v617_v1 = vpop.f32.mrb[6].mxu0  ;;  %v10262_v36 = vld [vmem:[%s11870_s14 + $0x398] ss:$20 sps:$4 sm:$0xff]   ;;  %v10271_v41 = vld [vmem:[%s11870_s14 + $0x3c8] ss:$20 sps:$4 sm:$0xff]  }
 0x1b6   : > { %1979 = vmatmul.mubr.bf16.vlgmr.msra.gmra.mrb[4].mxu1 %v11977_v52  ;;  %2108 = vmatmul.mubr.bf16.vlgmr.msra.gmra.mrb[8].mxu0 %v11977_v52  ;;  %v625_v4 = vmax.f32 %v615_v60, 0.0  ;;  %v618_v5 = vadd.f32 %v617_v1, %v458_v40  ;;  %v9802_v6 = vpop.f32.mrb[7].mxu0  ;;  %v10270_v38 = vld [vmem:[%s11870_s14 + $0x3c4] ss:$20 sps:$4 sm:$0xff]   ;;  %v10273_v39 = vld [vmem:[%s11870_s14 + $0x3cc] ss:$20 sps:$4 sm:$0xff]  }
 0x1b7   : > { %1990 = vmatpush1.bf16.msra.mxu1 %v10220_v48  ;;  %2119 = vmatpush1.bf16.msra.mxu0 %v10223_v49  ;;  %v10268_v40 = vld [vmem:[%s11870_s14 + $0x3c0] ss:$20 sps:$4 sm:$0xff]   ;;  %v10274_v44 = vld [vmem:[%s11870_s14 + $0x3e8] ss:$20 sps:$4 sm:$0xff]   ;;  %v10277_v45 = vld [vmem:[%s11870_s14 + $0x3f0] ss:$20 sps:$4 sm:$0xff]  }
 0x1b8   : > { %1991 = vmatprep.subr.bf16.mxu1 %v10228_v53  ;;  %2120 = vmatprep.subr.bf16.mxu0 %v10231_v54  ;;  %v630_v8 = vmax.f32 %v618_v5, 0.0  ;;  %v10276_v42 = vld [vmem:[%s11870_s14 + $0x3ec] ss:$20 sps:$4 sm:$0xff]   ;;  %v10279_v43 = vld [vmem:[%s11870_s14 + $0x3f4] ss:$20 sps:$4 sm:$0xff]  }
 0x1b9   : > { %2021 = vmatprep.mubr.bf16.mxu1 %v11989_v0  ;;  %2150 = vmatprep.mubr.bf16.mxu0 %v11989_v0  ;;  %v10282_v46 = vld [vmem:[%s11870_s14 + $0x414] ss:$20 sps:$4 sm:$0xff]   ;;  %v10285_v47 = vld [vmem:[%s11870_s14 + $0x41c] ss:$20 sps:$4 sm:$0xff]   ;;  %v10283_v49 = vld [vmem:[%s11870_s14 + $0x418] ss:$20 sps:$4 sm:$0xff]  }
 0x1ba   : > { %v12000_v13 = vpack.c.bf16 %v630_v8, %v625_v4  ;;  %v10280_v48 = vld [vmem:[%s11870_s14 + $0x410] ss:$20 sps:$4 sm:$0xff]   ;;  %v10286_v53 = vld [vmem:[%s11870_s14 + $0x438] ss:$20 sps:$4 sm:$0xff]   ;;  %v10289_v54 = vld [vmem:[%s11870_s14 + $0x440] ss:$20 sps:$4 sm:$0xff]  }
 0x1bb   : > { %1992 = vmatpush1.bf16.msra.mxu1 %v10226_v62  ;;  %2121 = vmatpush1.bf16.msra.mxu0 %v10229_v63  ;;  %v10288_v50 = vld [vmem:[%s11870_s14 + $0x43c] ss:$20 sps:$4 sm:$0xff]   ;;  %v10291_v51 = vld [vmem:[%s11870_s14 + $0x444] ss:$20 sps:$4 sm:$0xff]   ;;  %v10297_v57 = vld [vmem:[%s11870_s14 + $0x46c] ss:$20 sps:$4 sm:$0xff]  }
 0x1bc   : > { %1993 = vmatprep.subr.bf16.mxu1 %v10234_v2  ;;  %2122 = vmatprep.subr.bf16.mxu0 %v10237_v7  ;;  %v10294_v55 = vld [vmem:[%s11870_s14 + $0x464] ss:$20 sps:$4 sm:$0xff]   ;;  %v10292_v58 = vld [vmem:[%s11870_s14 + $0x460] ss:$20 sps:$4 sm:$0xff]   ;;  %v10295_v60 = vld [vmem:[%s11870_s14 + $0x468] ss:$20 sps:$4 sm:$0xff]  }
 0x1bd   : > { %v10300_v61 = vld [vmem:[%s11870_s14 + $0x48c] ss:$20 sps:$4 sm:$0xff]   ;;  %v10303_v62 = vld [vmem:[%s11870_s14 + $0x494] ss:$20 sps:$4 sm:$0xff]   ;;  %v10301_v1 = vld [vmem:[%s11870_s14 + $0x490] ss:$20 sps:$4 sm:$0xff]  }
 0x1be   : > { %v10298_v63 = vld [vmem:[%s11870_s14 + $0x488] ss:$20 sps:$4 sm:$0xff]   ;;  %v10304_v5 = vld [vmem:[%s11870_s14 + $0x4b0] ss:$20 sps:$4 sm:$0xff]   ;;  %v10307_v6 = vld [vmem:[%s11870_s14 + $0x4b8] ss:$20 sps:$4 sm:$0xff]  }
 0x1bf   : > { %1994 = vmatpush1.bf16.msra.mxu1 %v10232_v10  ;;  %2123 = vmatpush1.bf16.msra.mxu0 %v10235_v11  ;;  %v10306_v2 = vld [vmem:[%s11870_s14 + $0x4b4] ss:$20 sps:$4 sm:$0xff]   ;;  %v10309_v4 = vld [vmem:[%s11870_s14 + $0x4bc] ss:$20 sps:$4 sm:$0xff]   ;;  %v10315_v8 = vld [vmem:[%s11870_s14 + $0x4e4] ss:$20 sps:$4 sm:$0xff]  }
 0x1c0   : > { %1995 = vmatprep.subr.bf16.mxu1 %v10240_v12  ;;  %2124 = vmatprep.subr.bf16.mxu0 %v10243_v14  ;;  %v10312_v7 = vld [vmem:[%s11870_s14 + $0x4dc] ss:$20 sps:$4 sm:$0xff]   ;;  %v10310_v10 = vld [vmem:[%s11870_s14 + $0x4d8] ss:$20 sps:$4 sm:$0xff]   ;;  %v10313_v11 = vld [vmem:[%s11870_s14 + $0x4e0] ss:$20 sps:$4 sm:$0xff]  }
 0x1c1   : > { %v10318_v12 = vld [vmem:[%s11870_s14 + $0x504] ss:$20 sps:$4 sm:$0xff]   ;;  %v10321_v14 = vld [vmem:[%s11870_s14 + $0x50c] ss:$20 sps:$4 sm:$0xff]  }
 0x1c3   : > { %1996 = vmatpush1.bf16.msra.mxu1 %v10238_v15  ;;  %2125 = vmatpush1.bf16.msra.mxu0 %v10241_v16  ;;  %v10316_v15 = vld [vmem:[%s11870_s14 + $0x500] ss:$20 sps:$4 sm:$0xff]   ;;  %v10319_v16 = vld [vmem:[%s11870_s14 + $0x508] ss:$20 sps:$4 sm:$0xff]  }
 0x1c4   : > { %1997 = vmatprep.subr.bf16.mxu1 %v10246_v17  ;;  %2126 = vmatprep.subr.bf16.mxu0 %v10249_v22  ;;  %v10324_v17 = vld [vmem:[%s11870_s14 + $0x52c] ss:$20 sps:$4 sm:$0xff]   ;;  %v10327_v22 = vld [vmem:[%s11870_s14 + $0x534] ss:$20 sps:$4 sm:$0xff]  }
 0x1c7   : > { %1998 = vmatpush1.bf16.msra.mxu1 %v10244_v23  ;;  %2127 = vmatpush1.bf16.msra.mxu0 %v10247_v24  ;;  %v10322_v23 = vld [vmem:[%s11870_s14 + $0x528] ss:$20 sps:$4 sm:$0xff]   ;;  %v10325_v24 = vld [vmem:[%s11870_s14 + $0x530] ss:$20 sps:$4 sm:$0xff]  }
 0x1c8   : > { %1999 = vmatprep.subr.bf16.mxu1 %v10252_v25  ;;  %2128 = vmatprep.subr.bf16.mxu0 %v10255_v26  ;;  %v10330_v25 = vld [vmem:[%s11870_s14 + $0x554] ss:$20 sps:$4 sm:$0xff]   ;;  %v10333_v26 = vld [vmem:[%s11870_s14 + $0x55c] ss:$20 sps:$4 sm:$0xff]  }
 0x1cb   : > { %2000 = vmatpush1.bf16.msra.mxu1 %v10250_v28  ;;  %2129 = vmatpush1.bf16.msra.mxu0 %v10253_v29  ;;  %v10328_v28 = vld [vmem:[%s11870_s14 + $0x550] ss:$20 sps:$4 sm:$0xff]   ;;  %v10331_v29 = vld [vmem:[%s11870_s14 + $0x558] ss:$20 sps:$4 sm:$0xff]  }
 0x1cc   : > { %2001 = vmatprep.subr.bf16.mxu1 %v10258_v30  ;;  %2130 = vmatprep.subr.bf16.mxu0 %v10261_v31  ;;  %v10336_v30 = vld [vmem:[%s11870_s14 + $0x57c] ss:$20 sps:$4 sm:$0xff]   ;;  %v10339_v31 = vld [vmem:[%s11870_s14 + $0x584] ss:$20 sps:$4 sm:$0xff]  }
 0x1cf   : > { %2002 = vmatpush1.bf16.msra.mxu1 %v10256_v32  ;;  %2131 = vmatpush1.bf16.msra.mxu0 %v10259_v33  ;;  %v10334_v32 = vld [vmem:[%s11870_s14 + $0x578] ss:$20 sps:$4 sm:$0xff]   ;;  %v10337_v33 = vld [vmem:[%s11870_s14 + $0x580] ss:$20 sps:$4 sm:$0xff]  }
 0x1d0   : > { %2003 = vmatprep.subr.bf16.mxu1 %v10264_v34  ;;  %2132 = vmatprep.subr.bf16.mxu0 %v10267_v35  ;;  %v10342_v34 = vld [vmem:[%s11870_s14 + $0x5a4] ss:$20 sps:$4 sm:$0xff]   ;;  %v10345_v35 = vld [vmem:[%s11870_s14 + $0x5ac] ss:$20 sps:$4 sm:$0xff]  }
 0x1d3   : > { %2004 = vmatpush1.bf16.msra.mxu1 %v10262_v36  ;;  %2133 = vmatpush1.bf16.msra.mxu0 %v10265_v37  ;;  %v10340_v36 = vld [vmem:[%s11870_s14 + $0x5a0] ss:$20 sps:$4 sm:$0xff]   ;;  %v10343_v37 = vld [vmem:[%s11870_s14 + $0x5a8] ss:$20 sps:$4 sm:$0xff]  }
 0x1d4   : > { %2005 = vmatprep.subr.bf16.mxu1 %v10270_v38  ;;  %2134 = vmatprep.subr.bf16.mxu0 %v10273_v39  ;;  %v10348_v38 = vld [vmem:[%s11870_s14 + $0x5cc] ss:$20 sps:$4 sm:$0xff]   ;;  %v10351_v39 = vld [vmem:[%s11870_s14 + $0x5d4] ss:$20 sps:$4 sm:$0xff]  }
 0x1d7   : > { %2006 = vmatpush1.bf16.msra.mxu1 %v10268_v40  ;;  %2135 = vmatpush1.bf16.msra.mxu0 %v10271_v41  ;;  %v10346_v40 = vld [vmem:[%s11870_s14 + $0x5c8] ss:$20 sps:$4 sm:$0xff]   ;;  %v10349_v41 = vld [vmem:[%s11870_s14 + $0x5d0] ss:$20 sps:$4 sm:$0xff]  }
 0x1d8   : > { %2007 = vmatprep.subr.bf16.mxu1 %v10276_v42  ;;  %2136 = vmatprep.subr.bf16.mxu0 %v10279_v43  ;;  %v10354_v42 = vld [vmem:[%s11870_s14 + $0x5f4] ss:$20 sps:$4 sm:$0xff]   ;;  %v10357_v43 = vld [vmem:[%s11870_s14 + $0x5fc] ss:$20 sps:$4 sm:$0xff]  }
 0x1db   : > { %2008 = vmatpush1.bf16.msra.mxu1 %v10274_v44  ;;  %2137 = vmatpush1.bf16.msra.mxu0 %v10277_v45  ;;  %v10352_v44 = vld [vmem:[%s11870_s14 + $0x5f0] ss:$20 sps:$4 sm:$0xff]   ;;  %v10355_v45 = vld [vmem:[%s11870_s14 + $0x5f8] ss:$20 sps:$4 sm:$0xff]  }
 0x1dc   : > { %2009 = vmatprep.subr.bf16.mxu1 %v10282_v46  ;;  %2138 = vmatprep.subr.bf16.mxu0 %v10285_v47  ;;  %v10360_v46 = vld [vmem:[%s11870_s14 + $0x61c] ss:$20 sps:$4 sm:$0xff]   ;;  %v10363_v47 = vld [vmem:[%s11870_s14 + $0x624] ss:$20 sps:$4 sm:$0xff]  }
 0x1df   : > { %2010 = vmatpush1.bf16.msra.mxu1 %v10280_v48  ;;  %2139 = vmatpush1.bf16.msra.mxu0 %v10283_v49  ;;  %v10358_v48 = vld [vmem:[%s11870_s14 + $0x618] ss:$20 sps:$4 sm:$0xff]   ;;  %v10361_v49 = vld [vmem:[%s11870_s14 + $0x620] ss:$20 sps:$4 sm:$0xff]  }
 0x1e0   : > { %2011 = vmatprep.subr.bf16.mxu1 %v10288_v50  ;;  %2140 = vmatprep.subr.bf16.mxu0 %v10291_v51  ;;  %v10364_v50 = vld [vmem:[%s11870_s14 + $0x150] ss:$20 sps:$4 sm:$0xff]  }
 0x1e1   : > { %v10365_v51 = vld [vmem:[%s11870_s14 + $0x3d0] ss:$20 sps:$4 sm:$0xff]  }
 0x1e3   : > { %2012 = vmatpush1.bf16.msra.mxu1 %v10286_v53  ;;  %2141 = vmatpush1.bf16.msra.mxu0 %v10289_v54  ;;  %v10366_v53 = vld [vmem:[%s11870_s14 + $0x10] ss:$20 sps:$4 sm:$0xff]  }
 0x1e4   : > { %2013 = vmatprep.subr.bf16.mxu1 %v10294_v55  ;;  %2142 = vmatprep.subr.bf16.mxu0 %v10297_v57  ;;  %v10367_v54 = vld [vmem:[%s11870_s14 + $0x290] ss:$20 sps:$4 sm:$0xff]   ;;  %v10368_v55 = vld [vmem:[%s11870_s14 + $0x178] ss:$20 sps:$4 sm:$0xff]  }
 0x1e5   : > { %v10369_v57 = vld [vmem:[%s11870_s14 + $0x3f8] ss:$20 sps:$4 sm:$0xff]  }
 0x1e7   : > { %2014 = vmatpush1.bf16.msra.mxu1 %v10292_v58  ;;  %2143 = vmatpush1.bf16.msra.mxu0 %v10295_v60  ;;  %v10370_v58 = vld [vmem:[%s11870_s14 + $0x38] ss:$20 sps:$4 sm:$0xff]  }
 0x1e8   : > { %2015 = vmatprep.subr.bf16.mxu1 %v10300_v61  ;;  %2144 = vmatprep.subr.bf16.mxu0 %v10303_v62  ;;  %v10371_v60 = vld [vmem:[%s11870_s14 + $0x2b8] ss:$20 sps:$4 sm:$0xff]   ;;  %v10372_v61 = vld [vmem:[%s11870_s14 + $0x1a0] ss:$20 sps:$4 sm:$0xff]  }
 0x1e9   : > { %v10373_v62 = vld [vmem:[%s11870_s14 + $0x420] ss:$20 sps:$4 sm:$0xff]  }
 0x1eb   : > { %2016 = vmatpush1.bf16.msra.mxu1 %v10298_v63  ;;  %2145 = vmatpush1.bf16.msra.mxu0 %v10301_v1  ;;  %v10374_v63 = vld [vmem:[%s11870_s14 + $0x60] ss:$20 sps:$4 sm:$0xff]   ;;  %v10376_v1 = vld [vmem:[%s11870_s14 + $0x1c8] ss:$20 sps:$4 sm:$0xff]  }
 0x1ec   : > { %2017 = vmatprep.subr.bf16.mxu1 %v10306_v2  ;;  %2146 = vmatprep.subr.bf16.mxu0 %v10309_v4  ;;  %v10377_v2 = vld [vmem:[%s11870_s14 + $0x448] ss:$20 sps:$4 sm:$0xff]  }
 0x1ed   : > { %v10379_v4 = vld [vmem:[%s11870_s14 + $0x308] ss:$20 sps:$4 sm:$0xff]  }
 0x1ef   : > { %2018 = vmatpush1.bf16.msra.mxu1 %v10304_v5  ;;  %2147 = vmatpush1.bf16.msra.mxu0 %v10307_v6  ;;  %v10380_v5 = vld [vmem:[%s11870_s14 + $0x1f0] ss:$20 sps:$4 sm:$0xff]  }
 0x1f0   : > { %2019 = vmatprep.subr.bf16.mxu1 %v10312_v7  ;;  %2148 = vmatprep.subr.bf16.mxu0 %v10315_v8  ;;  %v10381_v6 = vld [vmem:[%s11870_s14 + $0x470] ss:$20 sps:$4 sm:$0xff]  }
 0x1f1   : > { %v10382_v7 = vld [vmem:[%s11870_s14 + $0xb0] ss:$20 sps:$4 sm:$0xff]  }
 0x1f2   : > { %v10383_v8 = vld [vmem:[%s11870_s14 + $0x330] ss:$20 sps:$4 sm:$0xff]  }
 0x1f3   : > { %2020 = vmatpush1.bf16.msra.mxu1 %v10310_v10  ;;  %2149 = vmatpush1.bf16.msra.mxu0 %v10313_v11  ;;  %v10384_v10 = vld [vmem:[%s11870_s14 + $0x218] ss:$20 sps:$4 sm:$0xff]  }
 0x1f4   : > { %2032 = vmatprep.subr.bf16.mxu1 %v10318_v12  ;;  %2161 = vmatprep.subr.bf16.mxu0 %v10321_v14  ;;  %v10385_v11 = vld [vmem:[%s11870_s14 + $0x498] ss:$20 sps:$4 sm:$0xff]  }
 0x1f5   : > { %v10386_v12 = vld [vmem:[%s11870_s14 + $0xd8] ss:$20 sps:$4 sm:$0xff]  }
 0x1f6   : > { %2022 = vmatmul.mubr.bf16.vlgmr.msra.gmra.mrb[4].mxu1 %v11983_v59  ;;  %2151 = vmatmul.mubr.bf16.vlgmr.msra.gmra.mrb[8].mxu0 %v11983_v59  ;;  %v10387_v14 = vld [vmem:[%s11870_s14 + $0x358] ss:$20 sps:$4 sm:$0xff]  }
 0x1f7   : > { %2033 = vmatpush1.bf16.msra.mxu1 %v10316_v15  ;;  %2162 = vmatpush1.bf16.msra.mxu0 %v10319_v16  ;;  %v10388_v15 = vld [vmem:[%s11870_s14 + $0x240] ss:$20 sps:$4 sm:$0xff]  }
 0x1f8   : > { %2034 = vmatprep.subr.bf16.mxu1 %v10324_v17  ;;  %2163 = vmatprep.subr.bf16.mxu0 %v10327_v22  ;;  %v10389_v16 = vld [vmem:[%s11870_s14 + $0x4c0] ss:$20 sps:$4 sm:$0xff]  }
 0x1f9   : > { %2064 = vmatprep.mubr.bf16.mxu1 %v11549_v3  ;;  %2193 = vmatprep.mubr.bf16.mxu0 %v11549_v3  ;;  %v10390_v17 = vld [vmem:[%s11870_s14 + $0x100] ss:$20 sps:$4 sm:$0xff]  }
 0x1fa   : > { %v10391_v22 = vld [vmem:[%s11870_s14 + $0x380] ss:$20 sps:$4 sm:$0xff]  }
 0x1fb   : > { %2035 = vmatpush1.bf16.msra.mxu1 %v10322_v23  ;;  %2164 = vmatpush1.bf16.msra.mxu0 %v10325_v24  ;;  %v10392_v23 = vld [vmem:[%s11870_s14 + $0x268] ss:$20 sps:$4 sm:$0xff]  }
 0x1fc   : > { %2036 = vmatprep.subr.bf16.mxu1 %v10330_v25  ;;  %2165 = vmatprep.subr.bf16.mxu0 %v10333_v26  ;;  %v10393_v24 = vld [vmem:[%s11870_s14 + $0x4e8] ss:$20 sps:$4 sm:$0xff]  }
 0x1fd   : > { %v10394_v25 = vld [vmem:[%s11870_s14 + $0x128] ss:$20 sps:$4 sm:$0xff]  }
 0x1fe   : > { %v10395_v26 = vld [vmem:[%s11870_s14 + $0x3a8] ss:$20 sps:$4 sm:$0xff]  }
 0x1ff   : > { %2037 = vmatpush1.bf16.msra.mxu1 %v10328_v28  ;;  %2166 = vmatpush1.bf16.msra.mxu0 %v10331_v29  ;;  %v10406_v28 = vld [vmem:[%s11870_s14 + $0x644] ss:$20 sps:$4 sm:$0xff]  }
 0x200   : > { %2038 = vmatprep.subr.bf16.mxu1 %v10336_v30  ;;  %2167 = vmatprep.subr.bf16.mxu0 %v10339_v31  ;;  %v10396_v29 = vld [vmem:[%s11870_s14 + $0x510] ss:$20 sps:$4 sm:$0xff]   ;;  %v10404_v30 = vld [vmem:[%s11870_s14 + $0x640] ss:$20 sps:$4 sm:$0xff]  }
 0x201   : > { %v10412_v31 = vld [vmem:[%s11870_s14 + $0x66c] ss:$20 sps:$4 sm:$0xff]  }
 0x203   : > { %2039 = vmatpush1.bf16.msra.mxu1 %v10334_v32  ;;  %2168 = vmatpush1.bf16.msra.mxu0 %v10337_v33  ;;  %v10397_v32 = vld [vmem:[%s11870_s14 + $0x538] ss:$20 sps:$4 sm:$0xff]   ;;  %v10410_v33 = vld [vmem:[%s11870_s14 + $0x668] ss:$20 sps:$4 sm:$0xff]  }
 0x204   : > { %2040 = vmatprep.subr.bf16.mxu1 %v10342_v34  ;;  %2169 = vmatprep.subr.bf16.mxu0 %v10345_v35  ;;  %v10418_v34 = vld [vmem:[%s11870_s14 + $0x694] ss:$20 sps:$4 sm:$0xff]   ;;  %v10424_v35 = vld [vmem:[%s11870_s14 + $0x6bc] ss:$20 sps:$4 sm:$0xff]  }
 0x207   : > { %2041 = vmatpush1.bf16.msra.mxu1 %v10340_v36  ;;  %2170 = vmatpush1.bf16.msra.mxu0 %v10343_v37  ;;  %v10399_v36 = vld [vmem:[%s11870_s14 + $0x588] ss:$20 sps:$4 sm:$0xff]   ;;  %v10422_v37 = vld [vmem:[%s11870_s14 + $0x6b8] ss:$20 sps:$4 sm:$0xff]  }
 0x208   : > { %2042 = vmatprep.subr.bf16.mxu1 %v10348_v38  ;;  %2171 = vmatprep.subr.bf16.mxu0 %v10351_v39  ;;  %v10430_v38 = vld [vmem:[%s11870_s14 + $0x6e4] ss:$20 sps:$4 sm:$0xff]  }
 0x209   : > { %v10400_v39 = vld [vmem:[%s11870_s14 + $0x5b0] ss:$20 sps:$4 sm:$0xff]  }
 0x20b   : > { %2043 = vmatpush1.bf16.msra.mxu1 %v10346_v40  ;;  %2172 = vmatpush1.bf16.msra.mxu0 %v10349_v41  ;;  %v10428_v40 = vld [vmem:[%s11870_s14 + $0x6e0] ss:$20 sps:$4 sm:$0xff]  }
 0x20c   : > { %2044 = vmatprep.subr.bf16.mxu1 %v10354_v42  ;;  %2173 = vmatprep.subr.bf16.mxu0 %v10357_v43  ;;  %v10436_v41 = vld [vmem:[%s11870_s14 + $0x70c] ss:$20 sps:$4 sm:$0xff]   ;;  %v10434_v43 = vld [vmem:[%s11870_s14 + $0x708] ss:$20 sps:$4 sm:$0xff]  }
 0x20d   : > { %v10401_v42 = vld [vmem:[%s11870_s14 + $0x5d8] ss:$20 sps:$4 sm:$0xff]  }
 0x20f   : > { %2045 = vmatpush1.bf16.msra.mxu1 %v10352_v44  ;;  %2174 = vmatpush1.bf16.msra.mxu0 %v10355_v45  ;;  %v10442_v44 = vld [vmem:[%s11870_s14 + $0x734] ss:$20 sps:$4 sm:$0xff]  }
 0x210   : > { %2046 = vmatprep.subr.bf16.mxu1 %v10360_v46  ;;  %2175 = vmatprep.subr.bf16.mxu0 %v10363_v47  ;;  %v10402_v45 = vld [vmem:[%s11870_s14 + $0x600] ss:$20 sps:$4 sm:$0xff]   ;;  %v10440_v46 = vld [vmem:[%s11870_s14 + $0x730] ss:$20 sps:$4 sm:$0xff]  }
 0x211   : > { %v10448_v47 = vld [vmem:[%s11870_s14 + $0x75c] ss:$20 sps:$4 sm:$0xff]  }
 0x213   : > { %2047 = vmatpush1.bf16.msra.mxu1 %v10358_v48  ;;  %2176 = vmatpush1.bf16.msra.mxu0 %v10361_v49  ;;  %v10403_v48 = vld [vmem:[%s11870_s14 + $0x628] ss:$20 sps:$4 sm:$0xff]   ;;  %v10409_v49 = vld [vmem:[%s11870_s14 + $0x64c] ss:$20 sps:$4 sm:$0xff]  }
 0x214   : > { %9532 = vmatprep.subr.bf16.mxu1 %v10364_v50  ;;  %9554 = vmatprep.subr.bf16.mxu0 %v10365_v51  ;;  %v10446_v50 = vld [vmem:[%s11870_s14 + $0x758] ss:$20 sps:$4 sm:$0xff]  }
 0x215   : > { %v10454_v51 = vld [vmem:[%s11870_s14 + $0x784] ss:$20 sps:$4 sm:$0xff]  }
 0x216   : > { %2065 = vmatmul.mubr.bf16.vlgmr.msra.gmra.mrb[4].mxu1 %v12000_v13  ;;  %2194 = vmatmul.mubr.bf16.vlgmr.msra.gmra.mrb[8].mxu0 %v12000_v13 }
 0x217   : > { %9533 = vmatpush3.bf16.msra.mxu1 %v10366_v53  ;;  %2236 = vmatprep.mubr.bf16.mxu1 %v11981_v56  ;;  %v10375_v56 = vld [vmem:[%s11870_s14 + $0x2e0] ss:$20 sps:$4 sm:$0xff]   ;;  %v10407_v53 = vld [vmem:[%s11870_s14 + $0x648] ss:$20 sps:$4 sm:$0xff]  }
 0x218   : > { %9555 = vmatpush3.bf16.msra.mxu0 %v10367_v54  ;;  %2277 = vmatprep.mubr.bf16.mxu0 %v11989_v0  ;;  %v10378_v0 = vld [vmem:[%s11870_s14 + $0x88] ss:$20 sps:$4 sm:$0xff]  }
 0x219   : > { %9534 = vmatprep.subr.bf16.mxu1 %v10368_v55  ;;  %9556 = vmatprep.subr.bf16.mxu0 %v10369_v57  ;;  %v10415_v54 = vld [vmem:[%s11870_s14 + $0x674] ss:$20 sps:$4 sm:$0xff]   ;;  %v10460_v57 = vld [vmem:[%s11870_s14 + $0x7ac] ss:$20 sps:$4 sm:$0xff]  }
 0x21a   : > { %v10452_v55 = vld [vmem:[%s11870_s14 + $0x780] ss:$20 sps:$4 sm:$0xff]  }
 0x21b   : > { %9535 = vmatpush3.bf16.msra.mxu1 %v10370_v58  ;;  %v10413_v58 = vld [vmem:[%s11870_s14 + $0x670] ss:$20 sps:$4 sm:$0xff]  }
 0x21c   : > { %9557 = vmatpush3.bf16.msra.mxu0 %v10371_v60  ;;  %9536 = vmatprep.subr.bf16.mxu1 %v10372_v61  ;;  %v10421_v60 = vld [vmem:[%s11870_s14 + $0x69c] ss:$20 sps:$4 sm:$0xff]  }
 0x21d   : > { %9558 = vmatprep.subr.bf16.mxu0 %v10373_v62  ;;  %v10458_v61 = vld [vmem:[%s11870_s14 + $0x7a8] ss:$20 sps:$4 sm:$0xff]  }
 0x21e   : > { %v10466_v62 = vld [vmem:[%s11870_s14 + $0x7d4] ss:$20 sps:$4 sm:$0xff]  }
 0x21f   : > { %9537 = vmatpush3.bf16.msra.mxu1 %v10374_v63  ;;  %v10419_v63 = vld [vmem:[%s11870_s14 + $0x698] ss:$20 sps:$4 sm:$0xff]  }
 0x220   : > { %9559 = vmatpush3.bf16.msra.mxu0 %v10375_v56  ;;  %9538 = vmatprep.subr.bf16.mxu1 %v10376_v1  ;;  %v10464_v56 = vld [vmem:[%s11870_s14 + $0x7d0] ss:$20 sps:$4 sm:$0xff]  }
 0x221   : > { %9560 = vmatprep.subr.bf16.mxu0 %v10377_v2  ;;  %v10472_v1 = vld [vmem:[%s11870_s14 + $0x7fc] ss:$20 sps:$4 sm:$0xff]   ;;  %v10425_v2 = vld [vmem:[%s11870_s14 + $0x6c0] ss:$20 sps:$4 sm:$0xff]  }
 0x223   : > { %9539 = vmatpush3.bf16.msra.mxu1 %v10378_v0  ;;  %v10433_v0 = vld [vmem:[%s11870_s14 + $0x6ec] ss:$20 sps:$4 sm:$0xff]  }
 0x224   : > { %9561 = vmatpush3.bf16.msra.mxu0 %v10379_v4  ;;  %9540 = vmatprep.subr.bf16.mxu1 %v10380_v5  ;;  %v10470_v4 = vld [vmem:[%s11870_s14 + $0x7f8] ss:$20 sps:$4 sm:$0xff]  }
 0x225   : > { %9562 = vmatprep.subr.bf16.mxu0 %v10381_v6  ;;  %v10478_v5 = vld [vmem:[%s11870_s14 + $0x824] ss:$20 sps:$4 sm:$0xff]   ;;  %v10431_v6 = vld [vmem:[%s11870_s14 + $0x6e8] ss:$20 sps:$4 sm:$0xff]  }
 0x227   : > { %9541 = vmatpush3.bf16.msra.mxu1 %v10382_v7  ;;  %v10439_v7 = vld [vmem:[%s11870_s14 + $0x714] ss:$20 sps:$4 sm:$0xff]  }
 0x228   : > { %9563 = vmatpush3.bf16.msra.mxu0 %v10383_v8  ;;  %9542 = vmatprep.subr.bf16.mxu1 %v10384_v10  ;;  %v10476_v8 = vld [vmem:[%s11870_s14 + $0x820] ss:$20 sps:$4 sm:$0xff]  }
 0x229   : > { %9564 = vmatprep.subr.bf16.mxu0 %v10385_v11  ;;  %v10484_v10 = vld [vmem:[%s11870_s14 + $0x84c] ss:$20 sps:$4 sm:$0xff]   ;;  %v10437_v11 = vld [vmem:[%s11870_s14 + $0x710] ss:$20 sps:$4 sm:$0xff]  }
 0x22b   : > { %9543 = vmatpush3.bf16.msra.mxu1 %v10386_v12  ;;  %v10445_v12 = vld [vmem:[%s11870_s14 + $0x73c] ss:$20 sps:$4 sm:$0xff]  }
 0x22c   : > { %9565 = vmatpush3.bf16.msra.mxu0 %v10387_v14  ;;  %9544 = vmatprep.subr.bf16.mxu1 %v10388_v15  ;;  %v10482_v14 = vld [vmem:[%s11870_s14 + $0x848] ss:$20 sps:$4 sm:$0xff]  }
 0x22d   : > { %9566 = vmatprep.subr.bf16.mxu0 %v10389_v16  ;;  %v10490_v15 = vld [vmem:[%s11870_s14 + $0x874] ss:$20 sps:$4 sm:$0xff]   ;;  %v10443_v16 = vld [vmem:[%s11870_s14 + $0x738] ss:$20 sps:$4 sm:$0xff]  }
 0x22f   : > { %9545 = vmatpush3.bf16.msra.mxu1 %v10390_v17  ;;  %v10451_v17 = vld [vmem:[%s11870_s14 + $0x764] ss:$20 sps:$4 sm:$0xff]  }
 0x230   : > { %9567 = vmatpush3.bf16.msra.mxu0 %v10391_v22  ;;  %9546 = vmatprep.subr.bf16.mxu1 %v10392_v23  ;;  %v10488_v22 = vld [vmem:[%s11870_s14 + $0x870] ss:$20 sps:$4 sm:$0xff]  }
 0x231   : > { %9568 = vmatprep.subr.bf16.mxu0 %v10393_v24  ;;  %v10496_v23 = vld [vmem:[%s11870_s14 + $0x89c] ss:$20 sps:$4 sm:$0xff]   ;;  %v10449_v24 = vld [vmem:[%s11870_s14 + $0x760] ss:$20 sps:$4 sm:$0xff]  }
 0x233   : > { %9547 = vmatpush3.bf16.msra.mxu1 %v10394_v25  ;;  %v10457_v25 = vld [vmem:[%s11870_s14 + $0x78c] ss:$20 sps:$4 sm:$0xff]  }
 0x234   : > { %9569 = vmatpush3.bf16.msra.mxu0 %v10395_v26  ;;  %9803 = vmatprep.subr.bf16.mxu1 %v11550_v9  ;;  %v10494_v26 = vld [vmem:[%s11870_s14 + $0x898] ss:$20 sps:$4 sm:$0xff]  }
 0x235   : > { %3653 = vmatprep.subr.bf16.mxu0 %v10406_v28  ;;  %v10502_v28 = vld [vmem:[%s11870_s14 + $0x8c4] ss:$20 sps:$4 sm:$0xff]  }
 0x236   : > { %2237 = vmatmul.mubr.bf16.vlgmr.msra.gmra.mrb[8].mxu1 %v11977_v52  ;;  %v10398_v52 = vld [vmem:[%s11870_s14 + $0x560] ss:$20 sps:$4 sm:$0xff]  }
 0x237   : > { %2278 = vmatmul.mubr.bf16.vlgmr.msra.gmra.mrb[12].mxu0 %v11983_v59  ;;  %9804 = vmatpush3.bf16.msra.mxu1 %v10396_v29  ;;  %v10416_v59 = vld [vmem:[%s11870_s14 + $0x690] ss:$20 sps:$4 sm:$0xff]   ;;  %v10455_v29 = vld [vmem:[%s11870_s14 + $0x788] ss:$20 sps:$4 sm:$0xff]  }
 0x238   : > { %9805 = vmatprep.subr.bf16.mxu1 %v11550_v9  ;;  %9819 = vmatprep.mubr.msk.bf16.mxu1 %vm11551_vm1, %v11550_v9 }
 0x239   : > { %3654 = vmatpush1.bf16.msra.mxu0 %v10404_v30  ;;  %v10463_v30 = vld [vmem:[%s11870_s14 + $0x7b4] ss:$20 sps:$4 sm:$0xff]  }
 0x23a   : > { %3655 = vmatprep.subr.bf16.mxu0 %v10412_v31  ;;  %v10461_v31 = vld [vmem:[%s11870_s14 + $0x7b0] ss:$20 sps:$4 sm:$0xff]  }
 0x23b   : > { %9806 = vmatpush3.bf16.msra.mxu1 %v10397_v32  ;;  %v10469_v32 = vld [vmem:[%s11870_s14 + $0x7dc] ss:$20 sps:$4 sm:$0xff]  }
 0x23c   : > { %9807 = vmatprep.subr.bf16.mxu1 %v11550_v9 }
 0x23d   : > { %3656 = vmatpush1.bf16.msra.mxu0 %v10410_v33  ;;  %v10467_v33 = vld [vmem:[%s11870_s14 + $0x7d8] ss:$20 sps:$4 sm:$0xff]  }
 0x23e   : > { %3657 = vmatprep.subr.bf16.mxu0 %v10418_v34  ;;  %v10475_v34 = vld [vmem:[%s11870_s14 + $0x804] ss:$20 sps:$4 sm:$0xff]  }
 0x23f   : > { %9808 = vmatpush3.bf16.msra.mxu1 %v10398_v52  ;;  %v10473_v52 = vld [vmem:[%s11870_s14 + $0x800] ss:$20 sps:$4 sm:$0xff]  }
 0x240   : > { %9809 = vmatprep.subr.bf16.mxu1 %v11550_v9 }
 0x241   : > { %3658 = vmatpush1.bf16.msra.mxu0 %v10416_v59  ;;  %v10481_v59 = vld [vmem:[%s11870_s14 + $0x82c] ss:$20 sps:$4 sm:$0xff]  }
 0x242   : > { %3659 = vmatprep.subr.bf16.mxu0 %v10424_v35  ;;  %v10479_v35 = vld [vmem:[%s11870_s14 + $0x828] ss:$20 sps:$4 sm:$0xff]  }
 0x243   : > { %9810 = vmatpush3.bf16.msra.mxu1 %v10399_v36  ;;  %v10487_v36 = vld [vmem:[%s11870_s14 + $0x854] ss:$20 sps:$4 sm:$0xff]  }
 0x244   : > { %9811 = vmatprep.subr.bf16.mxu1 %v11550_v9 }
 0x245   : > { %3660 = vmatpush1.bf16.msra.mxu0 %v10422_v37  ;;  %v10485_v37 = vld [vmem:[%s11870_s14 + $0x850] ss:$20 sps:$4 sm:$0xff]  }
 0x246   : > { %3661 = vmatprep.subr.bf16.mxu0 %v10430_v38  ;;  %v10493_v38 = vld [vmem:[%s11870_s14 + $0x87c] ss:$20 sps:$4 sm:$0xff]  }
 0x247   : > { %9812 = vmatpush3.bf16.msra.mxu1 %v10400_v39  ;;  %v10491_v39 = vld [vmem:[%s11870_s14 + $0x878] ss:$20 sps:$4 sm:$0xff]  }
 0x248   : > { %9813 = vmatprep.subr.bf16.mxu1 %v11550_v9 }
 0x249   : > { %3662 = vmatpush1.bf16.msra.mxu0 %v10428_v40  ;;  %v10499_v40 = vld [vmem:[%s11870_s14 + $0x8a4] ss:$20 sps:$4 sm:$0xff]  }
 0x24a   : > { %3663 = vmatprep.subr.bf16.mxu0 %v10436_v41  ;;  %v10497_v41 = vld [vmem:[%s11870_s14 + $0x8a0] ss:$20 sps:$4 sm:$0xff]  }
 0x24b   : > { %9814 = vmatpush3.bf16.msra.mxu1 %v10401_v42  ;;  %v10505_v42 = vld [vmem:[%s11870_s14 + $0x8cc] ss:$20 sps:$4 sm:$0xff]  }
 0x24c   : > { %9815 = vmatprep.subr.bf16.mxu1 %v11550_v9 }
 0x24d   : > { %3664 = vmatpush1.bf16.msra.mxu0 %v10434_v43  ;;  %v12216_v43 = vld [vmem:[%s12213_s21] sm:$0x1f] }
 0x24e   : > { %3665 = vmatprep.subr.bf16.mxu0 %v10442_v44  ;;  %v884_v44 = vrot.slane %v12216_v43, %v11960_v18 }
 0x24f   : > { %9816 = vmatpush3.bf16.msra.mxu1 %v10402_v45  ;;  %v892_v45 = vrot.slane %v12216_v43, %v11964_v20 }
 0x250   : > { %9817 = vmatprep.subr.bf16.mxu1 %v11550_v9 }
 0x251   : > { %3666 = vmatpush1.bf16.msra.mxu0 %v10440_v46  ;;  %v888_v46 = vrot.slane %v12216_v43, %v11962_v19 }
 0x252   : > { %3667 = vmatprep.subr.bf16.mxu0 %v10448_v47  ;;  %v896_v47 = vrot.slane %v12216_v43, %v11966_v21 }
 0x253   : > { %9818 = vmatpush3.bf16.msra.mxu1 %v10403_v48 }
 0x254   : > { %3782 = vmatprep.subr.bf16.mxu1 %v10409_v49 }
 0x255   : > { %3668 = vmatpush1.bf16.msra.mxu0 %v10446_v50 }
 0x256   : > { %9820 = vmatmul.mubr.bf16.vlgmr.msra.gmra.mrb[12].mxu1 %v12000_v13  ;;  %3669 = vmatprep.subr.bf16.mxu0 %v10454_v51  ;;  %v10427_v13 = vld [vmem:[%s11870_s14 + $0x6c4] ss:$20 sps:$4 sm:$0xff]  }
 0x257   : > { %3783 = vmatpush1.bf16.msra.mxu1 %v10407_v53 }
 0x258   : > { %3784 = vmatprep.subr.bf16.mxu1 %v10415_v54 }
 0x259   : > { %3670 = vmatpush1.bf16.msra.mxu0 %v10452_v55 }
 0x25a   : > { %3671 = vmatprep.subr.bf16.mxu0 %v10460_v57 }
 0x25b   : > { %3785 = vmatpush1.bf16.msra.mxu1 %v10413_v58 }
 0x25c   : > { %3786 = vmatprep.subr.bf16.mxu1 %v10421_v60 }
 0x25d   : > { %3672 = vmatpush1.bf16.msra.mxu0 %v10458_v61 }
 0x25e   : > { %3673 = vmatprep.subr.bf16.mxu0 %v10466_v62 }
 0x25f   : > { %3787 = vmatpush1.bf16.msra.mxu1 %v10419_v63 }
 0x260   : > { %3788 = vmatprep.subr.bf16.mxu1 %v10427_v13 }
 0x261   : > { %3674 = vmatpush1.bf16.msra.mxu0 %v10464_v56 }
 0x262   : > { %3675 = vmatprep.subr.bf16.mxu0 %v10472_v1 }
 0x263   : > { %3789 = vmatpush1.bf16.msra.mxu1 %v10425_v2 }
 0x264   : > { %3790 = vmatprep.subr.bf16.mxu1 %v10433_v0 }
 0x265   : > { %3676 = vmatpush1.bf16.msra.mxu0 %v10470_v4 }
 0x266   : > { %3677 = vmatprep.subr.bf16.mxu0 %v10478_v5 }
 0x267   : > { %3791 = vmatpush1.bf16.msra.mxu1 %v10431_v6 }
 0x268   : > { %3792 = vmatprep.subr.bf16.mxu1 %v10439_v7 }
 0x269   : > { %3678 = vmatpush1.bf16.msra.mxu0 %v10476_v8 }
 0x26a   : > { %3679 = vmatprep.subr.bf16.mxu0 %v10484_v10 }
 0x26b   : > { %3793 = vmatpush1.bf16.msra.mxu1 %v10437_v11 }
 0x26c   : > { %3794 = vmatprep.subr.bf16.mxu1 %v10445_v12 }
 0x26d   : > { %3680 = vmatpush1.bf16.msra.mxu0 %v10482_v14 }
 0x26e   : > { %3681 = vmatprep.subr.bf16.mxu0 %v10490_v15 }
 0x26f   : > { %3795 = vmatpush1.bf16.msra.mxu1 %v10443_v16  ;;  %v10500_v16 = vld [vmem:[%s11870_s14 + $0x8c0] ss:$20 sps:$4 sm:$0xff]  }
 0x270   : > { %3796 = vmatprep.subr.bf16.mxu1 %v10451_v17  ;;  %v10503_v17 = vld [vmem:[%s11870_s14 + $0x8c8] ss:$20 sps:$4 sm:$0xff]  }
 0x271   : > { %3682 = vmatpush1.bf16.msra.mxu0 %v10488_v22  ;;  %v10508_v22 = vld [vmem:[%s11870_s14 + $0x8ec] ss:$20 sps:$4 sm:$0xff]  }
 0x272   : > { %3683 = vmatprep.subr.bf16.mxu0 %v10496_v23  ;;  %v10511_v23 = vld [vmem:[%s11870_s14 + $0x8f4] ss:$20 sps:$4 sm:$0xff]  }
 0x273   : > { %3797 = vmatpush1.bf16.msra.mxu1 %v10449_v24  ;;  %v10506_v24 = vld [vmem:[%s11870_s14 + $0x8e8] ss:$20 sps:$4 sm:$0xff]  }
 0x274   : > { %3798 = vmatprep.subr.bf16.mxu1 %v10457_v25  ;;  %v10509_v25 = vld [vmem:[%s11870_s14 + $0x8f0] ss:$20 sps:$4 sm:$0xff]  }
 0x275   : > { %3684 = vmatpush1.bf16.msra.mxu0 %v10494_v26  ;;  %v10514_v26 = vld [vmem:[%s11870_s14 + $0x914] ss:$20 sps:$4 sm:$0xff]  }
 0x276   : > { %3696 = vmatprep.subr.bf16.mxu0 %v10502_v28  ;;  %v10517_v28 = vld [vmem:[%s11870_s14 + $0x91c] ss:$20 sps:$4 sm:$0xff]  }
 0x277   : > { %3799 = vmatpush1.bf16.msra.mxu1 %v10455_v29  ;;  %v10512_v29 = vld [vmem:[%s11870_s14 + $0x910] ss:$20 sps:$4 sm:$0xff]  }
 0x278   : > { %3800 = vmatprep.subr.bf16.mxu1 %v10463_v30  ;;  %v10515_v30 = vld [vmem:[%s11870_s14 + $0x918] ss:$20 sps:$4 sm:$0xff]  }
 0x27b   : > { %3801 = vmatpush1.bf16.msra.mxu1 %v10461_v31  ;;  %v10520_v31 = vld [vmem:[%s11870_s14 + $0x93c] ss:$20 sps:$4 sm:$0xff]  }
 0x27c   : > { %3802 = vmatprep.subr.bf16.mxu1 %v10469_v32  ;;  %v10523_v32 = vld [vmem:[%s11870_s14 + $0x944] ss:$20 sps:$4 sm:$0xff]  }
 0x27f   : > { %3803 = vmatpush1.bf16.msra.mxu1 %v10467_v33  ;;  %v10518_v33 = vld [vmem:[%s11870_s14 + $0x938] ss:$20 sps:$4 sm:$0xff]  }
 0x280   : > { %3804 = vmatprep.subr.bf16.mxu1 %v10475_v34  ;;  %v10521_v34 = vld [vmem:[%s11870_s14 + $0x940] ss:$20 sps:$4 sm:$0xff]  }
 0x283   : > { %3805 = vmatpush1.bf16.msra.mxu1 %v10473_v52  ;;  %v10526_v52 = vld [vmem:[%s11870_s14 + $0x964] ss:$20 sps:$4 sm:$0xff]  }
 0x284   : > { %3806 = vmatprep.subr.bf16.mxu1 %v10481_v59  ;;  %v10529_v59 = vld [vmem:[%s11870_s14 + $0x96c] ss:$20 sps:$4 sm:$0xff]  }
 0x287   : > { %3807 = vmatpush1.bf16.msra.mxu1 %v10479_v35  ;;  %v10524_v35 = vld [vmem:[%s11870_s14 + $0x960] ss:$20 sps:$4 sm:$0xff]  }
 0x288   : > { %3808 = vmatprep.subr.bf16.mxu1 %v10487_v36  ;;  %v10527_v36 = vld [vmem:[%s11870_s14 + $0x968] ss:$20 sps:$4 sm:$0xff]  }
 0x28b   : > { %3809 = vmatpush1.bf16.msra.mxu1 %v10485_v37  ;;  %v10532_v37 = vld [vmem:[%s11870_s14 + $0x98c] ss:$20 sps:$4 sm:$0xff]  }
 0x28c   : > { %3810 = vmatprep.subr.bf16.mxu1 %v10493_v38  ;;  %v10535_v38 = vld [vmem:[%s11870_s14 + $0x994] ss:$20 sps:$4 sm:$0xff]  }
 0x28f   : > { %3811 = vmatpush1.bf16.msra.mxu1 %v10491_v39  ;;  %v10530_v39 = vld [vmem:[%s11870_s14 + $0x988] ss:$20 sps:$4 sm:$0xff]  }
 0x290   : > { %3812 = vmatprep.subr.bf16.mxu1 %v10499_v40  ;;  %v10533_v40 = vld [vmem:[%s11870_s14 + $0x990] ss:$20 sps:$4 sm:$0xff]  }
 0x293   : > { %3813 = vmatpush1.bf16.msra.mxu1 %v10497_v41  ;;  %v10538_v41 = vld [vmem:[%s11870_s14 + $0x9b4] ss:$20 sps:$4 sm:$0xff]  }
 0x294   : > { %3825 = vmatprep.subr.bf16.mxu1 %v10505_v42  ;;  %v10541_v42 = vld [vmem:[%s11870_s14 + $0x9bc] ss:$20 sps:$4 sm:$0xff]  }
 0x2e9   : > { %v2066_v48 = vpop.f32.mrb[4].mxu1  ;;  %v2195_v49 = vpop.f32.mrb[8].mxu0 }
 0x2ea   : > { %v9903_v50 = vadd.f32 %v2066_v48, %v884_v44  ;;  %v9907_v51 = vadd.f32 %v2195_v49, %v892_v45  ;;  %v2068_v53 = vpop.f32.mrb[5].mxu1  ;;  %v2197_v54 = vpop.f32.mrb[9].mxu0 }
 0x2eb   : > { %v9904_v55 = vadd.f32 %v2068_v53, %v888_v46  ;;  %v9908_v57 = vadd.f32 %v2197_v54, %v896_v47  ;;  %v2070_v58 = vpop.f32.mrb[6].mxu1  ;;  %v2199_v60 = vpop.f32.mrb[10].mxu0 }
 0x2ec   : > { %v9905_v61 = vadd.f32 %v2070_v58, %v884_v44  ;;  %v9909_v62 = vadd.f32 %v2199_v60, %v892_v45  ;;  %v2072_v63 = vpop.f32.mrb[7].mxu1  ;;  %v2201_v13 = vpop.f32.mrb[11].mxu0  ;;  %v2327_v2 = vmax.f32 %v9903_v50, 0.0  ;;  %v2329_v0 = vmax.f32 %v9907_v51, 0.0  ;;  %v10544_v50 = vld [vmem:[%s11870_s14 + $0x9dc] ss:$20 sps:$4 sm:$0xff]  }
 0x2ed   : > { %v9906_v56 = vadd.f32 %v2072_v63, %v888_v46  ;;  %v9910_v1 = vadd.f32 %v2201_v13, %v896_v47  ;;  %v2328_v6 = vmax.f32 %v9904_v55, 0.0  ;;  %v2330_v7 = vmax.f32 %v9908_v57, 0.0  ;;  %v10536_v46 = vld [vmem:[%s11870_s14 + $0x9b0] ss:$20 sps:$4 sm:$0xff]   ;;  %v10539_v47 = vld [vmem:[%s11870_s14 + $0x9b8] ss:$20 sps:$4 sm:$0xff]  }
 0x2ee   : > { %v2332_v4 = vmax.f32 %v9905_v61, 0.0  ;;  %v2334_v5 = vmax.f32 %v9909_v62, 0.0  ;;  %v900_v45 = vrot.slane %v12216_v43, %v11972_v27  ;;  %v10547_v51 = vld [vmem:[%s11870_s14 + $0x9e4] ss:$20 sps:$4 sm:$0xff]   ;;  %v10545_v13 = vld [vmem:[%s11870_s14 + $0x9e0] ss:$20 sps:$4 sm:$0xff]  }
 0x2ef   : > { %v2333_v8 = vmax.f32 %v9906_v56, 0.0  ;;  %v2335_v10 = vmax.f32 %v9910_v1, 0.0  ;;  %v10542_v63 = vld [vmem:[%s11870_s14 + $0x9d8] ss:$20 sps:$4 sm:$0xff]  }
 0x2f0   : > { %v12226_v11 = vpack.c.bf16 %v2332_v4, %v2327_v2  ;;  %v12228_v12 = vpack.c.bf16 %v2334_v5, %v2329_v0  ;;  %v10550_v1 = vld [vmem:[%s11870_s14 + $0xa04] ss:$20 sps:$4 sm:$0xff]   ;;  %v10553_v2 = vld [vmem:[%s11870_s14 + $0xa0c] ss:$20 sps:$4 sm:$0xff]  }
 0x2f1   : > { %v12230_v14 = vpack.c.bf16 %v2333_v8, %v2328_v6  ;;  %v12232_v15 = vpack.c.bf16 %v2335_v10, %v2330_v7  ;;  %v10548_v5 = vld [vmem:[%s11870_s14 + $0xa00] ss:$20 sps:$4 sm:$0xff]   ;;  %v10551_v6 = vld [vmem:[%s11870_s14 + $0xa08] ss:$20 sps:$4 sm:$0xff]  }
 0x2f2   : > { %v10556_v8 = vld [vmem:[%s11870_s14 + $0xa2c] ss:$20 sps:$4 sm:$0xff]   ;;  %v10559_v10 = vld [vmem:[%s11870_s14 + $0xa34] ss:$20 sps:$4 sm:$0xff]  }
 0x2f3   : > { %3685 = vmatprep.mubr.bf16.mxu0 %v12230_v14  ;;  %3814 = vmatprep.mubr.bf16.mxu1 %v12230_v14 }
 0x2f4   : > { %3686 = vmatmul.mubr.bf16.vlgmr.msra.gmra.mrb[16].mxu0 %v12226_v11  ;;  %3815 = vmatmul.mubr.bf16.vlgmr.msra.gmra.mrb[16].mxu1 %v12226_v11 }
 0x2f5   : > { %3697 = vmatpush1.bf16.msra.mxu0 %v10500_v16  ;;  %3826 = vmatpush1.bf16.msra.mxu1 %v10503_v17  ;;  %v10554_v16 = vld [vmem:[%s11870_s14 + $0xa28] ss:$20 sps:$4 sm:$0xff]   ;;  %v10557_v17 = vld [vmem:[%s11870_s14 + $0xa30] ss:$20 sps:$4 sm:$0xff]  }
 0x2f6   : > { %3728 = vmatprep.mubr.bf16.mxu0 %v12232_v15  ;;  %3857 = vmatprep.mubr.bf16.mxu1 %v12232_v15 }
 0x2f7   : > { %3698 = vmatprep.subr.bf16.mxu0 %v10508_v22  ;;  %3827 = vmatprep.subr.bf16.mxu1 %v10511_v23  ;;  %v10562_v22 = vld [vmem:[%s11870_s14 + $0xa54] ss:$20 sps:$4 sm:$0xff]   ;;  %v10565_v23 = vld [vmem:[%s11870_s14 + $0xa5c] ss:$20 sps:$4 sm:$0xff]  }
 0x2f9   : > { %3699 = vmatpush1.bf16.msra.mxu0 %v10506_v24  ;;  %3828 = vmatpush1.bf16.msra.mxu1 %v10509_v25  ;;  %v10560_v24 = vld [vmem:[%s11870_s14 + $0xa50] ss:$20 sps:$4 sm:$0xff]   ;;  %v10563_v25 = vld [vmem:[%s11870_s14 + $0xa58] ss:$20 sps:$4 sm:$0xff]  }
 0x2fa   : > { %3700 = vmatprep.subr.bf16.mxu0 %v10514_v26  ;;  %3829 = vmatprep.subr.bf16.mxu1 %v10517_v28  ;;  %v10568_v26 = vld [vmem:[%s11870_s14 + $0xa7c] ss:$20 sps:$4 sm:$0xff]   ;;  %v10571_v28 = vld [vmem:[%s11870_s14 + $0xa84] ss:$20 sps:$4 sm:$0xff]  }
 0x2fd   : > { %3701 = vmatpush1.bf16.msra.mxu0 %v10512_v29  ;;  %3830 = vmatpush1.bf16.msra.mxu1 %v10515_v30  ;;  %v10566_v29 = vld [vmem:[%s11870_s14 + $0xa78] ss:$20 sps:$4 sm:$0xff]   ;;  %v10569_v30 = vld [vmem:[%s11870_s14 + $0xa80] ss:$20 sps:$4 sm:$0xff]  }
 0x2fe   : > { %3702 = vmatprep.subr.bf16.mxu0 %v10520_v31  ;;  %3831 = vmatprep.subr.bf16.mxu1 %v10523_v32  ;;  %v10574_v31 = vld [vmem:[%s11870_s14 + $0xaa4] ss:$20 sps:$4 sm:$0xff]   ;;  %v10577_v32 = vld [vmem:[%s11870_s14 + $0xaac] ss:$20 sps:$4 sm:$0xff]  }
 0x301   : > { %3703 = vmatpush1.bf16.msra.mxu0 %v10518_v33  ;;  %3832 = vmatpush1.bf16.msra.mxu1 %v10521_v34  ;;  %v10572_v33 = vld [vmem:[%s11870_s14 + $0xaa0] ss:$20 sps:$4 sm:$0xff]   ;;  %v10575_v34 = vld [vmem:[%s11870_s14 + $0xaa8] ss:$20 sps:$4 sm:$0xff]  }
 0x302   : > { %3704 = vmatprep.subr.bf16.mxu0 %v10526_v52  ;;  %3833 = vmatprep.subr.bf16.mxu1 %v10529_v59  ;;  %v10580_v52 = vld [vmem:[%s11870_s14 + $0xacc] ss:$20 sps:$4 sm:$0xff]   ;;  %v10583_v59 = vld [vmem:[%s11870_s14 + $0xad4] ss:$20 sps:$4 sm:$0xff]  }
 0x305   : > { %3705 = vmatpush1.bf16.msra.mxu0 %v10524_v35  ;;  %3834 = vmatpush1.bf16.msra.mxu1 %v10527_v36  ;;  %v10578_v35 = vld [vmem:[%s11870_s14 + $0xac8] ss:$20 sps:$4 sm:$0xff]   ;;  %v10581_v36 = vld [vmem:[%s11870_s14 + $0xad0] ss:$20 sps:$4 sm:$0xff]  }
 0x306   : > { %3706 = vmatprep.subr.bf16.mxu0 %v10532_v37  ;;  %3835 = vmatprep.subr.bf16.mxu1 %v10535_v38  ;;  %v10586_v37 = vld [vmem:[%s11870_s14 + $0xaf4] ss:$20 sps:$4 sm:$0xff]   ;;  %v10589_v38 = vld [vmem:[%s11870_s14 + $0xafc] ss:$20 sps:$4 sm:$0xff]  }
 0x309   : > { %3707 = vmatpush1.bf16.msra.mxu0 %v10530_v39  ;;  %3836 = vmatpush1.bf16.msra.mxu1 %v10533_v40  ;;  %v9548_v44 = vpop.f32.mrb[8].mxu1  ;;  %v10584_v40 = vld [vmem:[%s11870_s14 + $0xaf0] ss:$20 sps:$4 sm:$0xff]  }
 0x30a   : > { %v9570_v48 = vpop.f32.mrb[12].mxu0  ;;  %v9549_v49 = vpop.f32.mrb[9].mxu1  ;;  %3708 = vmatprep.subr.bf16.mxu0 %v10538_v41  ;;  %3837 = vmatprep.subr.bf16.mxu1 %v10541_v42  ;;  %v10587_v41 = vld [vmem:[%s11870_s14 + $0xaf8] ss:$20 sps:$4 sm:$0xff]  }
 0x30b   : > { %v9550_v53 = vadd.f32 %v9549_v49, %v9548_v44  ;;  %v9571_v54 = vpop.f32.mrb[13].mxu0  ;;  %v9551_v55 = vpop.f32.mrb[10].mxu1 }
 0x30c   : > { %v9572_v57 = vadd.f32 %v9571_v54, %v9570_v48  ;;  %v9573_v58 = vpop.f32.mrb[14].mxu0  ;;  %v9552_v60 = vpop.f32.mrb[11].mxu1 }
 0x30d   : > { %v2239_v61 = vadd.f32 %v9550_v53, %v900_v45  ;;  %v9553_v43 = vadd.f32 %v9552_v60, %v9551_v55  ;;  %v9574_v62 = vpop.f32.mrb[15].mxu0  ;;  %3709 = vmatpush1.bf16.msra.mxu0 %v10536_v46  ;;  %3838 = vmatpush1.bf16.msra.mxu1 %v10539_v47  ;;  %v10595_v46 = vld [vmem:[%s11870_s14 + $0xb24] ss:$20 sps:$4 sm:$0xff]   ;;  %v10596_v60 = vld [vmem:[%s11870_s14 + $0xb40] ss:$20 sps:$4 sm:$0xff]  }
 0x30e   : > { %v9575_v56 = vadd.f32 %v9574_v62, %v9573_v58  ;;  %3710 = vmatprep.subr.bf16.mxu0 %v10544_v50  ;;  %3839 = vmatprep.subr.bf16.mxu1 %v10547_v51  ;;  %v10590_v50 = vld [vmem:[%s11870_s14 + $0xb18] ss:$20 sps:$4 sm:$0xff]   ;;  %v10593_v51 = vld [vmem:[%s11870_s14 + $0xb20] ss:$20 sps:$4 sm:$0xff]  }
 0x30f   : > { %v2242_v0 = vadd.f32 %v9553_v43, %v900_v45  ;;  %v2280_v4 = vadd.f32 %v9572_v57, %v2239_v61  ;;  %v10592_v45 = vld [vmem:[%s11870_s14 + $0xb1c] ss:$20 sps:$4 sm:$0xff]   ;;  %v10598_v55 = vld [vmem:[%s11870_s14 + $0xb44] ss:$20 sps:$4 sm:$0xff]   ;;  %v10601_v57 = vld [vmem:[%s11870_s14 + $0xb4c] ss:$20 sps:$4 sm:$0xff]  }
 0x310   : > { %v10599_v61 = vld [vmem:[%s11870_s14 + $0xb48] ss:$20 sps:$4 sm:$0xff]   ;;  %v10604_v43 = vld [vmem:[%s11870_s14 + $0xb6c] ss:$20 sps:$4 sm:$0xff]  }
 0x311   : > { %3711 = vmatpush1.bf16.msra.mxu0 %v10542_v63  ;;  %3840 = vmatpush1.bf16.msra.mxu1 %v10545_v13  ;;  %v2283_v7 = vadd.f32 %v9575_v56, %v2242_v0  ;;  %v10607_v62 = vld [vmem:[%s11870_s14 + $0xb74] ss:$20 sps:$4 sm:$0xff]   ;;  %v10605_v13 = vld [vmem:[%s11870_s14 + $0xb70] ss:$20 sps:$4 sm:$0xff]   ;;  %v10611_v0 = vld [vmem:[%s11870_s14 + $0xb98] ss:$20 sps:$4 sm:$0xff]  }
 0x312   : > { %3712 = vmatprep.subr.bf16.mxu0 %v10550_v1  ;;  %3841 = vmatprep.subr.bf16.mxu1 %v10553_v2  ;;  %v10602_v63 = vld [vmem:[%s11870_s14 + $0xb68] ss:$20 sps:$4 sm:$0xff]   ;;  %v10608_v2 = vld [vmem:[%s11870_s14 + $0xb90] ss:$20 sps:$4 sm:$0xff]  }
 0x313   : > { %v10610_v56 = vld [vmem:[%s11870_s14 + $0xb94] ss:$20 sps:$4 sm:$0xff]   ;;  %v10613_v1 = vld [vmem:[%s11870_s14 + $0xb9c] ss:$20 sps:$4 sm:$0xff]  }
 0x315   : > { %3713 = vmatpush1.bf16.msra.mxu0 %v10548_v5  ;;  %3842 = vmatpush1.bf16.msra.mxu1 %v10551_v6  ;;  %v10619_v5 = vld [vmem:[%s11870_s14 + $0xbc4] ss:$20 sps:$4 sm:$0xff]  }
 0x316   : > { %3714 = vmatprep.subr.bf16.mxu0 %v10556_v8  ;;  %3843 = vmatprep.subr.bf16.mxu1 %v10559_v10  ;;  %v10614_v6 = vld [vmem:[%s11870_s14 + $0xbb8] ss:$20 sps:$4 sm:$0xff]   ;;  %v10620_v10 = vld [vmem:[%s11870_s14 + $0xbe0] ss:$20 sps:$4 sm:$0xff]  }
 0x317   : > { %v10625_v8 = vld [vmem:[%s11870_s14 + $0xbec] ss:$20 sps:$4 sm:$0xff]  }
 0x319   : > { %3715 = vmatpush1.bf16.msra.mxu0 %v10554_v16  ;;  %3844 = vmatpush1.bf16.msra.mxu1 %v10557_v17  ;;  %v10623_v16 = vld [vmem:[%s11870_s14 + $0xbe8] ss:$20 sps:$4 sm:$0xff]   ;;  %v10628_v17 = vld [vmem:[%s11870_s14 + $0xc0c] ss:$20 sps:$4 sm:$0xff]  }
 0x31a   : > { %3716 = vmatprep.subr.bf16.mxu0 %v10562_v22  ;;  %3845 = vmatprep.subr.bf16.mxu1 %v10565_v23  ;;  %v10631_v22 = vld [vmem:[%s11870_s14 + $0xc14] ss:$20 sps:$4 sm:$0xff]  }
 0x31b   : > { %v10626_v23 = vld [vmem:[%s11870_s14 + $0xc08] ss:$20 sps:$4 sm:$0xff]  }
 0x31d   : > { %3717 = vmatpush1.bf16.msra.mxu0 %v10560_v24  ;;  %3846 = vmatpush1.bf16.msra.mxu1 %v10563_v25  ;;  %v10629_v24 = vld [vmem:[%s11870_s14 + $0xc10] ss:$20 sps:$4 sm:$0xff]   ;;  %v10634_v25 = vld [vmem:[%s11870_s14 + $0xc34] ss:$20 sps:$4 sm:$0xff]  }
 0x31e   : > { %3718 = vmatprep.subr.bf16.mxu0 %v10568_v26  ;;  %3847 = vmatprep.subr.bf16.mxu1 %v10571_v28  ;;  %v10637_v26 = vld [vmem:[%s11870_s14 + $0xc3c] ss:$20 sps:$4 sm:$0xff]  }
 0x31f   : > { %v10632_v28 = vld [vmem:[%s11870_s14 + $0xc30] ss:$20 sps:$4 sm:$0xff]  }
 0x321   : > { %3719 = vmatpush1.bf16.msra.mxu0 %v10566_v29  ;;  %3848 = vmatpush1.bf16.msra.mxu1 %v10569_v30  ;;  %v10635_v29 = vld [vmem:[%s11870_s14 + $0xc38] ss:$20 sps:$4 sm:$0xff]   ;;  %v10640_v30 = vld [vmem:[%s11870_s14 + $0xc5c] ss:$20 sps:$4 sm:$0xff]  }
 0x322   : > { %3720 = vmatprep.subr.bf16.mxu0 %v10574_v31  ;;  %3849 = vmatprep.subr.bf16.mxu1 %v10577_v32  ;;  %v10643_v31 = vld [vmem:[%s11870_s14 + $0xc64] ss:$20 sps:$4 sm:$0xff]  }
 0x323   : > { %v10638_v32 = vld [vmem:[%s11870_s14 + $0xc58] ss:$20 sps:$4 sm:$0xff]  }
 0x325   : > { %3721 = vmatpush1.bf16.msra.mxu0 %v10572_v33  ;;  %3850 = vmatpush1.bf16.msra.mxu1 %v10575_v34  ;;  %v10641_v33 = vld [vmem:[%s11870_s14 + $0xc60] ss:$20 sps:$4 sm:$0xff]   ;;  %v10644_v34 = vld [vmem:[%s11870_s14 + $0x790] ss:$20 sps:$4 sm:$0xff]  }
 0x326   : > { %3722 = vmatprep.subr.bf16.mxu0 %v10580_v52  ;;  %3851 = vmatprep.subr.bf16.mxu1 %v10583_v59  ;;  %v10645_v52 = vld [vmem:[%s11870_s14 + $0xa10] ss:$20 sps:$4 sm:$0xff]  }
 0x327   : > { %v10646_v59 = vld [vmem:[%s11870_s14 + $0x650] ss:$20 sps:$4 sm:$0xff]  }
 0x329   : > { %3723 = vmatpush1.bf16.msra.mxu0 %v10578_v35  ;;  %3852 = vmatpush1.bf16.msra.mxu1 %v10581_v36  ;;  %v2320_v39 = vpop.f32.mrb[12].mxu1  ;;  %v10647_v35 = vld [vmem:[%s11870_s14 + $0x8d0] ss:$20 sps:$4 sm:$0xff]   ;;  %v10648_v36 = vld [vmem:[%s11870_s14 + $0x7b8] ss:$20 sps:$4 sm:$0xff]  }
 0x32a   : > { %v2321_v42 = vadd.f32 %v2320_v39, %v2280_v4  ;;  %v9821_v44 = vpop.f32.mrb[13].mxu1  ;;  %3724 = vmatprep.subr.bf16.mxu0 %v10586_v37  ;;  %3853 = vmatprep.subr.bf16.mxu1 %v10589_v38  ;;  %v10616_v4 = vld [vmem:[%s11870_s14 + $0xbbc] ss:$20 sps:$4 sm:$0xff]   ;;  %v10649_v37 = vld [vmem:[%s11870_s14 + $0xa38] ss:$20 sps:$4 sm:$0xff]  }
 0x32b   : > { %v2323_v47 = vpop.f32.mrb[14].mxu1  ;;  %v10650_v38 = vld [vmem:[%s11870_s14 + $0x678] ss:$20 sps:$4 sm:$0xff]   ;;  %v10656_v44 = vld [vmem:[%s11870_s14 + $0x808] ss:$20 sps:$4 sm:$0xff]  }
 0x32c   : > { %v2324_v48 = vadd.f32 %v2323_v47, %v2283_v7  ;;  %v9822_v49 = vpop.f32.mrb[15].mxu1  ;;  %v2331_v53 = vmax.f32 %v2321_v42, 0.0  ;;  %v10617_v7 = vld [vmem:[%s11870_s14 + $0xbc0] ss:$20 sps:$4 sm:$0xff]   ;;  %v10651_v39 = vld [vmem:[%s11870_s14 + $0x8f8] ss:$20 sps:$4 sm:$0xff]  }
 0x32d   : > { %3725 = vmatpush1.bf16.msra.mxu0 %v10584_v40  ;;  %3854 = vmatpush1.bf16.msra.mxu1 %v10587_v41  ;;  %v10652_v40 = vld [vmem:[%s11870_s14 + $0x7e0] ss:$20 sps:$4 sm:$0xff]   ;;  %v10660_v47 = vld [vmem:[%s11870_s14 + $0x830] ss:$20 sps:$4 sm:$0xff]  }
 0x32e   : > { %v2336_v54 = vmax.f32 %v2324_v48, 0.0  ;;  %3726 = vmatprep.subr.bf16.mxu0 %v10592_v45  ;;  %3855 = vmatprep.subr.bf16.mxu1 %v10595_v46  ;;  %v10653_v41 = vld [vmem:[%s11870_s14 + $0xa60] ss:$20 sps:$4 sm:$0xff]   ;;  %v10657_v45 = vld [vmem:[%s11870_s14 + $0xa88] ss:$20 sps:$4 sm:$0xff]  }
 0x32f   : > { %v10654_v42 = vld [vmem:[%s11870_s14 + $0x6a0] ss:$20 sps:$4 sm:$0xff]   ;;  %v10659_v46 = vld [vmem:[%s11870_s14 + $0x948] ss:$20 sps:$4 sm:$0xff]   ;;  %v10661_v48 = vld [vmem:[%s11870_s14 + $0xab0] ss:$20 sps:$4 sm:$0xff]  }
 0x330   : > { %v12306_v58 = vpack.c.bf16 %v2336_v54, %v2331_v53  ;;  %v10662_v49 = vld [vmem:[%s11870_s14 + $0x6f0] ss:$20 sps:$4 sm:$0xff]   ;;  %v10665_v53 = vld [vmem:[%s11870_s14 + $0xad8] ss:$20 sps:$4 sm:$0xff]  }
 0x331   : > { %3727 = vmatpush1.bf16.msra.mxu0 %v10590_v50  ;;  %3856 = vmatpush1.bf16.msra.mxu1 %v10593_v51  ;;  %v10663_v50 = vld [vmem:[%s11870_s14 + $0x970] ss:$20 sps:$4 sm:$0xff]   ;;  %v10664_v51 = vld [vmem:[%s11870_s14 + $0x858] ss:$20 sps:$4 sm:$0xff]  }
 0x332   : > { %3739 = vmatprep.subr.bf16.mxu0 %v10598_v55  ;;  %3868 = vmatprep.subr.bf16.mxu1 %v10601_v57  ;;  %v10666_v54 = vld [vmem:[%s11870_s14 + $0x718] ss:$20 sps:$4 sm:$0xff]   ;;  %v10668_v57 = vld [vmem:[%s11870_s14 + $0x880] ss:$20 sps:$4 sm:$0xff]  }
 0x333   : > { %v10667_v55 = vld [vmem:[%s11870_s14 + $0x998] ss:$20 sps:$4 sm:$0xff]  }
 0x334   : > { %3729 = vmatmul.mubr.bf16.vlgmr.msra.gmra.mrb[16].mxu0 %v12228_v12  ;;  %3858 = vmatmul.mubr.bf16.vlgmr.msra.gmra.mrb[16].mxu1 %v12228_v12 }
 0x335   : > { %3740 = vmatpush1.bf16.msra.mxu0 %v10596_v60  ;;  %3869 = vmatpush1.bf16.msra.mxu1 %v10599_v61  ;;  %v10669_v60 = vld [vmem:[%s11870_s14 + $0xb00] ss:$20 sps:$4 sm:$0xff]  }
 0x336   : > { %3741 = vmatprep.subr.bf16.mxu0 %v10604_v43  ;;  %3870 = vmatprep.subr.bf16.mxu1 %v10607_v62  ;;  %v10670_v61 = vld [vmem:[%s11870_s14 + $0x740] ss:$20 sps:$4 sm:$0xff]   ;;  %v10672_v62 = vld [vmem:[%s11870_s14 + $0x8a8] ss:$20 sps:$4 sm:$0xff]  }
 0x337   : > { %3771 = vmatprep.mubr.bf16.mxu0 %v11549_v3  ;;  %3900 = vmatprep.mubr.bf16.mxu1 %v11549_v3  ;;  %v10622_v3 = vld [vmem:[%s11870_s14 + $0xbe4] ss:$20 sps:$4 sm:$0xff]   ;;  %v10671_v43 = vld [vmem:[%s11870_s14 + $0x9c0] ss:$20 sps:$4 sm:$0xff]  }
 0x339   : > { %3742 = vmatpush1.bf16.msra.mxu0 %v10602_v63  ;;  %3871 = vmatpush1.bf16.msra.mxu1 %v10605_v13  ;;  %v10673_v63 = vld [vmem:[%s11870_s14 + $0xb28] ss:$20 sps:$4 sm:$0xff]  }
 0x33a   : > { %3743 = vmatprep.subr.bf16.mxu0 %v10610_v56  ;;  %3872 = vmatprep.subr.bf16.mxu1 %v10613_v1  ;;  %v10674_v13 = vld [vmem:[%s11870_s14 + $0x768] ss:$20 sps:$4 sm:$0xff]   ;;  %v10676_v1 = vld [vmem:[%s11870_s14 + $0xb50] ss:$20 sps:$4 sm:$0xff]  }
 0x33b   : > { %v10675_v56 = vld [vmem:[%s11870_s14 + $0x9e8] ss:$20 sps:$4 sm:$0xff]  }
 0x33d   : > { %3744 = vmatpush1.bf16.msra.mxu0 %v10608_v2  ;;  %3873 = vmatpush1.bf16.msra.mxu1 %v10611_v0  ;;  %v10677_v2 = vld [vmem:[%s11870_s14 + $0xb78] ss:$20 sps:$4 sm:$0xff]   ;;  %v10678_v0 = vld [vmem:[%s11870_s14 + $0xba0] ss:$20 sps:$4 sm:$0xff]  }
 0x33e   : > { %3745 = vmatprep.subr.bf16.mxu0 %v10616_v4  ;;  %3874 = vmatprep.subr.bf16.mxu1 %v10619_v5  ;;  %v10679_v4 = vld [vmem:[%s11870_s14 + $0xbc8] ss:$20 sps:$4 sm:$0xff]   ;;  %v10682_v5 = vld [vmem:[%s11870_s14 + $0xc40] ss:$20 sps:$4 sm:$0xff]  }
 0x341   : > { %3746 = vmatpush1.bf16.msra.mxu0 %v10614_v6  ;;  %3875 = vmatpush1.bf16.msra.mxu1 %v10617_v7  ;;  %v10683_v6 = vld [vmem:[%s11870_s14 + $0xc68] ss:$20 sps:$4 sm:$0xff]   ;;  %v8638_v7 = vld [vmem:[%s12213_s21 + $0x5] sm:$0x1f] }
 0x342   : > { %3747 = vmatprep.subr.bf16.mxu0 %v10622_v3  ;;  %3876 = vmatprep.subr.bf16.mxu1 %v10625_v8  ;;  %v2591_v3 = vrot.slane %v8638_v7, %v11960_v18  ;;  %v2599_v8 = vrot.slane %v8638_v7, %v11964_v20 }
 0x345   : > { %3748 = vmatpush1.bf16.msra.mxu0 %v10620_v10  ;;  %3877 = vmatpush1.bf16.msra.mxu1 %v10623_v16  ;;  %v2595_v10 = vrot.slane %v8638_v7, %v11962_v19  ;;  %v2603_v16 = vrot.slane %v8638_v7, %v11966_v21 }
 0x346   : > { %3749 = vmatprep.subr.bf16.mxu0 %v10628_v17  ;;  %3878 = vmatprep.subr.bf16.mxu1 %v10631_v22 }
 0x349   : > { %3750 = vmatpush1.bf16.msra.mxu0 %v10626_v23  ;;  %3879 = vmatpush1.bf16.msra.mxu1 %v10629_v24 }
 0x34a   : > { %3751 = vmatprep.subr.bf16.mxu0 %v10634_v25  ;;  %3880 = vmatprep.subr.bf16.mxu1 %v10637_v26 }
 0x34d   : > { %3752 = vmatpush1.bf16.msra.mxu0 %v10632_v28  ;;  %3881 = vmatpush1.bf16.msra.mxu1 %v10635_v29 }
 0x34e   : > { %3753 = vmatprep.subr.bf16.mxu0 %v10640_v30  ;;  %3882 = vmatprep.subr.bf16.mxu1 %v10643_v31 }
 0x351   : > { %3754 = vmatpush1.bf16.msra.mxu0 %v10638_v32  ;;  %3883 = vmatpush1.bf16.msra.mxu1 %v10641_v33 }
 0x352   : > { %9585 = vmatprep.subr.bf16.mxu0 %v10644_v34  ;;  %9607 = vmatprep.subr.bf16.mxu1 %v10645_v52 }
 0x354   : > { %3772 = vmatmul.mubr.bf16.vlgmr.msra.gmra.mrb[16].mxu0 %v12306_v58  ;;  %3901 = vmatmul.mubr.bf16.vlgmr.msra.gmra.mrb[16].mxu1 %v12306_v58 }
 0x355   : > { %9586 = vmatpush3.bf16.msra.mxu0 %v10646_v59  ;;  %3943 = vmatprep.mubr.bf16.mxu0 %v12230_v14  ;;  %v10655_v14 = vld [vmem:[%s11870_s14 + $0x920] ss:$20 sps:$4 sm:$0xff]  }
 0x356   : > { %9608 = vmatpush3.bf16.msra.mxu1 %v10647_v35  ;;  %3984 = vmatprep.mubr.bf16.mxu1 %v12232_v15  ;;  %v10658_v15 = vld [vmem:[%s11870_s14 + $0x6c8] ss:$20 sps:$4 sm:$0xff]  }
 0x357   : > { %9587 = vmatprep.subr.bf16.mxu0 %v10648_v36  ;;  %9609 = vmatprep.subr.bf16.mxu1 %v10649_v37 }
 0x359   : > { %9588 = vmatpush3.bf16.msra.mxu0 %v10650_v38 }
 0x35a   : > { %9610 = vmatpush3.bf16.msra.mxu1 %v10651_v39  ;;  %9589 = vmatprep.subr.bf16.mxu0 %v10652_v40 }
 0x35b   : > { %9611 = vmatprep.subr.bf16.mxu1 %v10653_v41 }
 0x35d   : > { %9590 = vmatpush3.bf16.msra.mxu0 %v10654_v42 }
 0x35e   : > { %9612 = vmatpush3.bf16.msra.mxu1 %v10655_v14  ;;  %9591 = vmatprep.subr.bf16.mxu0 %v10656_v44  ;;  %v2607_v14 = vrot.slane %v8638_v7, %v11972_v27 }
 0x35f   : > { %9613 = vmatprep.subr.bf16.mxu1 %v10657_v45 }
 0x361   : > { %9592 = vmatpush3.bf16.msra.mxu0 %v10658_v15 }
 0x362   : > { %9614 = vmatpush3.bf16.msra.mxu1 %v10659_v46  ;;  %9593 = vmatprep.subr.bf16.mxu0 %v10660_v47 }
 0x363   : > { %9615 = vmatprep.subr.bf16.mxu1 %v10661_v48 }
 0x365   : > { %9594 = vmatpush3.bf16.msra.mxu0 %v10662_v49 }
 0x366   : > { %9616 = vmatpush3.bf16.msra.mxu1 %v10663_v50  ;;  %9595 = vmatprep.subr.bf16.mxu0 %v10664_v51 }
 0x367   : > { %9617 = vmatprep.subr.bf16.mxu1 %v10665_v53 }
 0x369   : > { %9596 = vmatpush3.bf16.msra.mxu0 %v10666_v54 }
 0x36a   : > { %9618 = vmatpush3.bf16.msra.mxu1 %v10667_v55  ;;  %9597 = vmatprep.subr.bf16.mxu0 %v10668_v57 }
 0x36b   : > { %9619 = vmatprep.subr.bf16.mxu1 %v10669_v60 }
 0x36d   : > { %9598 = vmatpush3.bf16.msra.mxu0 %v10670_v61 }
 0x36e   : > { %9620 = vmatpush3.bf16.msra.mxu1 %v10671_v43  ;;  %9599 = vmatprep.subr.bf16.mxu0 %v10672_v62 }
 0x36f   : > { %9621 = vmatprep.subr.bf16.mxu1 %v10673_v63 }
 0x371   : > { %9600 = vmatpush3.bf16.msra.mxu0 %v10674_v13 }
 0x372   : > { %9622 = vmatpush3.bf16.msra.mxu1 %v10675_v56  ;;  %9823 = vmatprep.subr.bf16.mxu0 %v11550_v9 }
 0x374   : > { %3944 = vmatmul.mubr.bf16.vlgmr.msra.gmra.mrb[20].mxu0 %v12226_v11  ;;  %v10680_v11 = vld [vmem:[%s11870_s14 + $0xbf0] ss:$20 sps:$4 sm:$0xff]  }
 0x375   : > { %3985 = vmatmul.mubr.bf16.vlgmr.msra.gmra.mrb[20].mxu1 %v12228_v12  ;;  %9824 = vmatpush3.bf16.msra.mxu0 %v10676_v1  ;;  %v10681_v12 = vld [vmem:[%s11870_s14 + $0xc18] ss:$20 sps:$4 sm:$0xff]  }
 0x376   : > { %9825 = vmatprep.subr.bf16.mxu0 %v11550_v9  ;;  %9839 = vmatprep.mubr.msk.bf16.mxu0 %vm11551_vm1, %v11550_v9 }
 0x379   : > { %9826 = vmatpush3.bf16.msra.mxu0 %v10677_v2 }
 0x37a   : > { %9827 = vmatprep.subr.bf16.mxu0 %v11550_v9 }
 0x37d   : > { %9828 = vmatpush3.bf16.msra.mxu0 %v10678_v0 }
 0x37e   : > { %9829 = vmatprep.subr.bf16.mxu0 %v11550_v9 }
 0x381   : > { %9830 = vmatpush3.bf16.msra.mxu0 %v10679_v4 }
 0x382   : > { %9831 = vmatprep.subr.bf16.mxu0 %v11550_v9 }
 0x385   : > { %9832 = vmatpush3.bf16.msra.mxu0 %v10680_v11 }
 0x386   : > { %9833 = vmatprep.subr.bf16.mxu0 %v11550_v9 }
 0x389   : > { %9834 = vmatpush3.bf16.msra.mxu0 %v10681_v12 }
 0x38a   : > { %9835 = vmatprep.subr.bf16.mxu0 %v11550_v9 }
 0x38d   : > { %9836 = vmatpush3.bf16.msra.mxu0 %v10682_v5 }
 0x38e   : > { %9837 = vmatprep.subr.bf16.mxu0 %v11550_v9 }
 0x391   : > { %9838 = vmatpush3.bf16.msra.mxu0 %v10683_v6 }
 0x394   : > { %9840 = vmatmul.mubr.bf16.vlgmr.msra.gmra.mrb[24].mxu0 %v12306_v58 }
 0x427   : > { %v3773_v17 = vpop.f32.mrb[16].mxu0  ;;  %v3902_v22 = vpop.f32.mrb[16].mxu1 }
 0x428   : > { %v9911_v23 = vadd.f32 %v3773_v17, %v2591_v3  ;;  %v9915_v24 = vadd.f32 %v3902_v22, %v2599_v8  ;;  %v3775_v25 = vpop.f32.mrb[17].mxu0  ;;  %v3904_v26 = vpop.f32.mrb[17].mxu1 }
 0x429   : > { %v9912_v28 = vadd.f32 %v3775_v25, %v2595_v10  ;;  %v9916_v9 = vadd.f32 %v3904_v26, %v2603_v16  ;;  %v3777_v29 = vpop.f32.mrb[18].mxu0  ;;  %v3906_v30 = vpop.f32.mrb[18].mxu1 }
 0x42a   : > { %v9913_v58 = vadd.f32 %v3777_v29, %v2591_v3  ;;  %v9917_v31 = vadd.f32 %v3906_v30, %v2599_v8  ;;  %v3779_v32 = vpop.f32.mrb[19].mxu0  ;;  %v3908_v18 = vpop.f32.mrb[19].mxu1  ;;  %v4034_v34 = vmax.f32 %v9911_v23, 0.0  ;;  %v4036_v19 = vmax.f32 %v9915_v24, 0.0 }
 0x42b   : > { %v9914_v33 = vadd.f32 %v3779_v32, %v2595_v10  ;;  %v9918_v20 = vadd.f32 %v3908_v18, %v2603_v16  ;;  %v4035_v59 = vmax.f32 %v9912_v28, 0.0  ;;  %v4037_v35 = vmax.f32 %v9916_v9, 0.0 }
 0x42c   : > { %v4039_v52 = vmax.f32 %v9913_v58, 0.0  ;;  %v4041_v21 = vmax.f32 %v9917_v31, 0.0 }
 0x42d   : > { %v4040_v36 = vmax.f32 %v9914_v33, 0.0  ;;  %v4042_v37 = vmax.f32 %v9918_v20, 0.0 }
 0x42e   : > { %v4044_v38 = vpack.c.bf16 %v4039_v52, %v4034_v34  ;;  %v4046_v39 = vpack.c.bf16 %v4041_v21, %v4036_v19 }
 0x42f   : > { %v4045_v40 = vpack.c.bf16 %v4040_v36, %v4035_v59  ;;  %v4047_v41 = vpack.c.bf16 %v4042_v37, %v4037_v35 }
 0x430   : > { %4049 = vst [vmem:[#allocation2] sm:$0xff] %v4044_v38  ;;  %4055 = vst [vmem:[#allocation2 + $0x28] sm:$0xff] %v4044_v38 }
 0x431   : > { %4051 = vst [vmem:[#allocation2 + $0x10] sm:$0xff] %v4046_v39  ;;  %4057 = vst [vmem:[#allocation2 + $0x38] sm:$0xff] %v4046_v39 }
 0x432   : > { %4050 = vst [vmem:[#allocation2 + $0x8] sm:$0xff] %v4045_v40  ;;  %4056 = vst [vmem:[#allocation2 + $0x30] sm:$0xff] %v4045_v40 }
 0x433   : > { %4052 = vst [vmem:[#allocation2 + $0x18] sm:$0xff] %v4047_v41  ;;  %4058 = vst [vmem:[#allocation2 + $0x40] sm:$0xff] %v4047_v41 }
 0x447   : > { %v9601_v42 = vpop.f32.mrb[20].mxu0 }
 0x448   : > { %v9623_v44 = vpop.f32.mrb[20].mxu1  ;;  %v9602_v45 = vpop.f32.mrb[21].mxu0 }
 0x449   : > { %v9603_v15 = vadd.f32 %v9602_v45, %v9601_v42  ;;  %v9624_v46 = vpop.f32.mrb[21].mxu1  ;;  %v9604_v47 = vpop.f32.mrb[22].mxu0 }
 0x44a   : > { %v9625_v48 = vadd.f32 %v9624_v46, %v9623_v44  ;;  %v9626_v49 = vpop.f32.mrb[22].mxu1  ;;  %v9605_v50 = vpop.f32.mrb[23].mxu0 }
 0x44b   : > { %v3946_v51 = vadd.f32 %v9603_v15, %v2607_v14  ;;  %v9606_v53 = vadd.f32 %v9605_v50, %v9604_v47  ;;  %v9627_v54 = vpop.f32.mrb[23].mxu1 }
 0x44c   : > { %v9628_v55 = vadd.f32 %v9627_v54, %v9626_v49 }
 0x44d   : > { %v3949_v57 = vadd.f32 %v9606_v53, %v2607_v14  ;;  %v3987_v60 = vadd.f32 %v9625_v48, %v3946_v51 }
 0x44f   : > { %v3990_v61 = vadd.f32 %v9628_v55, %v3949_v57 }
 0x467   : > { %v4027_v43 = vpop.f32.mrb[24].mxu0 }
 0x468   : > { %v4028_v62 = vadd.f32 %v4027_v43, %v3987_v60  ;;  %v9841_v63 = vpop.f32.mrb[25].mxu0 }
 0x469   : > { %v4030_v13 = vpop.f32.mrb[26].mxu0 }
 0x46a   : > { %v4031_v27 = vadd.f32 %v4030_v13, %v3990_v61  ;;  %v9842_v56 = vpop.f32.mrb[27].mxu0  ;;  %v4038_v1 = vmax.f32 %v4028_v62, 0.0 }
 0x46c   : > { %v4043_v2 = vmax.f32 %v4031_v27, 0.0 }
 0x46e   : > { %v4048_v0 = vpack.c.bf16 %v4043_v2, %v4038_v1 }
 0x470   : > { %4053 = vst [vmem:[#allocation2 + $0x20] sm:$0xff] %v4048_v0  ;;  %4059 = vst [vmem:[#allocation2 + $0x48] sm:$0xff] %v4048_v0 }
 0x471 PF: > { %p8839_p2 = scmp.le.s32.totalorder %s11632_s16, 0 }
 0x472   : > { %v10684_v4 = vld [vmem:[%s11870_s14 + $0x4] ss:$20 sps:$4 sm:$0xff] (!%p8839_p2)   ;;  %v10686_v11 = vld [vmem:[%s11870_s14 + $0xc] ss:$20 sps:$4 sm:$0xff] (!%p8839_p2)   ;;  %v10689_v5 = vld [vmem:[%s11870_s14 + $0x8] ss:$20 sps:$4 sm:$0xff] (!%p8839_p2)  }
 0x473   : > { %4063 = sbr.rel (%p8839_p2) target bundleno = 1781 (0x6f5), region = 92  ;;  %5379 = vmatprep.subr.bf16.mxu0 (!%p8839_p2), %v10684_v4  ;;  %v10688_v12 = vld [vmem:[%s11870_s14] ss:$20 sps:$4 sm:$0xff] (!%p8839_p2)   ;;  %5508 = vmatprep.subr.bf16.mxu1 (!%p8839_p2), %v10686_v11  ;;  %v10694_v3 = vld [vmem:[%s11870_s14 + $0x28] ss:$20 sps:$4 sm:$0xff] (!%p8839_p2)   ;;  %vm11554_vm2 = vmmov (!%p8839_p2), 0  }
 0x474   : > { %v10690_v6 = vld [vmem:[%s11870_s14 + $0x2c] ss:$20 sps:$4 sm:$0xff] (!%p8839_p2)   ;;  %5380 = vmatpush1.bf16.msra.mxu0 (!%p8839_p2), %v10688_v12  ;;  %5509 = vmatpush1.bf16.msra.mxu1 (!%p8839_p2), %v10689_v5  ;;  %v10692_v7 = vld [vmem:[%s11870_s14 + $0x34] ss:$20 sps:$4 sm:$0xff] (!%p8839_p2)   ;;  %v10695_v8 = vld [vmem:[%s11870_s14 + $0x30] ss:$20 sps:$4 sm:$0xff] (!%p8839_p2)  }
 0x475   : > { %5381 = vmatprep.subr.bf16.mxu0 (!%p8839_p2), %v10690_v6  ;;  %5510 = vmatprep.subr.bf16.mxu1 (!%p8839_p2), %v10692_v7  ;;  %v10696_v10 = vld [vmem:[%s11870_s14 + $0x54] ss:$20 sps:$4 sm:$0xff] (!%p8839_p2)   ;;  %v10698_v16 = vld [vmem:[%s11870_s14 + $0x5c] ss:$20 sps:$4 sm:$0xff] (!%p8839_p2)   ;;  %v10701_v22 = vld [vmem:[%s11870_s14 + $0x58] ss:$20 sps:$4 sm:$0xff] (!%p8839_p2)  }
 0x476   : > { %v10700_v17 = vld [vmem:[%s11870_s14 + $0x50] ss:$20 sps:$4 sm:$0xff] (!%p8839_p2)   ;;  %v10706_v25 = vld [vmem:[%s11870_s14 + $0x78] ss:$20 sps:$4 sm:$0xff] (!%p8839_p2)   ;;  %v10707_v26 = vld [vmem:[%s11870_s14 + $0x80] ss:$20 sps:$4 sm:$0xff] (!%p8839_p2)  }
 0x477   : > { %v10702_v23 = vld [vmem:[%s11870_s14 + $0x7c] ss:$20 sps:$4 sm:$0xff] (!%p8839_p2)   ;;  %v10704_v24 = vld [vmem:[%s11870_s14 + $0x84] ss:$20 sps:$4 sm:$0xff] (!%p8839_p2)   ;;  %v10710_v9 = vld [vmem:[%s11870_s14 + $0xac] ss:$20 sps:$4 sm:$0xff] (!%p8839_p2)  }
 0x478   : > { %5382 = vmatpush1.bf16.msra.mxu0 (!%p8839_p2), %v10694_v3  ;;  %5511 = vmatpush1.bf16.msra.mxu1 (!%p8839_p2), %v10695_v8  ;;  %v10708_v28 = vld [vmem:[%s11870_s14 + $0xa4] ss:$20 sps:$4 sm:$0xff] (!%p8839_p2)   ;;  %v10712_v29 = vld [vmem:[%s11870_s14 + $0xa0] ss:$20 sps:$4 sm:$0xff] (!%p8839_p2)   ;;  %v10713_v30 = vld [vmem:[%s11870_s14 + $0xa8] ss:$20 sps:$4 sm:$0xff] (!%p8839_p2)  }
 0x479   : > { %5383 = vmatprep.subr.bf16.mxu0 (!%p8839_p2), %v10696_v10  ;;  %5512 = vmatprep.subr.bf16.mxu1 (!%p8839_p2), %v10698_v16  ;;  %v10714_v58 = vld [vmem:[%s11870_s14 + $0xcc] ss:$20 sps:$4 sm:$0xff] (!%p8839_p2)   ;;  %v10716_v31 = vld [vmem:[%s11870_s14 + $0xd4] ss:$20 sps:$4 sm:$0xff] (!%p8839_p2)   ;;  %v10719_v18 = vld [vmem:[%s11870_s14 + $0xd0] ss:$20 sps:$4 sm:$0xff] (!%p8839_p2)  }
 0x47a   : > { %v10718_v32 = vld [vmem:[%s11870_s14 + $0xc8] ss:$20 sps:$4 sm:$0xff]   ;;  %v10724_v34 = vld [vmem:[%s11870_s14 + $0xf0] ss:$20 sps:$4 sm:$0xff]   ;;  %v10725_v19 = vld [vmem:[%s11870_s14 + $0xf8] ss:$20 sps:$4 sm:$0xff]  }
 0x47b   : > { %v10720_v33 = vld [vmem:[%s11870_s14 + $0xf4] ss:$20 sps:$4 sm:$0xff]   ;;  %v10722_v20 = vld [vmem:[%s11870_s14 + $0xfc] ss:$20 sps:$4 sm:$0xff]   ;;  %v10728_v21 = vld [vmem:[%s11870_s14 + $0x124] ss:$20 sps:$4 sm:$0xff]  }
 0x47c   : > { %5384 = vmatpush1.bf16.msra.mxu0 %v10700_v17  ;;  %5513 = vmatpush1.bf16.msra.mxu1 %v10701_v22  ;;  %v10726_v52 = vld [vmem:[%s11870_s14 + $0x11c] ss:$20 sps:$4 sm:$0xff]   ;;  %v10730_v59 = vld [vmem:[%s11870_s14 + $0x118] ss:$20 sps:$4 sm:$0xff]   ;;  %v10731_v35 = vld [vmem:[%s11870_s14 + $0x120] ss:$20 sps:$4 sm:$0xff]  }
 0x47d   : > { %5385 = vmatprep.subr.bf16.mxu0 %v10702_v23  ;;  %5514 = vmatprep.subr.bf16.mxu1 %v10704_v24  ;;  %v10732_v36 = vld [vmem:[%s11870_s14 + $0x144] ss:$20 sps:$4 sm:$0xff]   ;;  %v10734_v37 = vld [vmem:[%s11870_s14 + $0x14c] ss:$20 sps:$4 sm:$0xff]   ;;  %v10737_v39 = vld [vmem:[%s11870_s14 + $0x148] ss:$20 sps:$4 sm:$0xff]  }
 0x47e   : > { %v10736_v38 = vld [vmem:[%s11870_s14 + $0x140] ss:$20 sps:$4 sm:$0xff]   ;;  %v10742_v42 = vld [vmem:[%s11870_s14 + $0x168] ss:$20 sps:$4 sm:$0xff]   ;;  %v10743_v14 = vld [vmem:[%s11870_s14 + $0x170] ss:$20 sps:$4 sm:$0xff]  }
 0x47f   : > { %v10738_v40 = vld [vmem:[%s11870_s14 + $0x16c] ss:$20 sps:$4 sm:$0xff]   ;;  %v10740_v41 = vld [vmem:[%s11870_s14 + $0x174] ss:$20 sps:$4 sm:$0xff]   ;;  %v10746_v45 = vld [vmem:[%s11870_s14 + $0x19c] ss:$20 sps:$4 sm:$0xff]  }
 0x480   : > { %5386 = vmatpush1.bf16.msra.mxu0 %v10706_v25  ;;  %5515 = vmatpush1.bf16.msra.mxu1 %v10707_v26  ;;  %v10744_v44 = vld [vmem:[%s11870_s14 + $0x194] ss:$20 sps:$4 sm:$0xff]   ;;  %v10748_v15 = vld [vmem:[%s11870_s14 + $0x190] ss:$20 sps:$4 sm:$0xff]   ;;  %v10749_v46 = vld [vmem:[%s11870_s14 + $0x198] ss:$20 sps:$4 sm:$0xff]  }
 0x481   : > { %5387 = vmatprep.subr.bf16.mxu0 %v10708_v28  ;;  %5516 = vmatprep.subr.bf16.mxu1 %v10710_v9  ;;  %v10750_v47 = vld [vmem:[%s11870_s14 + $0x1bc] ss:$20 sps:$4 sm:$0xff]   ;;  %v10752_v48 = vld [vmem:[%s11870_s14 + $0x1c4] ss:$20 sps:$4 sm:$0xff]   ;;  %v10755_v51 = vld [vmem:[%s11870_s14 + $0x1c0] ss:$20 sps:$4 sm:$0xff]  }
 0x482   : > { %v12452_v49 = vld [vmem:[#allocation2 + $0x8] sm:$0xff]  ;;  %v10764_v61 = vld [vmem:[%s11870_s14 + $0x214] ss:$20 sps:$4 sm:$0xff]   ;;  %v10767_v62 = vld [vmem:[%s11870_s14 + $0x210] ss:$20 sps:$4 sm:$0xff]   ;;  %s8841_s28 = smul.u32 10, %s11632_s16 }
 0x483   : > { %v10754_v50 = vld [vmem:[%s11870_s14 + $0x1b8] ss:$20 sps:$4 sm:$0xff]   ;;  %5411 = vmatprep.mubr.bf16.mxu0 %v12452_v49  ;;  %5540 = vmatprep.mubr.bf16.mxu1 %v12452_v49  ;;  %v10760_v55 = vld [vmem:[%s11870_s14 + $0x1e0] ss:$20 sps:$4 sm:$0xff]   ;;  %v10761_v57 = vld [vmem:[%s11870_s14 + $0x1e8] ss:$20 sps:$4 sm:$0xff]  }
 0x484   : > { %5388 = vmatpush1.bf16.msra.mxu0 %v10712_v29  ;;  %5517 = vmatpush1.bf16.msra.mxu1 %v10713_v30  ;;  %v10756_v53 = vld [vmem:[%s11870_s14 + $0x1e4] ss:$20 sps:$4 sm:$0xff]   ;;  %v10758_v54 = vld [vmem:[%s11870_s14 + $0x1ec] ss:$20 sps:$4 sm:$0xff]   ;;  %v10766_v43 = vld [vmem:[%s11870_s14 + $0x208] ss:$20 sps:$4 sm:$0xff]  }
 0x485   : > { %5389 = vmatprep.subr.bf16.mxu0 %v10714_v58  ;;  %5518 = vmatprep.subr.bf16.mxu1 %v10716_v31  ;;  %v10762_v60 = vld [vmem:[%s11870_s14 + $0x20c] ss:$20 sps:$4 sm:$0xff]   ;;  %v10768_v63 = vld [vmem:[%s11870_s14 + $0x234] ss:$20 sps:$4 sm:$0xff]   ;;  %v10770_v13 = vld [vmem:[%s11870_s14 + $0x23c] ss:$20 sps:$4 sm:$0xff]  }
 0x486   : > { %v10772_v27 = vld [vmem:[%s11870_s14 + $0x230] ss:$20 sps:$4 sm:$0xff]   ;;  %v10773_v56 = vld [vmem:[%s11870_s14 + $0x238] ss:$20 sps:$4 sm:$0xff]   ;;  %v10779_v4 = vld [vmem:[%s11870_s14 + $0x260] ss:$20 sps:$4 sm:$0xff]  }
 0x487   : > { %v10774_v1 = vld [vmem:[%s11870_s14 + $0x25c] ss:$20 sps:$4 sm:$0xff]   ;;  %v10776_v2 = vld [vmem:[%s11870_s14 + $0x264] ss:$20 sps:$4 sm:$0xff]   ;;  %v10785_v12 = vld [vmem:[%s11870_s14 + $0x28c] ss:$20 sps:$4 sm:$0xff]  }
 0x488   : > { %5390 = vmatpush1.bf16.msra.mxu0 %v10718_v32  ;;  %5519 = vmatpush1.bf16.msra.mxu1 %v10719_v18  ;;  %v10778_v0 = vld [vmem:[%s11870_s14 + $0x258] ss:$20 sps:$4 sm:$0xff]   ;;  %v10780_v5 = vld [vmem:[%s11870_s14 + $0x280] ss:$20 sps:$4 sm:$0xff]   ;;  %v10783_v6 = vld [vmem:[%s11870_s14 + $0x288] ss:$20 sps:$4 sm:$0xff]  }
 0x489   : > { %5391 = vmatprep.subr.bf16.mxu0 %v10720_v33  ;;  %5520 = vmatprep.subr.bf16.mxu1 %v10722_v20  ;;  %v10782_v11 = vld [vmem:[%s11870_s14 + $0x284] ss:$20 sps:$4 sm:$0xff]   ;;  %v10788_v3 = vld [vmem:[%s11870_s14 + $0x2ac] ss:$20 sps:$4 sm:$0xff]   ;;  %v10791_v8 = vld [vmem:[%s11870_s14 + $0x2b4] ss:$20 sps:$4 sm:$0xff]  }
 0x48a   : > { %v12478_v7 = vld [vmem:[#allocation2] sm:$0xff]  ;;  %v10786_v10 = vld [vmem:[%s11870_s14 + $0x2a8] ss:$20 sps:$4 sm:$0xff]   ;;  %v10809_v30 = vld [vmem:[%s11870_s14 + $0x32c] ss:$20 sps:$4 sm:$0xff]   ;;  %s12835_s18 = scalar_lea.vmem [#allocation11], %s8841_s28 }
 0x48b   : > { %v10789_v16 = vld [vmem:[%s11870_s14 + $0x2b0] ss:$20 sps:$4 sm:$0xff]   ;;  %v10794_v17 = vld [vmem:[%s11870_s14 + $0x2d4] ss:$20 sps:$4 sm:$0xff]   ;;  %v10795_v24 = vld [vmem:[%s11870_s14 + $0x2d8] ss:$20 sps:$4 sm:$0xff]  }
 0x48c   : > { %5392 = vmatpush1.bf16.msra.mxu0 %v10724_v34  ;;  %5521 = vmatpush1.bf16.msra.mxu1 %v10725_v19  ;;  %v10797_v22 = vld [vmem:[%s11870_s14 + $0x2dc] ss:$20 sps:$4 sm:$0xff]   ;;  %v10803_v26 = vld [vmem:[%s11870_s14 + $0x304] ss:$20 sps:$4 sm:$0xff]   ;;  %v10801_v9 = vld [vmem:[%s11870_s14 + $0x300] ss:$20 sps:$4 sm:$0xff]  }
 0x48d   : > { %5393 = vmatprep.subr.bf16.mxu0 %v10726_v52  ;;  %5522 = vmatprep.subr.bf16.mxu1 %v10728_v21  ;;  %v10792_v23 = vld [vmem:[%s11870_s14 + $0x2d0] ss:$20 sps:$4 sm:$0xff]   ;;  %v10798_v28 = vld [vmem:[%s11870_s14 + $0x2f8] ss:$20 sps:$4 sm:$0xff]   ;;  %v10804_v58 = vld [vmem:[%s11870_s14 + $0x320] ss:$20 sps:$4 sm:$0xff]  }
 0x48e   : > { %v10800_v25 = vld [vmem:[%s11870_s14 + $0x2fc] ss:$20 sps:$4 sm:$0xff]   ;;  %v10806_v29 = vld [vmem:[%s11870_s14 + $0x324] ss:$20 sps:$4 sm:$0xff]   ;;  %v10812_v32 = vld [vmem:[%s11870_s14 + $0x34c] ss:$20 sps:$4 sm:$0xff]  }
 0x48f   : > { %v10807_v31 = vld [vmem:[%s11870_s14 + $0x328] ss:$20 sps:$4 sm:$0xff]   ;;  %v10813_v20 = vld [vmem:[%s11870_s14 + $0x350] ss:$20 sps:$4 sm:$0xff]  }
 0x490   : > { %5394 = vmatpush1.bf16.msra.mxu0 %v10730_v59  ;;  %5523 = vmatpush1.bf16.msra.mxu1 %v10731_v35  ;;  %v10815_v18 = vld [vmem:[%s11870_s14 + $0x354] ss:$20 sps:$4 sm:$0xff]   ;;  %v10821_v19 = vld [vmem:[%s11870_s14 + $0x37c] ss:$20 sps:$4 sm:$0xff]   ;;  %v10819_v59 = vld [vmem:[%s11870_s14 + $0x378] ss:$20 sps:$4 sm:$0xff]  }
 0x491   : > { %5395 = vmatprep.subr.bf16.mxu0 %v10732_v36  ;;  %5524 = vmatprep.subr.bf16.mxu1 %v10734_v37  ;;  %v10810_v33 = vld [vmem:[%s11870_s14 + $0x348] ss:$20 sps:$4 sm:$0xff]   ;;  %v10816_v21 = vld [vmem:[%s11870_s14 + $0x370] ss:$20 sps:$4 sm:$0xff]   ;;  %v10822_v37 = vld [vmem:[%s11870_s14 + $0x398] ss:$20 sps:$4 sm:$0xff]  }
 0x492   : > { %v10818_v34 = vld [vmem:[%s11870_s14 + $0x374] ss:$20 sps:$4 sm:$0xff]   ;;  %v10824_v35 = vld [vmem:[%s11870_s14 + $0x39c] ss:$20 sps:$4 sm:$0xff]   ;;  %v10827_v36 = vld [vmem:[%s11870_s14 + $0x3a4] ss:$20 sps:$4 sm:$0xff]  }
 0x493   : > { %v12504_v52 = vld [vmem:[#allocation2 + $0x18] sm:$0xff] }
 0x494   : > { %5396 = vmatpush1.bf16.msra.mxu0 %v10736_v38  ;;  %5525 = vmatpush1.bf16.msra.mxu1 %v10737_v39  ;;  %v10825_v38 = vld [vmem:[%s11870_s14 + $0x3a0] ss:$20 sps:$4 sm:$0xff]   ;;  %v10830_v39 = vld [vmem:[%s11870_s14 + $0x3c4] ss:$20 sps:$4 sm:$0xff]  }
 0x495   : > { %5397 = vmatprep.subr.bf16.mxu0 %v10738_v40  ;;  %5526 = vmatprep.subr.bf16.mxu1 %v10740_v41  ;;  %v10833_v40 = vld [vmem:[%s11870_s14 + $0x3cc] ss:$20 sps:$4 sm:$0xff]  }
 0x496   : > { %v10828_v41 = vld [vmem:[%s11870_s14 + $0x3c0] ss:$20 sps:$4 sm:$0xff]  }
 0x498   : > { %5398 = vmatpush1.bf16.msra.mxu0 %v10742_v42  ;;  %5527 = vmatpush1.bf16.msra.mxu1 %v10743_v14  ;;  %v10831_v42 = vld [vmem:[%s11870_s14 + $0x3c8] ss:$20 sps:$4 sm:$0xff]   ;;  %v10836_v14 = vld [vmem:[%s11870_s14 + $0x3ec] ss:$20 sps:$4 sm:$0xff]  }
 0x499   : > { %5399 = vmatprep.subr.bf16.mxu0 %v10744_v44  ;;  %5528 = vmatprep.subr.bf16.mxu1 %v10746_v45  ;;  %v10839_v44 = vld [vmem:[%s11870_s14 + $0x3f4] ss:$20 sps:$4 sm:$0xff]  }
 0x49a   : > { %v10834_v45 = vld [vmem:[%s11870_s14 + $0x3e8] ss:$20 sps:$4 sm:$0xff]  }
 0x49c   : > { %5400 = vmatpush1.bf16.msra.mxu0 %v10748_v15  ;;  %5529 = vmatpush1.bf16.msra.mxu1 %v10749_v46  ;;  %v10837_v15 = vld [vmem:[%s11870_s14 + $0x3f0] ss:$20 sps:$4 sm:$0xff]   ;;  %v10842_v46 = vld [vmem:[%s11870_s14 + $0x414] ss:$20 sps:$4 sm:$0xff]  }
 0x49d   : > { %5401 = vmatprep.subr.bf16.mxu0 %v10750_v47  ;;  %5530 = vmatprep.subr.bf16.mxu1 %v10752_v48  ;;  %v10845_v47 = vld [vmem:[%s11870_s14 + $0x41c] ss:$20 sps:$4 sm:$0xff]  }
 0x49e   : > { %v10840_v48 = vld [vmem:[%s11870_s14 + $0x410] ss:$20 sps:$4 sm:$0xff]  }
 0x4a0   : > { %5402 = vmatpush1.bf16.msra.mxu0 %v10754_v50  ;;  %5531 = vmatpush1.bf16.msra.mxu1 %v10755_v51  ;;  %v10843_v50 = vld [vmem:[%s11870_s14 + $0x418] ss:$20 sps:$4 sm:$0xff]   ;;  %v10848_v51 = vld [vmem:[%s11870_s14 + $0x43c] ss:$20 sps:$4 sm:$0xff]  }
 0x4a1   : > { %5403 = vmatprep.subr.bf16.mxu0 %v10756_v53  ;;  %5532 = vmatprep.subr.bf16.mxu1 %v10758_v54  ;;  %v10851_v53 = vld [vmem:[%s11870_s14 + $0x444] ss:$20 sps:$4 sm:$0xff]  }
 0x4a2   : > { %v10846_v54 = vld [vmem:[%s11870_s14 + $0x438] ss:$20 sps:$4 sm:$0xff]  }
 0x4a4   : > { %5404 = vmatpush1.bf16.msra.mxu0 %v10760_v55  ;;  %5533 = vmatpush1.bf16.msra.mxu1 %v10761_v57  ;;  %v10849_v55 = vld [vmem:[%s11870_s14 + $0x440] ss:$20 sps:$4 sm:$0xff]   ;;  %v10854_v57 = vld [vmem:[%s11870_s14 + $0x464] ss:$20 sps:$4 sm:$0xff]  }
 0x4a5   : > { %5405 = vmatprep.subr.bf16.mxu0 %v10762_v60  ;;  %5534 = vmatprep.subr.bf16.mxu1 %v10764_v61  ;;  %v10857_v60 = vld [vmem:[%s11870_s14 + $0x46c] ss:$20 sps:$4 sm:$0xff]  }
 0x4a6   : > { %v10852_v61 = vld [vmem:[%s11870_s14 + $0x460] ss:$20 sps:$4 sm:$0xff]  }
 0x4a8   : > { %5406 = vmatpush1.bf16.msra.mxu0 %v10766_v43  ;;  %5535 = vmatpush1.bf16.msra.mxu1 %v10767_v62  ;;  %v10855_v43 = vld [vmem:[%s11870_s14 + $0x468] ss:$20 sps:$4 sm:$0xff]   ;;  %v10860_v62 = vld [vmem:[%s11870_s14 + $0x48c] ss:$20 sps:$4 sm:$0xff]  }
 0x4a9   : > { %5407 = vmatprep.subr.bf16.mxu0 %v10768_v63  ;;  %5536 = vmatprep.subr.bf16.mxu1 %v10770_v13  ;;  %v10863_v63 = vld [vmem:[%s11870_s14 + $0x494] ss:$20 sps:$4 sm:$0xff]  }
 0x4aa   : > { %v10858_v13 = vld [vmem:[%s11870_s14 + $0x488] ss:$20 sps:$4 sm:$0xff]  }
 0x4ac   : > { %5408 = vmatpush1.bf16.msra.mxu0 %v10772_v27  ;;  %5537 = vmatpush1.bf16.msra.mxu1 %v10773_v56  ;;  %v10861_v27 = vld [vmem:[%s11870_s14 + $0x490] ss:$20 sps:$4 sm:$0xff]   ;;  %v10866_v56 = vld [vmem:[%s11870_s14 + $0x4b4] ss:$20 sps:$4 sm:$0xff]  }
 0x4ad   : > { %5409 = vmatprep.subr.bf16.mxu0 %v10774_v1  ;;  %5538 = vmatprep.subr.bf16.mxu1 %v10776_v2  ;;  %v10869_v1 = vld [vmem:[%s11870_s14 + $0x4bc] ss:$20 sps:$4 sm:$0xff]  }
 0x4ae   : > { %v10864_v2 = vld [vmem:[%s11870_s14 + $0x4b0] ss:$20 sps:$4 sm:$0xff]  }
 0x4b0   : > { %5410 = vmatpush1.bf16.msra.mxu0 %v10778_v0  ;;  %5539 = vmatpush1.bf16.msra.mxu1 %v10779_v4  ;;  %v10867_v0 = vld [vmem:[%s11870_s14 + $0x4b8] ss:$20 sps:$4 sm:$0xff]   ;;  %v10872_v4 = vld [vmem:[%s11870_s14 + $0x4dc] ss:$20 sps:$4 sm:$0xff]  }
 0x4b1   : > { %5422 = vmatprep.subr.bf16.mxu0 %v10782_v11  ;;  %5551 = vmatprep.subr.bf16.mxu1 %v10785_v12  ;;  %v10875_v11 = vld [vmem:[%s11870_s14 + $0x4e4] ss:$20 sps:$4 sm:$0xff]  }
 0x4b2   : > { %v10870_v12 = vld [vmem:[%s11870_s14 + $0x4d8] ss:$20 sps:$4 sm:$0xff]  }
 0x4b3   : > { %5412 = vmatmul.mubr.bf16.vlgmr.msra.gmra.mrb[0].mxu0 %v12478_v7  ;;  %5541 = vmatmul.mubr.bf16.vlgmr.msra.gmra.mrb[0].mxu1 %v12478_v7 }
 0x4b4   : > { %5423 = vmatpush1.bf16.msra.mxu0 %v10780_v5  ;;  %5552 = vmatpush1.bf16.msra.mxu1 %v10783_v6  ;;  %v10873_v5 = vld [vmem:[%s11870_s14 + $0x4e0] ss:$20 sps:$4 sm:$0xff]   ;;  %v10878_v6 = vld [vmem:[%s11870_s14 + $0x504] ss:$20 sps:$4 sm:$0xff]  }
 0x4b5   : > { %5424 = vmatprep.subr.bf16.mxu0 %v10788_v3  ;;  %5553 = vmatprep.subr.bf16.mxu1 %v10791_v8  ;;  %v10881_v3 = vld [vmem:[%s11870_s14 + $0x50c] ss:$20 sps:$4 sm:$0xff]  }
 0x4b6   : > { %5454 = vmatprep.mubr.bf16.mxu0 %v12504_v52  ;;  %5583 = vmatprep.mubr.bf16.mxu1 %v12504_v52  ;;  %v10876_v8 = vld [vmem:[%s11870_s14 + $0x500] ss:$20 sps:$4 sm:$0xff]  }
 0x4b8   : > { %5425 = vmatpush1.bf16.msra.mxu0 %v10786_v10  ;;  %5554 = vmatpush1.bf16.msra.mxu1 %v10789_v16  ;;  %v10879_v10 = vld [vmem:[%s11870_s14 + $0x508] ss:$20 sps:$4 sm:$0xff]  }
 0x4b9   : > { %5426 = vmatprep.subr.bf16.mxu0 %v10794_v17  ;;  %5555 = vmatprep.subr.bf16.mxu1 %v10797_v22  ;;  %v12550_v16 = vld [vmem:[#allocation2 + $0x10] sm:$0xff] }
 0x4ba   : > { %v10884_v17 = vld [vmem:[%s11870_s14 + $0x52c] ss:$20 sps:$4 sm:$0xff]   ;;  %v10887_v22 = vld [vmem:[%s11870_s14 + $0x534] ss:$20 sps:$4 sm:$0xff]  }
 0x4bc   : > { %5427 = vmatpush1.bf16.msra.mxu0 %v10792_v23  ;;  %5556 = vmatpush1.bf16.msra.mxu1 %v10795_v24  ;;  %v10882_v23 = vld [vmem:[%s11870_s14 + $0x528] ss:$20 sps:$4 sm:$0xff]   ;;  %v10885_v24 = vld [vmem:[%s11870_s14 + $0x530] ss:$20 sps:$4 sm:$0xff]  }
 0x4bd   : > { %5428 = vmatprep.subr.bf16.mxu0 %v10800_v25  ;;  %5557 = vmatprep.subr.bf16.mxu1 %v10803_v26  ;;  %v10890_v25 = vld [vmem:[%s11870_s14 + $0x554] ss:$20 sps:$4 sm:$0xff]   ;;  %v10893_v26 = vld [vmem:[%s11870_s14 + $0x55c] ss:$20 sps:$4 sm:$0xff]  }
 0x4c0   : > { %5429 = vmatpush1.bf16.msra.mxu0 %v10798_v28  ;;  %5558 = vmatpush1.bf16.msra.mxu1 %v10801_v9  ;;  %v10888_v28 = vld [vmem:[%s11870_s14 + $0x550] ss:$20 sps:$4 sm:$0xff]   ;;  %v11552_v9 = vmov 0  }
 0x4c1   : > { %5430 = vmatprep.subr.bf16.mxu0 %v10806_v29  ;;  %5559 = vmatprep.subr.bf16.mxu1 %v10809_v30  ;;  %v10891_v29 = vld [vmem:[%s11870_s14 + $0x558] ss:$20 sps:$4 sm:$0xff]   ;;  %v10896_v30 = vld [vmem:[%s11870_s14 + $0x57c] ss:$20 sps:$4 sm:$0xff]  }
 0x4c4   : > { %5431 = vmatpush1.bf16.msra.mxu0 %v10804_v58  ;;  %5560 = vmatpush1.bf16.msra.mxu1 %v10807_v31  ;;  %v10899_v58 = vld [vmem:[%s11870_s14 + $0x584] ss:$20 sps:$4 sm:$0xff]  }
 0x4c5   : > { %5432 = vmatprep.subr.bf16.mxu0 %v10812_v32  ;;  %5561 = vmatprep.subr.bf16.mxu1 %v10815_v18  ;;  %v10894_v31 = vld [vmem:[%s11870_s14 + $0x578] ss:$20 sps:$4 sm:$0xff]   ;;  %v10897_v32 = vld [vmem:[%s11870_s14 + $0x580] ss:$20 sps:$4 sm:$0xff]  }
 0x4c6   : > { %v10902_v18 = vld [vmem:[%s11870_s14 + $0x5a4] ss:$20 sps:$4 sm:$0xff]  }
 0x4c8   : > { %5433 = vmatpush1.bf16.msra.mxu0 %v10810_v33  ;;  %5562 = vmatpush1.bf16.msra.mxu1 %v10813_v20  ;;  %v10905_v33 = vld [vmem:[%s11870_s14 + $0x5ac] ss:$20 sps:$4 sm:$0xff]  }
 0x4c9   : > { %5434 = vmatprep.subr.bf16.mxu0 %v10818_v34  ;;  %5563 = vmatprep.subr.bf16.mxu1 %v10821_v19  ;;  %v10900_v20 = vld [vmem:[%s11870_s14 + $0x5a0] ss:$20 sps:$4 sm:$0xff]   ;;  %v10903_v34 = vld [vmem:[%s11870_s14 + $0x5a8] ss:$20 sps:$4 sm:$0xff]  }
 0x4ca   : > { %v10908_v19 = vld [vmem:[%s11870_s14 + $0x5cc] ss:$20 sps:$4 sm:$0xff]  }
 0x4cc   : > { %5435 = vmatpush1.bf16.msra.mxu0 %v10816_v21  ;;  %5564 = vmatpush1.bf16.msra.mxu1 %v10819_v59  ;;  %v10911_v21 = vld [vmem:[%s11870_s14 + $0x5d4] ss:$20 sps:$4 sm:$0xff]  }
 0x4cd   : > { %5436 = vmatprep.subr.bf16.mxu0 %v10824_v35  ;;  %5565 = vmatprep.subr.bf16.mxu1 %v10827_v36  ;;  %v10906_v59 = vld [vmem:[%s11870_s14 + $0x5c8] ss:$20 sps:$4 sm:$0xff]   ;;  %v10909_v35 = vld [vmem:[%s11870_s14 + $0x5d0] ss:$20 sps:$4 sm:$0xff]  }
 0x4ce   : > { %v10914_v36 = vld [vmem:[%s11870_s14 + $0x5f4] ss:$20 sps:$4 sm:$0xff]  }
 0x4d0   : > { %5437 = vmatpush1.bf16.msra.mxu0 %v10822_v37  ;;  %5566 = vmatpush1.bf16.msra.mxu1 %v10825_v38  ;;  %v10917_v37 = vld [vmem:[%s11870_s14 + $0x5fc] ss:$20 sps:$4 sm:$0xff]  }
 0x4d1   : > { %5438 = vmatprep.subr.bf16.mxu0 %v10830_v39  ;;  %5567 = vmatprep.subr.bf16.mxu1 %v10833_v40  ;;  %v10912_v38 = vld [vmem:[%s11870_s14 + $0x5f0] ss:$20 sps:$4 sm:$0xff]   ;;  %v10915_v39 = vld [vmem:[%s11870_s14 + $0x5f8] ss:$20 sps:$4 sm:$0xff]  }
 0x4d2   : > { %v10920_v40 = vld [vmem:[%s11870_s14 + $0x61c] ss:$20 sps:$4 sm:$0xff]  }
 0x4d4   : > { %5439 = vmatpush1.bf16.msra.mxu0 %v10828_v41  ;;  %5568 = vmatpush1.bf16.msra.mxu1 %v10831_v42  ;;  %v10923_v41 = vld [vmem:[%s11870_s14 + $0x624] ss:$20 sps:$4 sm:$0xff]  }
 0x4d5   : > { %5440 = vmatprep.subr.bf16.mxu0 %v10836_v14  ;;  %5569 = vmatprep.subr.bf16.mxu1 %v10839_v44  ;;  %v10918_v42 = vld [vmem:[%s11870_s14 + $0x618] ss:$20 sps:$4 sm:$0xff]   ;;  %v10921_v14 = vld [vmem:[%s11870_s14 + $0x620] ss:$20 sps:$4 sm:$0xff]   ;;  %v10924_v44 = vld [vmem:[%s11870_s14 + $0x150] ss:$20 sps:$4 sm:$0xff]  }
 0x4d8   : > { %5441 = vmatpush1.bf16.msra.mxu0 %v10834_v45  ;;  %5570 = vmatpush1.bf16.msra.mxu1 %v10837_v15  ;;  %v10925_v45 = vld [vmem:[%s11870_s14 + $0x3d0] ss:$20 sps:$4 sm:$0xff]  }
 0x4d9   : > { %5442 = vmatprep.subr.bf16.mxu0 %v10842_v46  ;;  %5571 = vmatprep.subr.bf16.mxu1 %v10845_v47  ;;  %v12586_v15 = vld [vmem:[#allocation2 + $0x20] sm:$0xff] }
 0x4da   : > { %v10926_v46 = vld [vmem:[%s11870_s14 + $0x10] ss:$20 sps:$4 sm:$0xff]  }
 0x4db   : > { %v10927_v47 = vld [vmem:[%s11870_s14 + $0x290] ss:$20 sps:$4 sm:$0xff]  }
 0x4dc   : > { %5443 = vmatpush1.bf16.msra.mxu0 %v10840_v48  ;;  %5572 = vmatpush1.bf16.msra.mxu1 %v10843_v50  ;;  %v10928_v48 = vld [vmem:[%s11870_s14 + $0x178] ss:$20 sps:$4 sm:$0xff]  }
 0x4dd   : > { %5444 = vmatprep.subr.bf16.mxu0 %v10848_v51  ;;  %5573 = vmatprep.subr.bf16.mxu1 %v10851_v53  ;;  %v10929_v50 = vld [vmem:[%s11870_s14 + $0x3f8] ss:$20 sps:$4 sm:$0xff]  }
 0x4de   : > { %v10930_v51 = vld [vmem:[%s11870_s14 + $0x38] ss:$20 sps:$4 sm:$0xff]  }
 0x4df   : > { %v10931_v53 = vld [vmem:[%s11870_s14 + $0x2b8] ss:$20 sps:$4 sm:$0xff]  }
 0x4e0   : > { %5445 = vmatpush1.bf16.msra.mxu0 %v10846_v54  ;;  %5574 = vmatpush1.bf16.msra.mxu1 %v10849_v55  ;;  %v10932_v54 = vld [vmem:[%s11870_s14 + $0x1a0] ss:$20 sps:$4 sm:$0xff]  }
 0x4e1   : > { %5446 = vmatprep.subr.bf16.mxu0 %v10854_v57  ;;  %5575 = vmatprep.subr.bf16.mxu1 %v10857_v60  ;;  %v10933_v55 = vld [vmem:[%s11870_s14 + $0x420] ss:$20 sps:$4 sm:$0xff]  }
 0x4e2   : > { %v10934_v57 = vld [vmem:[%s11870_s14 + $0x60] ss:$20 sps:$4 sm:$0xff]  }
 0x4e3   : > { %v10935_v60 = vld [vmem:[%s11870_s14 + $0x2e0] ss:$20 sps:$4 sm:$0xff]  }
 0x4e4   : > { %5447 = vmatpush1.bf16.msra.mxu0 %v10852_v61  ;;  %5576 = vmatpush1.bf16.msra.mxu1 %v10855_v43  ;;  %v10936_v61 = vld [vmem:[%s11870_s14 + $0x1c8] ss:$20 sps:$4 sm:$0xff]  }
 0x4e5   : > { %5448 = vmatprep.subr.bf16.mxu0 %v10860_v62  ;;  %5577 = vmatprep.subr.bf16.mxu1 %v10863_v63  ;;  %v10937_v43 = vld [vmem:[%s11870_s14 + $0x448] ss:$20 sps:$4 sm:$0xff]   ;;  %v10941_v63 = vld [vmem:[%s11870_s14 + $0x470] ss:$20 sps:$4 sm:$0xff]  }
 0x4e6   : > { %v10938_v62 = vld [vmem:[%s11870_s14 + $0x88] ss:$20 sps:$4 sm:$0xff]  }
 0x4e8   : > { %5449 = vmatpush1.bf16.msra.mxu0 %v10858_v13  ;;  %5578 = vmatpush1.bf16.msra.mxu1 %v10861_v27  ;;  %v10942_v13 = vld [vmem:[%s11870_s14 + $0xb0] ss:$20 sps:$4 sm:$0xff]  }
 0x4e9   : > { %5450 = vmatprep.subr.bf16.mxu0 %v10866_v56  ;;  %5579 = vmatprep.subr.bf16.mxu1 %v10869_v1  ;;  %v10943_v27 = vld [vmem:[%s11870_s14 + $0x330] ss:$20 sps:$4 sm:$0xff]   ;;  %v10944_v56 = vld [vmem:[%s11870_s14 + $0x218] ss:$20 sps:$4 sm:$0xff]  }
 0x4ea   : > { %v10945_v1 = vld [vmem:[%s11870_s14 + $0x498] ss:$20 sps:$4 sm:$0xff]  }
 0x4ec   : > { %5451 = vmatpush1.bf16.msra.mxu0 %v10864_v2  ;;  %5580 = vmatpush1.bf16.msra.mxu1 %v10867_v0  ;;  %v10946_v2 = vld [vmem:[%s11870_s14 + $0xd8] ss:$20 sps:$4 sm:$0xff]  }
 0x4ed   : > { %5452 = vmatprep.subr.bf16.mxu0 %v10872_v4  ;;  %5581 = vmatprep.subr.bf16.mxu1 %v10875_v11  ;;  %v10947_v0 = vld [vmem:[%s11870_s14 + $0x358] ss:$20 sps:$4 sm:$0xff]   ;;  %v10948_v4 = vld [vmem:[%s11870_s14 + $0x240] ss:$20 sps:$4 sm:$0xff]  }
 0x4ee   : > { %v10949_v11 = vld [vmem:[%s11870_s14 + $0x4c0] ss:$20 sps:$4 sm:$0xff]  }
 0x4f0   : > { %5453 = vmatpush1.bf16.msra.mxu0 %v10870_v12  ;;  %5582 = vmatpush1.bf16.msra.mxu1 %v10873_v5  ;;  %v10950_v12 = vld [vmem:[%s11870_s14 + $0x100] ss:$20 sps:$4 sm:$0xff]  }
 0x4f1   : > { %5465 = vmatprep.subr.bf16.mxu0 %v10878_v6  ;;  %5594 = vmatprep.subr.bf16.mxu1 %v10881_v3  ;;  %v10951_v5 = vld [vmem:[%s11870_s14 + $0x380] ss:$20 sps:$4 sm:$0xff]   ;;  %v10952_v6 = vld [vmem:[%s11870_s14 + $0x268] ss:$20 sps:$4 sm:$0xff]  }
 0x4f2   : > { %v10953_v3 = vld [vmem:[%s11870_s14 + $0x4e8] ss:$20 sps:$4 sm:$0xff]  }
 0x4f3   : > { %5455 = vmatmul.mubr.bf16.vlgmr.msra.gmra.mrb[0].mxu0 %v12550_v16  ;;  %5584 = vmatmul.mubr.bf16.vlgmr.msra.gmra.mrb[0].mxu1 %v12550_v16 }
 0x4f4   : > { %5466 = vmatpush1.bf16.msra.mxu0 %v10876_v8  ;;  %5595 = vmatpush1.bf16.msra.mxu1 %v10879_v10  ;;  %v10954_v8 = vld [vmem:[%s11870_s14 + $0x128] ss:$20 sps:$4 sm:$0xff]  }
 0x4f5   : > { %5467 = vmatprep.subr.bf16.mxu0 %v10884_v17  ;;  %5596 = vmatprep.subr.bf16.mxu1 %v10887_v22  ;;  %v10955_v10 = vld [vmem:[%s11870_s14 + $0x3a8] ss:$20 sps:$4 sm:$0xff]   ;;  %v10958_v17 = vld [vmem:[%s11870_s14 + $0x644] ss:$20 sps:$4 sm:$0xff]   ;;  %v10956_v22 = vld [vmem:[%s11870_s14 + $0x640] ss:$20 sps:$4 sm:$0xff]  }
 0x4f6   : > { %5497 = vmatprep.mubr.bf16.mxu0 %v11552_v9  ;;  %5626 = vmatprep.mubr.bf16.mxu1 %v11552_v9 }
 0x4f8   : > { %5468 = vmatpush1.bf16.msra.mxu0 %v10882_v23  ;;  %5597 = vmatpush1.bf16.msra.mxu1 %v10885_v24  ;;  %v10959_v23 = vld [vmem:[%s11870_s14 + $0x510] ss:$20 sps:$4 sm:$0xff]   ;;  %v11553_v24 = vmov 0.0  }
 0x4f9   : > { %5469 = vmatprep.subr.bf16.mxu0 %v10890_v25  ;;  %5598 = vmatprep.subr.bf16.mxu1 %v10893_v26  ;;  %v10962_v25 = vld [vmem:[%s11870_s14 + $0x66c] ss:$20 sps:$4 sm:$0xff]  }
 0x4fa   : > { %v12629_v26 = vld [vmem:[#allocation2 + $0x30] sm:$0xff] }
 0x4fc   : > { %5470 = vmatpush1.bf16.msra.mxu0 %v10888_v28  ;;  %5599 = vmatpush1.bf16.msra.mxu1 %v10891_v29  ;;  %v10960_v28 = vld [vmem:[%s11870_s14 + $0x668] ss:$20 sps:$4 sm:$0xff]   ;;  %v10963_v29 = vld [vmem:[%s11870_s14 + $0x538] ss:$20 sps:$4 sm:$0xff]  }
 0x4fd   : > { %5471 = vmatprep.subr.bf16.mxu0 %v10896_v30  ;;  %5600 = vmatprep.subr.bf16.mxu1 %v10899_v58  ;;  %v10966_v30 = vld [vmem:[%s11870_s14 + $0x694] ss:$20 sps:$4 sm:$0xff]   ;;  %v10970_v58 = vld [vmem:[%s11870_s14 + $0x6bc] ss:$20 sps:$4 sm:$0xff]  }
 0x500   : > { %5472 = vmatpush1.bf16.msra.mxu0 %v10894_v31  ;;  %5601 = vmatpush1.bf16.msra.mxu1 %v10897_v32  ;;  %v10968_v31 = vld [vmem:[%s11870_s14 + $0x6b8] ss:$20 sps:$4 sm:$0xff]   ;;  %v10971_v32 = vld [vmem:[%s11870_s14 + $0x588] ss:$20 sps:$4 sm:$0xff]  }
 0x501   : > { %5473 = vmatprep.subr.bf16.mxu0 %v10902_v18  ;;  %5602 = vmatprep.subr.bf16.mxu1 %v10905_v33  ;;  %v10974_v18 = vld [vmem:[%s11870_s14 + $0x6e4] ss:$20 sps:$4 sm:$0xff]   ;;  %v10972_v33 = vld [vmem:[%s11870_s14 + $0x6e0] ss:$20 sps:$4 sm:$0xff]  }
 0x504   : > { %5474 = vmatpush1.bf16.msra.mxu0 %v10900_v20  ;;  %5603 = vmatpush1.bf16.msra.mxu1 %v10903_v34  ;;  %v10975_v20 = vld [vmem:[%s11870_s14 + $0x5b0] ss:$20 sps:$4 sm:$0xff]   ;;  %v10978_v34 = vld [vmem:[%s11870_s14 + $0x70c] ss:$20 sps:$4 sm:$0xff]  }
 0x505   : > { %5475 = vmatprep.subr.bf16.mxu0 %v10908_v19  ;;  %5604 = vmatprep.subr.bf16.mxu1 %v10911_v21  ;;  %v10976_v19 = vld [vmem:[%s11870_s14 + $0x708] ss:$20 sps:$4 sm:$0xff]   ;;  %v10979_v21 = vld [vmem:[%s11870_s14 + $0x5d8] ss:$20 sps:$4 sm:$0xff]  }
 0x508   : > { %5476 = vmatpush1.bf16.msra.mxu0 %v10906_v59  ;;  %5605 = vmatpush1.bf16.msra.mxu1 %v10909_v35  ;;  %v10982_v59 = vld [vmem:[%s11870_s14 + $0x734] ss:$20 sps:$4 sm:$0xff]   ;;  %v10980_v35 = vld [vmem:[%s11870_s14 + $0x730] ss:$20 sps:$4 sm:$0xff]  }
 0x509   : > { %5477 = vmatprep.subr.bf16.mxu0 %v10914_v36  ;;  %5606 = vmatprep.subr.bf16.mxu1 %v10917_v37  ;;  %v10983_v36 = vld [vmem:[%s11870_s14 + $0x600] ss:$20 sps:$4 sm:$0xff]   ;;  %v10986_v37 = vld [vmem:[%s11870_s14 + $0x75c] ss:$20 sps:$4 sm:$0xff]  }
 0x50c   : > { %5478 = vmatpush1.bf16.msra.mxu0 %v10912_v38  ;;  %5607 = vmatpush1.bf16.msra.mxu1 %v10915_v39  ;;  %v10984_v38 = vld [vmem:[%s11870_s14 + $0x758] ss:$20 sps:$4 sm:$0xff]   ;;  %v10987_v39 = vld [vmem:[%s11870_s14 + $0x628] ss:$20 sps:$4 sm:$0xff]  }
 0x50d   : > { %5479 = vmatprep.subr.bf16.mxu0 %v10920_v40  ;;  %5608 = vmatprep.subr.bf16.mxu1 %v10923_v41  ;;  %v10990_v40 = vld [vmem:[%s11870_s14 + $0x784] ss:$20 sps:$4 sm:$0xff]   ;;  %v10993_v41 = vld [vmem:[%s11870_s14 + $0x64c] ss:$20 sps:$4 sm:$0xff]  }
 0x510   : > { %5480 = vmatpush1.bf16.msra.mxu0 %v10918_v42  ;;  %5609 = vmatpush1.bf16.msra.mxu1 %v10921_v14  ;;  %v10988_v42 = vld [vmem:[%s11870_s14 + $0x780] ss:$20 sps:$4 sm:$0xff]   ;;  %v10991_v14 = vld [vmem:[%s11870_s14 + $0x648] ss:$20 sps:$4 sm:$0xff]  }
 0x511   : > { %9638 = vmatprep.subr.bf16.mxu0 %v10924_v44  ;;  %9660 = vmatprep.subr.bf16.mxu1 %v10925_v45  ;;  %v10996_v44 = vld [vmem:[%s11870_s14 + $0x7ac] ss:$20 sps:$4 sm:$0xff]   ;;  %v10999_v45 = vld [vmem:[%s11870_s14 + $0x674] ss:$20 sps:$4 sm:$0xff]  }
 0x513   : > { %5498 = vmatmul.mubr.bf16.vlgmr.msra.gmra.mrb[0].mxu0 %v12586_v15  ;;  %5627 = vmatmul.mubr.bf16.vlgmr.msra.gmra.mrb[0].mxu1 %v12586_v15 }
 0x514   : > { %9639 = vmatpush3.bf16.msra.mxu0 %v10926_v46  ;;  %9661 = vmatpush3.bf16.msra.mxu1 %v10927_v47  ;;  %v10994_v46 = vld [vmem:[%s11870_s14 + $0x7a8] ss:$20 sps:$4 sm:$0xff]   ;;  %v10997_v47 = vld [vmem:[%s11870_s14 + $0x670] ss:$20 sps:$4 sm:$0xff]  }
 0x515   : > { %9640 = vmatprep.subr.bf16.mxu0 %v10928_v48  ;;  %9662 = vmatprep.subr.bf16.mxu1 %v10929_v50  ;;  %v11002_v48 = vld [vmem:[%s11870_s14 + $0x7d4] ss:$20 sps:$4 sm:$0xff]   ;;  %v11005_v50 = vld [vmem:[%s11870_s14 + $0x69c] ss:$20 sps:$4 sm:$0xff]  }
 0x516   : > { %5669 = vmatprep.mubr.bf16.mxu0 %v12452_v49  ;;  %5710 = vmatprep.mubr.bf16.mxu1 %v12504_v52  ;;  %v10939_v49 = vld [vmem:[%s11870_s14 + $0x308] ss:$20 sps:$4 sm:$0xff]   ;;  %v10940_v52 = vld [vmem:[%s11870_s14 + $0x1f0] ss:$20 sps:$4 sm:$0xff]  }
 0x518   : > { %9641 = vmatpush3.bf16.msra.mxu0 %v10930_v51  ;;  %9663 = vmatpush3.bf16.msra.mxu1 %v10931_v53  ;;  %v11000_v51 = vld [vmem:[%s11870_s14 + $0x7d0] ss:$20 sps:$4 sm:$0xff]  }
 0x519   : > { %9642 = vmatprep.subr.bf16.mxu0 %v10932_v54  ;;  %9664 = vmatprep.subr.bf16.mxu1 %v10933_v55  ;;  %v11008_v53 = vld [vmem:[%s11870_s14 + $0x7fc] ss:$20 sps:$4 sm:$0xff]   ;;  %v11011_v54 = vld [vmem:[%s11870_s14 + $0x6c4] ss:$20 sps:$4 sm:$0xff]  }
 0x51a   : > { %v11006_v55 = vld [vmem:[%s11870_s14 + $0x7f8] ss:$20 sps:$4 sm:$0xff]  }
 0x51c   : > { %9643 = vmatpush3.bf16.msra.mxu0 %v10934_v57  ;;  %9665 = vmatpush3.bf16.msra.mxu1 %v10935_v60  ;;  %v11009_v57 = vld [vmem:[%s11870_s14 + $0x6c0] ss:$20 sps:$4 sm:$0xff]   ;;  %v11014_v60 = vld [vmem:[%s11870_s14 + $0x824] ss:$20 sps:$4 sm:$0xff]  }
 0x51d   : > { %9644 = vmatprep.subr.bf16.mxu0 %v10936_v61  ;;  %9666 = vmatprep.subr.bf16.mxu1 %v10937_v43  ;;  %v11017_v61 = vld [vmem:[%s11870_s14 + $0x6ec] ss:$20 sps:$4 sm:$0xff]  }
 0x51e   : > { %v11012_v43 = vld [vmem:[%s11870_s14 + $0x820] ss:$20 sps:$4 sm:$0xff]  }
 0x520   : > { %9645 = vmatpush3.bf16.msra.mxu0 %v10938_v62  ;;  %9667 = vmatpush3.bf16.msra.mxu1 %v10939_v49  ;;  %v11015_v62 = vld [vmem:[%s11870_s14 + $0x6e8] ss:$20 sps:$4 sm:$0xff]   ;;  %v11020_v49 = vld [vmem:[%s11870_s14 + $0x84c] ss:$20 sps:$4 sm:$0xff]  }
 0x521   : > { %9646 = vmatprep.subr.bf16.mxu0 %v10940_v52  ;;  %9668 = vmatprep.subr.bf16.mxu1 %v10941_v63  ;;  %v11023_v52 = vld [vmem:[%s11870_s14 + $0x714] ss:$20 sps:$4 sm:$0xff]  }
 0x522   : > { %v11018_v63 = vld [vmem:[%s11870_s14 + $0x848] ss:$20 sps:$4 sm:$0xff]  }
 0x524   : > { %9647 = vmatpush3.bf16.msra.mxu0 %v10942_v13  ;;  %9669 = vmatpush3.bf16.msra.mxu1 %v10943_v27  ;;  %v11021_v13 = vld [vmem:[%s11870_s14 + $0x710] ss:$20 sps:$4 sm:$0xff]   ;;  %v11026_v27 = vld [vmem:[%s11870_s14 + $0x874] ss:$20 sps:$4 sm:$0xff]  }
 0x525   : > { %9648 = vmatprep.subr.bf16.mxu0 %v10944_v56  ;;  %9670 = vmatprep.subr.bf16.mxu1 %v10945_v1  ;;  %v11029_v56 = vld [vmem:[%s11870_s14 + $0x73c] ss:$20 sps:$4 sm:$0xff]  }
 0x526   : > { %v11024_v1 = vld [vmem:[%s11870_s14 + $0x870] ss:$20 sps:$4 sm:$0xff]  }
 0x528   : > { %9649 = vmatpush3.bf16.msra.mxu0 %v10946_v2  ;;  %9671 = vmatpush3.bf16.msra.mxu1 %v10947_v0  ;;  %v11027_v2 = vld [vmem:[%s11870_s14 + $0x738] ss:$20 sps:$4 sm:$0xff]   ;;  %v11032_v0 = vld [vmem:[%s11870_s14 + $0x89c] ss:$20 sps:$4 sm:$0xff]  }
 0x529   : > { %9650 = vmatprep.subr.bf16.mxu0 %v10948_v4  ;;  %9672 = vmatprep.subr.bf16.mxu1 %v10949_v11  ;;  %v11035_v4 = vld [vmem:[%s11870_s14 + $0x764] ss:$20 sps:$4 sm:$0xff]  }
 0x52a   : > { %v11030_v11 = vld [vmem:[%s11870_s14 + $0x898] ss:$20 sps:$4 sm:$0xff]  }
 0x52c   : > { %9651 = vmatpush3.bf16.msra.mxu0 %v10950_v12  ;;  %9673 = vmatpush3.bf16.msra.mxu1 %v10951_v5  ;;  %v11033_v12 = vld [vmem:[%s11870_s14 + $0x760] ss:$20 sps:$4 sm:$0xff]   ;;  %v11038_v5 = vld [vmem:[%s11870_s14 + $0x8c4] ss:$20 sps:$4 sm:$0xff]  }
 0x52d   : > { %9652 = vmatprep.subr.bf16.mxu0 %v10952_v6  ;;  %9674 = vmatprep.subr.bf16.mxu1 %v10953_v3  ;;  %v11041_v6 = vld [vmem:[%s11870_s14 + $0x78c] ss:$20 sps:$4 sm:$0xff]  }
 0x52e   : > { %v11036_v3 = vld [vmem:[%s11870_s14 + $0x8c0] ss:$20 sps:$4 sm:$0xff]  }
 0x530   : > { %9653 = vmatpush3.bf16.msra.mxu0 %v10954_v8  ;;  %9675 = vmatpush3.bf16.msra.mxu1 %v10955_v10  ;;  %v11039_v8 = vld [vmem:[%s11870_s14 + $0x788] ss:$20 sps:$4 sm:$0xff]  }
 0x531   : > { %9843 = vmatprep.subr.bf16.mxu0 %v11553_v24  ;;  %7097 = vmatprep.subr.bf16.mxu1 %v10958_v17  ;;  %v12699_v10 = vld [vmem:[#allocation2 + $0x28] sm:$0xff] }
 0x532   : > { %v11044_v17 = vld [vmem:[%s11870_s14 + $0x8ec] ss:$20 sps:$4 sm:$0xff]  }
 0x533   : > { %5670 = vmatmul.mubr.bf16.vlgmr.msra.gmra.mrb[4].mxu0 %v12478_v7  ;;  %5711 = vmatmul.mubr.bf16.vlgmr.msra.gmra.mrb[4].mxu1 %v12550_v16  ;;  %v10964_v7 = vld [vmem:[%s11870_s14 + $0x690] ss:$20 sps:$4 sm:$0xff]   ;;  %v10967_v16 = vld [vmem:[%s11870_s14 + $0x560] ss:$20 sps:$4 sm:$0xff]  }
 0x534   : > { %9844 = vmatpush3.bf16.msra.mxu0 %v10959_v23  ;;  %7098 = vmatpush1.bf16.msra.mxu1 %v10956_v22  ;;  %v11047_v22 = vld [vmem:[%s11870_s14 + $0x7b4] ss:$20 sps:$4 sm:$0xff]  }
 0x535   : > { %9845 = vmatprep.subr.bf16.mxu0 %v11553_v24  ;;  %7099 = vmatprep.subr.bf16.mxu1 %v10962_v25  ;;  %v12704_v23 = vld [vmem:[#allocation2 + $0x40] sm:$0xff]  ;;  %v11042_v25 = vld [vmem:[%s11870_s14 + $0x8e8] ss:$20 sps:$4 sm:$0xff]  }
 0x536   : > { %9859 = vmatprep.mubr.msk.bf16.mxu0 %vm11554_vm2, %v11553_v24  ;;  %7129 = vmatprep.mubr.bf16.mxu1 %v12629_v26 }
 0x538   : > { %9846 = vmatpush3.bf16.msra.mxu0 %v10963_v29  ;;  %7100 = vmatpush1.bf16.msra.mxu1 %v10960_v28  ;;  %v11045_v28 = vld [vmem:[%s11870_s14 + $0x7b0] ss:$20 sps:$4 sm:$0xff]   ;;  %v11050_v29 = vld [vmem:[%s11870_s14 + $0x914] ss:$20 sps:$4 sm:$0xff]  }
 0x539   : > { %9847 = vmatprep.subr.bf16.mxu0 %v11553_v24  ;;  %7101 = vmatprep.subr.bf16.mxu1 %v10966_v30  ;;  %v11053_v30 = vld [vmem:[%s11870_s14 + $0x7dc] ss:$20 sps:$4 sm:$0xff]  }
 0x53c   : > { %9848 = vmatpush3.bf16.msra.mxu0 %v10967_v16  ;;  %7102 = vmatpush1.bf16.msra.mxu1 %v10964_v7  ;;  %v11048_v7 = vld [vmem:[%s11870_s14 + $0x910] ss:$20 sps:$4 sm:$0xff]   ;;  %v11051_v16 = vld [vmem:[%s11870_s14 + $0x7d8] ss:$20 sps:$4 sm:$0xff]  }
 0x53d   : > { %9849 = vmatprep.subr.bf16.mxu0 %v11553_v24  ;;  %7103 = vmatprep.subr.bf16.mxu1 %v10970_v58  ;;  %v11056_v58 = vld [vmem:[%s11870_s14 + $0x93c] ss:$20 sps:$4 sm:$0xff]  }
 0x540   : > { %9850 = vmatpush3.bf16.msra.mxu0 %v10971_v32  ;;  %7104 = vmatpush1.bf16.msra.mxu1 %v10968_v31  ;;  %v11059_v31 = vld [vmem:[%s11870_s14 + $0x804] ss:$20 sps:$4 sm:$0xff]  }
 0x541   : > { %9851 = vmatprep.subr.bf16.mxu0 %v11553_v24  ;;  %7105 = vmatprep.subr.bf16.mxu1 %v10974_v18  ;;  %v11054_v32 = vld [vmem:[%s11870_s14 + $0x938] ss:$20 sps:$4 sm:$0xff]   ;;  %v11057_v18 = vld [vmem:[%s11870_s14 + $0x800] ss:$20 sps:$4 sm:$0xff]  }
 0x544   : > { %9852 = vmatpush3.bf16.msra.mxu0 %v10975_v20  ;;  %7106 = vmatpush1.bf16.msra.mxu1 %v10972_v33  ;;  %v11062_v33 = vld [vmem:[%s11870_s14 + $0x964] ss:$20 sps:$4 sm:$0xff]   ;;  %v11065_v20 = vld [vmem:[%s11870_s14 + $0x82c] ss:$20 sps:$4 sm:$0xff]  }
 0x545   : > { %9853 = vmatprep.subr.bf16.mxu0 %v11553_v24  ;;  %7107 = vmatprep.subr.bf16.mxu1 %v10978_v34  ;;  %v11060_v34 = vld [vmem:[%s11870_s14 + $0x960] ss:$20 sps:$4 sm:$0xff]  }
 0x548   : > { %9854 = vmatpush3.bf16.msra.mxu0 %v10979_v21  ;;  %7108 = vmatpush1.bf16.msra.mxu1 %v10976_v19  ;;  %v11063_v19 = vld [vmem:[%s11870_s14 + $0x828] ss:$20 sps:$4 sm:$0xff]   ;;  %v11068_v21 = vld [vmem:[%s11870_s14 + $0x98c] ss:$20 sps:$4 sm:$0xff]  }
 0x549   : > { %9855 = vmatprep.subr.bf16.mxu0 %v11553_v24  ;;  %7109 = vmatprep.subr.bf16.mxu1 %v10982_v59  ;;  %v11071_v59 = vld [vmem:[%s11870_s14 + $0x854] ss:$20 sps:$4 sm:$0xff]  }
 0x54c   : > { %9856 = vmatpush3.bf16.msra.mxu0 %v10983_v36  ;;  %7110 = vmatpush1.bf16.msra.mxu1 %v10980_v35  ;;  %v11066_v35 = vld [vmem:[%s11870_s14 + $0x988] ss:$20 sps:$4 sm:$0xff]   ;;  %v11069_v36 = vld [vmem:[%s11870_s14 + $0x850] ss:$20 sps:$4 sm:$0xff]  }
 0x54d   : > { %9857 = vmatprep.subr.bf16.mxu0 %v11553_v24  ;;  %7111 = vmatprep.subr.bf16.mxu1 %v10986_v37  ;;  %v11074_v37 = vld [vmem:[%s11870_s14 + $0x9b4] ss:$20 sps:$4 sm:$0xff]  }
 0x550   : > { %9858 = vmatpush3.bf16.msra.mxu0 %v10987_v39  ;;  %7112 = vmatpush1.bf16.msra.mxu1 %v10984_v38  ;;  %v11077_v38 = vld [vmem:[%s11870_s14 + $0x87c] ss:$20 sps:$4 sm:$0xff]  }
 0x551   : > { %7113 = vmatprep.subr.bf16.mxu1 %v10990_v40  ;;  %7226 = vmatprep.subr.bf16.mxu0 %v10993_v41  ;;  %v11072_v39 = vld [vmem:[%s11870_s14 + $0x9b0] ss:$20 sps:$4 sm:$0xff]   ;;  %v11075_v40 = vld [vmem:[%s11870_s14 + $0x878] ss:$20 sps:$4 sm:$0xff]  }
 0x552   : > { %v11080_v41 = vld [vmem:[%s11870_s14 + $0x9dc] ss:$20 sps:$4 sm:$0xff]  }
 0x553   : > { %9860 = vmatmul.mubr.bf16.vlgmr.msra.gmra.mrb[8].mxu0 %v12586_v15  ;;  %v11003_v15 = vld [vmem:[%s11870_s14 + $0x698] ss:$20 sps:$4 sm:$0xff]  }
 0x554   : > { %7114 = vmatpush1.bf16.msra.mxu1 %v10988_v42  ;;  %7227 = vmatpush1.bf16.msra.mxu0 %v10991_v14  ;;  %v11083_v42 = vld [vmem:[%s11870_s14 + $0x8a4] ss:$20 sps:$4 sm:$0xff]  }
 0x555   : > { %7115 = vmatprep.subr.bf16.mxu1 %v10996_v44  ;;  %7228 = vmatprep.subr.bf16.mxu0 %v10999_v45  ;;  %v11078_v14 = vld [vmem:[%s11870_s14 + $0x9d8] ss:$20 sps:$4 sm:$0xff]   ;;  %v11081_v44 = vld [vmem:[%s11870_s14 + $0x8a0] ss:$20 sps:$4 sm:$0xff]  }
 0x556   : > { %7258 = vmatprep.mubr.bf16.mxu0 %v12629_v26  ;;  %v11086_v45 = vld [vmem:[%s11870_s14 + $0xa04] ss:$20 sps:$4 sm:$0xff]  }
 0x558   : > { %7116 = vmatpush1.bf16.msra.mxu1 %v10994_v46  ;;  %7229 = vmatpush1.bf16.msra.mxu0 %v10997_v47  ;;  %v11089_v46 = vld [vmem:[%s11870_s14 + $0x8cc] ss:$20 sps:$4 sm:$0xff]  }
 0x559   : > { %7117 = vmatprep.subr.bf16.mxu1 %v11002_v48  ;;  %7230 = vmatprep.subr.bf16.mxu0 %v11005_v50  ;;  %v11084_v47 = vld [vmem:[%s11870_s14 + $0xa00] ss:$20 sps:$4 sm:$0xff]   ;;  %v11087_v48 = vld [vmem:[%s11870_s14 + $0x8c8] ss:$20 sps:$4 sm:$0xff]  }
 0x55a   : > { %v11092_v50 = vld [vmem:[%s11870_s14 + $0xa2c] ss:$20 sps:$4 sm:$0xff]  }
 0x55c   : > { %7118 = vmatpush1.bf16.msra.mxu1 %v11000_v51  ;;  %7231 = vmatpush1.bf16.msra.mxu0 %v11003_v15  ;;  %v11095_v51 = vld [vmem:[%s11870_s14 + $0x8f4] ss:$20 sps:$4 sm:$0xff]  }
 0x55d   : > { %7119 = vmatprep.subr.bf16.mxu1 %v11008_v53  ;;  %7232 = vmatprep.subr.bf16.mxu0 %v11011_v54  ;;  %v11090_v15 = vld [vmem:[%s11870_s14 + $0xa28] ss:$20 sps:$4 sm:$0xff]   ;;  %v11093_v53 = vld [vmem:[%s11870_s14 + $0x8f0] ss:$20 sps:$4 sm:$0xff]  }
 0x55e   : > { %v11098_v54 = vld [vmem:[%s11870_s14 + $0xa54] ss:$20 sps:$4 sm:$0xff]  }
 0x560   : > { %7120 = vmatpush1.bf16.msra.mxu1 %v11006_v55  ;;  %7233 = vmatpush1.bf16.msra.mxu0 %v11009_v57  ;;  %v11101_v55 = vld [vmem:[%s11870_s14 + $0x91c] ss:$20 sps:$4 sm:$0xff]  }
 0x561   : > { %7121 = vmatprep.subr.bf16.mxu1 %v11014_v60  ;;  %7234 = vmatprep.subr.bf16.mxu0 %v11017_v61  ;;  %v11096_v57 = vld [vmem:[%s11870_s14 + $0xa50] ss:$20 sps:$4 sm:$0xff]   ;;  %v11099_v60 = vld [vmem:[%s11870_s14 + $0x918] ss:$20 sps:$4 sm:$0xff]  }
 0x562   : > { %v11104_v61 = vld [vmem:[%s11870_s14 + $0xa7c] ss:$20 sps:$4 sm:$0xff]  }
 0x564   : > { %7122 = vmatpush1.bf16.msra.mxu1 %v11012_v43  ;;  %7235 = vmatpush1.bf16.msra.mxu0 %v11015_v62  ;;  %v11107_v43 = vld [vmem:[%s11870_s14 + $0x944] ss:$20 sps:$4 sm:$0xff]  }
 0x565   : > { %7123 = vmatprep.subr.bf16.mxu1 %v11020_v49  ;;  %7236 = vmatprep.subr.bf16.mxu0 %v11023_v52  ;;  %v11102_v62 = vld [vmem:[%s11870_s14 + $0xa78] ss:$20 sps:$4 sm:$0xff]   ;;  %v11105_v49 = vld [vmem:[%s11870_s14 + $0x940] ss:$20 sps:$4 sm:$0xff]  }
 0x566   : > { %v11110_v52 = vld [vmem:[%s11870_s14 + $0xaa4] ss:$20 sps:$4 sm:$0xff]  }
 0x568   : > { %7124 = vmatpush1.bf16.msra.mxu1 %v11018_v63  ;;  %7237 = vmatpush1.bf16.msra.mxu0 %v11021_v13  ;;  %v11113_v63 = vld [vmem:[%s11870_s14 + $0x96c] ss:$20 sps:$4 sm:$0xff]  }
 0x569   : > { %7125 = vmatprep.subr.bf16.mxu1 %v11026_v27  ;;  %7238 = vmatprep.subr.bf16.mxu0 %v11029_v56  ;;  %v11108_v13 = vld [vmem:[%s11870_s14 + $0xaa0] ss:$20 sps:$4 sm:$0xff]   ;;  %v11111_v27 = vld [vmem:[%s11870_s14 + $0x968] ss:$20 sps:$4 sm:$0xff]  }
 0x56a   : > { %v11116_v56 = vld [vmem:[%s11870_s14 + $0xacc] ss:$20 sps:$4 sm:$0xff]  }
 0x56c   : > { %7126 = vmatpush1.bf16.msra.mxu1 %v11024_v1  ;;  %7239 = vmatpush1.bf16.msra.mxu0 %v11027_v2  ;;  %v11119_v1 = vld [vmem:[%s11870_s14 + $0x994] ss:$20 sps:$4 sm:$0xff]  }
 0x56d   : > { %7127 = vmatprep.subr.bf16.mxu1 %v11032_v0  ;;  %7240 = vmatprep.subr.bf16.mxu0 %v11035_v4  ;;  %v11114_v2 = vld [vmem:[%s11870_s14 + $0xac8] ss:$20 sps:$4 sm:$0xff]   ;;  %v11117_v0 = vld [vmem:[%s11870_s14 + $0x990] ss:$20 sps:$4 sm:$0xff]  }
 0x56e   : > { %v11122_v4 = vld [vmem:[%s11870_s14 + $0xaf4] ss:$20 sps:$4 sm:$0xff]  }
 0x570   : > { %7128 = vmatpush1.bf16.msra.mxu1 %v11030_v11  ;;  %7241 = vmatpush1.bf16.msra.mxu0 %v11033_v12  ;;  %v11125_v11 = vld [vmem:[%s11870_s14 + $0x9bc] ss:$20 sps:$4 sm:$0xff]  }
 0x571   : > { %7140 = vmatprep.subr.bf16.mxu1 %v11038_v5  ;;  %7242 = vmatprep.subr.bf16.mxu0 %v11041_v6  ;;  %v11120_v12 = vld [vmem:[%s11870_s14 + $0xaf0] ss:$20 sps:$4 sm:$0xff]   ;;  %v11123_v5 = vld [vmem:[%s11870_s14 + $0x9b8] ss:$20 sps:$4 sm:$0xff]  }
 0x572   : > { %v11128_v6 = vld [vmem:[%s11870_s14 + $0xb1c] ss:$20 sps:$4 sm:$0xff]  }
 0x573   : > { %7130 = vmatmul.mubr.bf16.vlgmr.msra.gmra.mrb[8].mxu1 %v12699_v10 }
 0x574   : > { %7141 = vmatpush1.bf16.msra.mxu1 %v11036_v3  ;;  %7243 = vmatpush1.bf16.msra.mxu0 %v11039_v8  ;;  %v11131_v3 = vld [vmem:[%s11870_s14 + $0x9e4] ss:$20 sps:$4 sm:$0xff]  }
 0x575   : > { %7142 = vmatprep.subr.bf16.mxu1 %v11044_v17  ;;  %7244 = vmatprep.subr.bf16.mxu0 %v11047_v22  ;;  %v11126_v8 = vld [vmem:[%s11870_s14 + $0xb18] ss:$20 sps:$4 sm:$0xff]   ;;  %v11129_v17 = vld [vmem:[%s11870_s14 + $0x9e0] ss:$20 sps:$4 sm:$0xff]  }
 0x576   : > { %7172 = vmatprep.mubr.bf16.mxu1 %v12704_v23  ;;  %v11134_v22 = vld [vmem:[%s11870_s14 + $0xb44] ss:$20 sps:$4 sm:$0xff]  }
 0x578   : > { %7143 = vmatpush1.bf16.msra.mxu1 %v11042_v25  ;;  %7245 = vmatpush1.bf16.msra.mxu0 %v11045_v28  ;;  %v11137_v25 = vld [vmem:[%s11870_s14 + $0xa0c] ss:$20 sps:$4 sm:$0xff]  }
 0x579   : > { %7144 = vmatprep.subr.bf16.mxu1 %v11050_v29  ;;  %7246 = vmatprep.subr.bf16.mxu0 %v11053_v30  ;;  %v11132_v28 = vld [vmem:[%s11870_s14 + $0xb40] ss:$20 sps:$4 sm:$0xff]   ;;  %v11135_v29 = vld [vmem:[%s11870_s14 + $0xa08] ss:$20 sps:$4 sm:$0xff]  }
 0x57a   : > { %v12771_v30 = vld [vmem:[#allocation2 + $0x38] sm:$0xff] }
 0x57c   : > { %7145 = vmatpush1.bf16.msra.mxu1 %v11048_v7  ;;  %7247 = vmatpush1.bf16.msra.mxu0 %v11051_v16  ;;  %v11140_v7 = vld [vmem:[%s11870_s14 + $0xb6c] ss:$20 sps:$4 sm:$0xff]   ;;  %v11143_v16 = vld [vmem:[%s11870_s14 + $0xa34] ss:$20 sps:$4 sm:$0xff]  }
 0x57d   : > { %7146 = vmatprep.subr.bf16.mxu1 %v11056_v58  ;;  %7248 = vmatprep.subr.bf16.mxu0 %v11059_v31  ;;  %v11138_v58 = vld [vmem:[%s11870_s14 + $0xb68] ss:$20 sps:$4 sm:$0xff]   ;;  %v11141_v31 = vld [vmem:[%s11870_s14 + $0xa30] ss:$20 sps:$4 sm:$0xff]  }
 0x580   : > { %7147 = vmatpush1.bf16.msra.mxu1 %v11054_v32  ;;  %7249 = vmatpush1.bf16.msra.mxu0 %v11057_v18  ;;  %v11146_v32 = vld [vmem:[%s11870_s14 + $0xb94] ss:$20 sps:$4 sm:$0xff]   ;;  %v11149_v18 = vld [vmem:[%s11870_s14 + $0xa5c] ss:$20 sps:$4 sm:$0xff]  }
 0x581   : > { %7148 = vmatprep.subr.bf16.mxu1 %v11062_v33  ;;  %7250 = vmatprep.subr.bf16.mxu0 %v11065_v20  ;;  %v11144_v33 = vld [vmem:[%s11870_s14 + $0xb90] ss:$20 sps:$4 sm:$0xff]   ;;  %v11147_v20 = vld [vmem:[%s11870_s14 + $0xa58] ss:$20 sps:$4 sm:$0xff]  }
 0x584   : > { %7149 = vmatpush1.bf16.msra.mxu1 %v11060_v34  ;;  %7251 = vmatpush1.bf16.msra.mxu0 %v11063_v19  ;;  %v11152_v34 = vld [vmem:[%s11870_s14 + $0xbbc] ss:$20 sps:$4 sm:$0xff]   ;;  %v11155_v19 = vld [vmem:[%s11870_s14 + $0xa84] ss:$20 sps:$4 sm:$0xff]  }
 0x585   : > { %7150 = vmatprep.subr.bf16.mxu1 %v11068_v21  ;;  %7252 = vmatprep.subr.bf16.mxu0 %v11071_v59  ;;  %v11150_v21 = vld [vmem:[%s11870_s14 + $0xbb8] ss:$20 sps:$4 sm:$0xff]   ;;  %v11153_v59 = vld [vmem:[%s11870_s14 + $0xa80] ss:$20 sps:$4 sm:$0xff]  }
 0x588   : > { %7151 = vmatpush1.bf16.msra.mxu1 %v11066_v35  ;;  %7253 = vmatpush1.bf16.msra.mxu0 %v11069_v36  ;;  %v11158_v35 = vld [vmem:[%s11870_s14 + $0xbe4] ss:$20 sps:$4 sm:$0xff]   ;;  %v11161_v36 = vld [vmem:[%s11870_s14 + $0xaac] ss:$20 sps:$4 sm:$0xff]  }
 0x589   : > { %7152 = vmatprep.subr.bf16.mxu1 %v11074_v37  ;;  %7254 = vmatprep.subr.bf16.mxu0 %v11077_v38  ;;  %v11156_v37 = vld [vmem:[%s11870_s14 + $0xbe0] ss:$20 sps:$4 sm:$0xff]   ;;  %v11159_v38 = vld [vmem:[%s11870_s14 + $0xaa8] ss:$20 sps:$4 sm:$0xff]  }
 0x58c   : > { %7153 = vmatpush1.bf16.msra.mxu1 %v11072_v39  ;;  %7255 = vmatpush1.bf16.msra.mxu0 %v11075_v40  ;;  %v11164_v39 = vld [vmem:[%s11870_s14 + $0xc0c] ss:$20 sps:$4 sm:$0xff]   ;;  %v11167_v40 = vld [vmem:[%s11870_s14 + $0xad4] ss:$20 sps:$4 sm:$0xff]  }
 0x58d   : > { %7154 = vmatprep.subr.bf16.mxu1 %v11080_v41  ;;  %7256 = vmatprep.subr.bf16.mxu0 %v11083_v42  ;;  %v11162_v41 = vld [vmem:[%s11870_s14 + $0xc08] ss:$20 sps:$4 sm:$0xff]   ;;  %v11165_v42 = vld [vmem:[%s11870_s14 + $0xad0] ss:$20 sps:$4 sm:$0xff]  }
 0x590   : > { %7155 = vmatpush1.bf16.msra.mxu1 %v11078_v14  ;;  %7257 = vmatpush1.bf16.msra.mxu0 %v11081_v44  ;;  %v11170_v14 = vld [vmem:[%s11870_s14 + $0xc34] ss:$20 sps:$4 sm:$0xff]   ;;  %v11173_v44 = vld [vmem:[%s11870_s14 + $0xafc] ss:$20 sps:$4 sm:$0xff]  }
 0x591   : > { %7156 = vmatprep.subr.bf16.mxu1 %v11086_v45  ;;  %7269 = vmatprep.subr.bf16.mxu0 %v11089_v46  ;;  %v11168_v45 = vld [vmem:[%s11870_s14 + $0xc30] ss:$20 sps:$4 sm:$0xff]   ;;  %v11171_v46 = vld [vmem:[%s11870_s14 + $0xaf8] ss:$20 sps:$4 sm:$0xff]  }
 0x593   : > { %7259 = vmatmul.mubr.bf16.vlgmr.msra.gmra.mrb[12].mxu0 %v12699_v10 }
 0x594   : > { %7157 = vmatpush1.bf16.msra.mxu1 %v11084_v47  ;;  %7270 = vmatpush1.bf16.msra.mxu0 %v11087_v48  ;;  %v11176_v47 = vld [vmem:[%s11870_s14 + $0xc5c] ss:$20 sps:$4 sm:$0xff]   ;;  %v11179_v48 = vld [vmem:[%s11870_s14 + $0xb24] ss:$20 sps:$4 sm:$0xff]  }
 0x595   : > { %7158 = vmatprep.subr.bf16.mxu1 %v11092_v50  ;;  %7271 = vmatprep.subr.bf16.mxu0 %v11095_v51  ;;  %v11174_v50 = vld [vmem:[%s11870_s14 + $0xc58] ss:$20 sps:$4 sm:$0xff]   ;;  %v11177_v51 = vld [vmem:[%s11870_s14 + $0xb20] ss:$20 sps:$4 sm:$0xff]  }
 0x596   : > { %7301 = vmatprep.mubr.bf16.mxu0 %v12704_v23 }
 0x598   : > { %7159 = vmatpush1.bf16.msra.mxu1 %v11090_v15  ;;  %7272 = vmatpush1.bf16.msra.mxu0 %v11093_v53  ;;  %v11182_v15 = vld [vmem:[%s11870_s14 + $0xb4c] ss:$20 sps:$4 sm:$0xff]   ;;  %v11183_v53 = vld [vmem:[%s11870_s14 + $0x790] ss:$20 sps:$4 sm:$0xff]  }
 0x599   : > { %7160 = vmatprep.subr.bf16.mxu1 %v11098_v54  ;;  %7273 = vmatprep.subr.bf16.mxu0 %v11101_v55  ;;  %v12805_v54 = vld [vmem:[#allocation2 + $0x48] sm:$0xff] }
 0x59a   : > { %v11180_v55 = vld [vmem:[%s11870_s14 + $0xb48] ss:$20 sps:$4 sm:$0xff]  }
 0x59c   : > { %7161 = vmatpush1.bf16.msra.mxu1 %v11096_v57  ;;  %7274 = vmatpush1.bf16.msra.mxu0 %v11099_v60  ;;  %v11184_v57 = vld [vmem:[%s11870_s14 + $0x650] ss:$20 sps:$4 sm:$0xff]   ;;  %v11187_v60 = vld [vmem:[%s11870_s14 + $0xb74] ss:$20 sps:$4 sm:$0xff]  }
 0x59d   : > { %7162 = vmatprep.subr.bf16.mxu1 %v11104_v61  ;;  %7275 = vmatprep.subr.bf16.mxu0 %v11107_v43  ;;  %v11188_v61 = vld [vmem:[%s11870_s14 + $0x7b8] ss:$20 sps:$4 sm:$0xff]   ;;  %v11185_v43 = vld [vmem:[%s11870_s14 + $0xb70] ss:$20 sps:$4 sm:$0xff]  }
 0x5a0   : > { %7163 = vmatpush1.bf16.msra.mxu1 %v11102_v62  ;;  %7276 = vmatpush1.bf16.msra.mxu0 %v11105_v49  ;;  %v11189_v62 = vld [vmem:[%s11870_s14 + $0x678] ss:$20 sps:$4 sm:$0xff]   ;;  %v11192_v49 = vld [vmem:[%s11870_s14 + $0xb9c] ss:$20 sps:$4 sm:$0xff]  }
 0x5a1   : > { %7164 = vmatprep.subr.bf16.mxu1 %v11110_v52  ;;  %7277 = vmatprep.subr.bf16.mxu0 %v11113_v63  ;;  %v11193_v52 = vld [vmem:[%s11870_s14 + $0x7e0] ss:$20 sps:$4 sm:$0xff]   ;;  %v4314_v63 = vlaneseq }
 0x5a4   : > { %7165 = vmatpush1.bf16.msra.mxu1 %v11108_v13  ;;  %7278 = vmatpush1.bf16.msra.mxu0 %v11111_v27  ;;  %v11190_v13 = vld [vmem:[%s11870_s14 + $0xb98] ss:$20 sps:$4 sm:$0xff]   ;;  %v11194_v27 = vld [vmem:[%s11870_s14 + $0x6a0] ss:$20 sps:$4 sm:$0xff]  }
 0x5a5   : > { %7166 = vmatprep.subr.bf16.mxu1 %v11116_v56  ;;  %7279 = vmatprep.subr.bf16.mxu0 %v11119_v1  ;;  %v11197_v56 = vld [vmem:[%s11870_s14 + $0xbc4] ss:$20 sps:$4 sm:$0xff]   ;;  %v11198_v1 = vld [vmem:[%s11870_s14 + $0x808] ss:$20 sps:$4 sm:$0xff]  }
 0x5a8   : > { %7167 = vmatpush1.bf16.msra.mxu1 %v11114_v2  ;;  %7280 = vmatpush1.bf16.msra.mxu0 %v11117_v0  ;;  %v12824_v2 = vshrl.u32 %v4314_v63, 7  ;;  %v11202_v0 = vld [vmem:[%s11870_s14 + $0xbec] ss:$20 sps:$4 sm:$0xff]   ;;  %v11220_v63 = vld [vmem:[%s11870_s14 + $0xa10] ss:$20 sps:$4 sm:$0xff]  }
 0x5a9   : > { %7168 = vmatprep.subr.bf16.mxu1 %v11122_v4  ;;  %7281 = vmatprep.subr.bf16.mxu0 %v11125_v11  ;;  %v11203_v4 = vld [vmem:[%s11870_s14 + $0x830] ss:$20 sps:$4 sm:$0xff]  }
 0x5aa   : > { %v4316_v11 = vsub.s32 0, %v12824_v2 }
 0x5ac   : > { %7169 = vmatpush1.bf16.msra.mxu1 %v11120_v12  ;;  %7282 = vmatpush1.bf16.msra.mxu0 %v11123_v5  ;;  %v4324_v12 = vsub.s32 2, %v12824_v2  ;;  %v4320_v5 = vsub.s32 1, %v12824_v2 }
 0x5ad   : > { %7170 = vmatprep.subr.bf16.mxu1 %v11128_v6  ;;  %7283 = vmatprep.subr.bf16.mxu0 %v11131_v3  ;;  %v4328_v6 = vsub.s32 3, %v12824_v2  ;;  %v11200_v3 = vld [vmem:[%s11870_s14 + $0xbe8] ss:$20 sps:$4 sm:$0xff]  }
 0x5b0   : > { %7171 = vmatpush1.bf16.msra.mxu1 %v11126_v8  ;;  %7284 = vmatpush1.bf16.msra.mxu0 %v11129_v17  ;;  %v12838_v8 = vld [vmem:[%s12835_s18] sm:$0x1f] }
 0x5b1   : > { %7183 = vmatprep.subr.bf16.mxu1 %v11134_v22  ;;  %7285 = vmatprep.subr.bf16.mxu0 %v11137_v25  ;;  %v11204_v17 = vld [vmem:[%s11870_s14 + $0x6f0] ss:$20 sps:$4 sm:$0xff]   ;;  %v11207_v22 = vld [vmem:[%s11870_s14 + $0xc14] ss:$20 sps:$4 sm:$0xff]   ;;  %v11208_v25 = vld [vmem:[%s11870_s14 + $0x858] ss:$20 sps:$4 sm:$0xff]  }
 0x5b3   : > { %7173 = vmatmul.mubr.bf16.vlgmr.msra.gmra.mrb[8].mxu1 %v12771_v30 }
 0x5b4   : > { %7184 = vmatpush1.bf16.msra.mxu1 %v11132_v28  ;;  %7286 = vmatpush1.bf16.msra.mxu0 %v11135_v29  ;;  %v4317_v28 = vrot.slane %v12838_v8, %v4316_v11  ;;  %v4325_v29 = vrot.slane %v12838_v8, %v4324_v12 }
 0x5b5   : > { %7185 = vmatprep.subr.bf16.mxu1 %v11140_v7  ;;  %7287 = vmatprep.subr.bf16.mxu0 %v11143_v16  ;;  %v4321_v7 = vrot.slane %v12838_v8, %v4320_v5  ;;  %v4329_v16 = vrot.slane %v12838_v8, %v4328_v6 }
 0x5b6   : > { %7215 = vmatprep.mubr.bf16.mxu1 %v11552_v9 }
 0x5b8   : > { %7186 = vmatpush1.bf16.msra.mxu1 %v11138_v58  ;;  %7288 = vmatpush1.bf16.msra.mxu0 %v11141_v31  ;;  %v11205_v58 = vld [vmem:[%s11870_s14 + $0xc10] ss:$20 sps:$4 sm:$0xff]   ;;  %v11209_v31 = vld [vmem:[%s11870_s14 + $0x718] ss:$20 sps:$4 sm:$0xff]  }
 0x5b9   : > { %7187 = vmatprep.subr.bf16.mxu1 %v11146_v32  ;;  %7289 = vmatprep.subr.bf16.mxu0 %v11149_v18  ;;  %v11212_v32 = vld [vmem:[%s11870_s14 + $0xc3c] ss:$20 sps:$4 sm:$0xff]   ;;  %v11213_v18 = vld [vmem:[%s11870_s14 + $0x880] ss:$20 sps:$4 sm:$0xff]  }
 0x5bc   : > { %7188 = vmatpush1.bf16.msra.mxu1 %v11144_v33  ;;  %7290 = vmatpush1.bf16.msra.mxu0 %v11147_v20 }
 0x5bd   : > { %7189 = vmatprep.subr.bf16.mxu1 %v11152_v34  ;;  %7291 = vmatprep.subr.bf16.mxu0 %v11155_v19 }
 0x5c0   : > { %7190 = vmatpush1.bf16.msra.mxu1 %v11150_v21  ;;  %7292 = vmatpush1.bf16.msra.mxu0 %v11153_v59 }
 0x5c1   : > { %7191 = vmatprep.subr.bf16.mxu1 %v11158_v35  ;;  %7293 = vmatprep.subr.bf16.mxu0 %v11161_v36 }
 0x5c4   : > { %7192 = vmatpush1.bf16.msra.mxu1 %v11156_v37  ;;  %7294 = vmatpush1.bf16.msra.mxu0 %v11159_v38 }
 0x5c5   : > { %7193 = vmatprep.subr.bf16.mxu1 %v11164_v39  ;;  %7295 = vmatprep.subr.bf16.mxu0 %v11167_v40  ;;  %v11210_v39 = vld [vmem:[%s11870_s14 + $0xc38] ss:$20 sps:$4 sm:$0xff]   ;;  %v11214_v40 = vld [vmem:[%s11870_s14 + $0x740] ss:$20 sps:$4 sm:$0xff]  }
 0x5c8   : > { %7194 = vmatpush1.bf16.msra.mxu1 %v11162_v41  ;;  %7296 = vmatpush1.bf16.msra.mxu0 %v11165_v42 }
 0x5c9   : > { %7195 = vmatprep.subr.bf16.mxu1 %v11170_v14  ;;  %7297 = vmatprep.subr.bf16.mxu0 %v11173_v44 }
 0x5cc   : > { %7196 = vmatpush1.bf16.msra.mxu1 %v11168_v45  ;;  %7298 = vmatpush1.bf16.msra.mxu0 %v11171_v46  ;;  %v11217_v45 = vld [vmem:[%s11870_s14 + $0xc64] ss:$20 sps:$4 sm:$0xff]   ;;  %v11218_v46 = vld [vmem:[%s11870_s14 + $0x8a8] ss:$20 sps:$4 sm:$0xff]  }
 0x5cd   : > { %7197 = vmatprep.subr.bf16.mxu1 %v11176_v47  ;;  %7299 = vmatprep.subr.bf16.mxu0 %v11179_v48 }
 0x5d0   : > { %7198 = vmatpush1.bf16.msra.mxu1 %v11174_v50  ;;  %7300 = vmatpush1.bf16.msra.mxu0 %v11177_v51 }
 0x5d1   : > { %7312 = vmatprep.subr.bf16.mxu0 %v11182_v15  ;;  %9691 = vmatprep.subr.bf16.mxu1 %v11183_v53 }
 0x5d3   : > { %7216 = vmatmul.mubr.bf16.vlgmr.msra.gmra.mrb[8].mxu1 %v12805_v54  ;;  %7302 = vmatmul.mubr.bf16.vlgmr.msra.gmra.mrb[12].mxu0 %v12771_v30 }
 0x5d4   : > { %7313 = vmatpush1.bf16.msra.mxu0 %v11180_v55  ;;  %9692 = vmatpush3.bf16.msra.mxu1 %v11184_v57  ;;  %v11215_v55 = vld [vmem:[%s11870_s14 + $0xc60] ss:$20 sps:$4 sm:$0xff]  }
 0x5d5   : > { %7314 = vmatprep.subr.bf16.mxu0 %v11187_v60  ;;  %9693 = vmatprep.subr.bf16.mxu1 %v11188_v61 }
 0x5d6   : > { %7344 = vmatprep.mubr.bf16.mxu0 %v11552_v9  ;;  %7387 = vmatprep.mubr.bf16.mxu1 %v12629_v26  ;;  %v11195_v9 = vld [vmem:[%s11870_s14 + $0xbc0] ss:$20 sps:$4 sm:$0xff]   ;;  %v11199_v26 = vld [vmem:[%s11870_s14 + $0x6c8] ss:$20 sps:$4 sm:$0xff]  }
 0x5d8   : > { %7315 = vmatpush1.bf16.msra.mxu0 %v11185_v43  ;;  %9694 = vmatpush3.bf16.msra.mxu1 %v11189_v62  ;;  %v11219_v62 = vld [vmem:[%s11870_s14 + $0x768] ss:$20 sps:$4 sm:$0xff]  }
 0x5d9   : > { %7316 = vmatprep.subr.bf16.mxu0 %v11192_v49  ;;  %9695 = vmatprep.subr.bf16.mxu1 %v11193_v52 }
 0x5dc   : > { %7317 = vmatpush1.bf16.msra.mxu0 %v11190_v13  ;;  %9696 = vmatpush3.bf16.msra.mxu1 %v11194_v27 }
 0x5dd   : > { %7318 = vmatprep.subr.bf16.mxu0 %v11197_v56  ;;  %9697 = vmatprep.subr.bf16.mxu1 %v11198_v1  ;;  %v11221_v56 = vld [vmem:[%s11870_s14 + $0x8d0] ss:$20 sps:$4 sm:$0xff]  }
 0x5de   : > { %v11222_v1 = vld [vmem:[%s11870_s14 + $0xb50] ss:$20 sps:$4 sm:$0xff]  }
 0x5e0   : > { %7319 = vmatpush1.bf16.msra.mxu0 %v11195_v9  ;;  %9698 = vmatpush3.bf16.msra.mxu1 %v11199_v26  ;;  %v11223_v9 = vld [vmem:[%s11870_s14 + $0xa38] ss:$20 sps:$4 sm:$0xff]  }
 0x5e1   : > { %7320 = vmatprep.subr.bf16.mxu0 %v11202_v0  ;;  %9699 = vmatprep.subr.bf16.mxu1 %v11203_v4  ;;  %v11224_v26 = vld [vmem:[%s11870_s14 + $0x8f8] ss:$20 sps:$4 sm:$0xff]   ;;  %v11226_v4 = vld [vmem:[%s11870_s14 + $0xa60] ss:$20 sps:$4 sm:$0xff]  }
 0x5e2   : > { %v11225_v0 = vld [vmem:[%s11870_s14 + $0xb78] ss:$20 sps:$4 sm:$0xff]  }
 0x5e4   : > { %7321 = vmatpush1.bf16.msra.mxu0 %v11200_v3  ;;  %9700 = vmatpush3.bf16.msra.mxu1 %v11204_v17  ;;  %v11228_v3 = vld [vmem:[%s11870_s14 + $0xba0] ss:$20 sps:$4 sm:$0xff]   ;;  %v11229_v17 = vld [vmem:[%s11870_s14 + $0xa88] ss:$20 sps:$4 sm:$0xff]  }
 0x5e5   : > { %7322 = vmatprep.subr.bf16.mxu0 %v11207_v22  ;;  %9701 = vmatprep.subr.bf16.mxu1 %v11208_v25  ;;  %v11230_v22 = vld [vmem:[%s11870_s14 + $0x948] ss:$20 sps:$4 sm:$0xff]   ;;  %v11232_v25 = vld [vmem:[%s11870_s14 + $0xab0] ss:$20 sps:$4 sm:$0xff]  }
 0x5e6   : > { %v5499_v33 = vpop.f32.mrb[0].mxu0  ;;  %v5628_v20 = vpop.f32.mrb[0].mxu1 }
 0x5e7   : > { %v9951_v34 = vadd.f32 %v5499_v33, %v4317_v28  ;;  %v9955_v19 = vadd.f32 %v5628_v20, %v4325_v29  ;;  %v5501_v21 = vpop.f32.mrb[1].mxu0  ;;  %v5630_v59 = vpop.f32.mrb[1].mxu1 }
 0x5e8   : > { %v9952_v35 = vadd.f32 %v5501_v21, %v4321_v7  ;;  %v9956_v36 = vadd.f32 %v5630_v59, %v4329_v16  ;;  %v5503_v37 = vpop.f32.mrb[2].mxu0  ;;  %v5632_v38 = vpop.f32.mrb[2].mxu1  ;;  %7323 = vmatpush1.bf16.msra.mxu0 %v11205_v58  ;;  %9702 = vmatpush3.bf16.msra.mxu1 %v11209_v31  ;;  %v11236_v58 = vld [vmem:[%s11870_s14 + $0x998] ss:$20 sps:$4 sm:$0xff]  }
 0x5e9   : > { %v9953_v41 = vadd.f32 %v5503_v37, %v4317_v28  ;;  %v9957_v42 = vadd.f32 %v5632_v38, %v4325_v29  ;;  %v5505_v14 = vpop.f32.mrb[3].mxu0  ;;  %v5634_v44 = vpop.f32.mrb[3].mxu1  ;;  %7324 = vmatprep.subr.bf16.mxu0 %v11212_v32  ;;  %9703 = vmatprep.subr.bf16.mxu1 %v11213_v18  ;;  %v5760_v50 = vmax.f32 %v9951_v34, 0.0  ;;  %v5762_v51 = vmax.f32 %v9955_v19, 0.0  ;;  %v11233_v28 = vld [vmem:[%s11870_s14 + $0x970] ss:$20 sps:$4 sm:$0xff]  }
 0x5ea   : > { %v9954_v47 = vadd.f32 %v5505_v14, %v4321_v7  ;;  %v9958_v48 = vadd.f32 %v5634_v44, %v4329_v16  ;;  %v5761_v57 = vmax.f32 %v9952_v35, 0.0  ;;  %v5763_v60 = vmax.f32 %v9956_v36, 0.0  ;;  %v11234_v29 = vld [vmem:[%s11870_s14 + $0xbf0] ss:$20 sps:$4 sm:$0xff]   ;;  %v11235_v7 = vld [vmem:[%s11870_s14 + $0xad8] ss:$20 sps:$4 sm:$0xff]  }
 0x5eb   : > { %v5765_v15 = vmax.f32 %v9953_v41, 0.0  ;;  %v5767_v53 = vmax.f32 %v9957_v42, 0.0  ;;  %v4332_v16 = vsub.s32 4, %v12824_v2  ;;  %v11237_v31 = vld [vmem:[%s11870_s14 + $0xc18] ss:$20 sps:$4 sm:$0xff]  }
 0x5ec   : > { %v5766_v61 = vmax.f32 %v9954_v47, 0.0  ;;  %v5768_v43 = vmax.f32 %v9958_v48, 0.0  ;;  %7325 = vmatpush1.bf16.msra.mxu0 %v11210_v39  ;;  %9704 = vmatpush3.bf16.msra.mxu1 %v11214_v40  ;;  %v11238_v32 = vld [vmem:[%s11870_s14 + $0xb00] ss:$20 sps:$4 sm:$0xff]  }
 0x5ed   : > { %v5770_v49 = vpack.c.bf16 %v5765_v15, %v5760_v50  ;;  %v5772_v52 = vpack.c.bf16 %v5767_v53, %v5762_v51  ;;  %7326 = vmatprep.subr.bf16.mxu0 %v11217_v45  ;;  %9705 = vmatprep.subr.bf16.mxu1 %v11218_v46  ;;  %v4333_v33 = vrot.slane %v12838_v8, %v4332_v16  ;;  %v11239_v37 = vld [vmem:[%s11870_s14 + $0x9c0] ss:$20 sps:$4 sm:$0xff]   ;;  %v11241_v8 = vld [vmem:[%s11870_s14 + $0xb28] ss:$20 sps:$4 sm:$0xff]  }
 0x5ee   : > { %v5771_v13 = vpack.c.bf16 %v5766_v61, %v5761_v57  ;;  %v5773_v27 = vpack.c.bf16 %v5768_v43, %v5763_v60  ;;  %v11240_v38 = vld [vmem:[%s11870_s14 + $0xc40] ss:$20 sps:$4 sm:$0xff]   ;;  %v11242_v45 = vld [vmem:[%s11870_s14 + $0x9e8] ss:$20 sps:$4 sm:$0xff]  }
 0x5ef   : > { %5775 = vst [vmem:[#allocation2] sm:$0xff] %v5770_v49  ;;  %5777 = vst [vmem:[#allocation2 + $0x10] sm:$0xff] %v5772_v52  ;;  %v11243_v46 = vld [vmem:[%s11870_s14 + $0xc68] ss:$20 sps:$4 sm:$0xff]  }
 0x5f0   : > { %5776 = vst [vmem:[#allocation2 + $0x8] sm:$0xff] %v5771_v13  ;;  %5778 = vst [vmem:[#allocation2 + $0x18] sm:$0xff] %v5773_v27  ;;  %7327 = vmatpush1.bf16.msra.mxu0 %v11215_v55  ;;  %9706 = vmatpush3.bf16.msra.mxu1 %v11219_v62  ;;  %v9284_v62 = vld [vmem:[%s12835_s18 + $0x5] sm:$0x1f] }
 0x5f1   : > { %9713 = vmatprep.subr.bf16.mxu0 %v11220_v63  ;;  %9863 = vmatprep.subr.bf16.mxu1 %v11553_v24  ;;  %v6039_v49 = vrot.slane %v9284_v62, %v4320_v5  ;;  %v6047_v5 = vrot.slane %v9284_v62, %v4328_v6 }
 0x5f3   : > { %7345 = vmatmul.mubr.bf16.vlgmr.msra.gmra.mrb[12].mxu0 %v12805_v54  ;;  %7388 = vmatmul.mubr.bf16.vlgmr.msra.gmra.mrb[12].mxu1 %v12699_v10  ;;  %v11227_v10 = vld [vmem:[%s11870_s14 + $0x920] ss:$20 sps:$4 sm:$0xff]  }
 0x5f4   : > { %9714 = vmatpush3.bf16.msra.mxu0 %v11221_v56  ;;  %9864 = vmatpush3.bf16.msra.mxu1 %v11222_v1 }
 0x5f5   : > { %9715 = vmatprep.subr.bf16.mxu0 %v11223_v9  ;;  %9865 = vmatprep.subr.bf16.mxu1 %v11553_v24 }
 0x5f6   : > { %7428 = vmatprep.mubr.bf16.mxu0 %v12704_v23  ;;  %9879 = vmatprep.mubr.msk.bf16.mxu1 %vm11554_vm2, %v11553_v24  ;;  %v11231_v23 = vld [vmem:[%s11870_s14 + $0xbc8] ss:$20 sps:$4 sm:$0xff]  }
 0x5f8   : > { %9716 = vmatpush3.bf16.msra.mxu0 %v11224_v26  ;;  %9866 = vmatpush3.bf16.msra.mxu1 %v11225_v0 }
 0x5f9   : > { %9717 = vmatprep.subr.bf16.mxu0 %v11226_v4  ;;  %9867 = vmatprep.subr.bf16.mxu1 %v11553_v24 }
 0x5fc   : > { %9718 = vmatpush3.bf16.msra.mxu0 %v11227_v10  ;;  %9868 = vmatpush3.bf16.msra.mxu1 %v11228_v3 }
 0x5fd   : > { %9719 = vmatprep.subr.bf16.mxu0 %v11229_v17  ;;  %9869 = vmatprep.subr.bf16.mxu1 %v11553_v24 }
 0x600   : > { %9720 = vmatpush3.bf16.msra.mxu0 %v11230_v22  ;;  %9870 = vmatpush3.bf16.msra.mxu1 %v11231_v23 }
 0x601   : > { %9721 = vmatprep.subr.bf16.mxu0 %v11232_v25  ;;  %9871 = vmatprep.subr.bf16.mxu1 %v11553_v24 }
 0x604   : > { %9722 = vmatpush3.bf16.msra.mxu0 %v11233_v28  ;;  %9872 = vmatpush3.bf16.msra.mxu1 %v11234_v29 }
 0x605   : > { %9723 = vmatprep.subr.bf16.mxu0 %v11235_v7  ;;  %9873 = vmatprep.subr.bf16.mxu1 %v11553_v24 }
 0x606   : > { %v9654_v18 = vpop.f32.mrb[4].mxu0  ;;  %v9676_v20 = vpop.f32.mrb[4].mxu1 }
 0x607   : > { %v9655_v34 = vpop.f32.mrb[5].mxu0  ;;  %v9677_v19 = vpop.f32.mrb[5].mxu1 }
 0x608   : > { %v9656_v21 = vadd.f32 %v9655_v34, %v9654_v18  ;;  %v9657_v59 = vpop.f32.mrb[6].mxu0  ;;  %9724 = vmatpush3.bf16.msra.mxu0 %v11236_v58  ;;  %v9678_v35 = vadd.f32 %v9677_v19, %v9676_v20  ;;  %v9679_v36 = vpop.f32.mrb[6].mxu1  ;;  %9874 = vmatpush3.bf16.msra.mxu1 %v11237_v31 }
 0x609   : > { %v9658_v39 = vpop.f32.mrb[7].mxu0  ;;  %v9680_v40 = vpop.f32.mrb[7].mxu1  ;;  %9725 = vmatprep.subr.bf16.mxu0 %v11238_v32  ;;  %9875 = vmatprep.subr.bf16.mxu1 %v11553_v24 }
 0x60a   : > { %v5672_v41 = vadd.f32 %v9656_v21, %v4333_v33  ;;  %v9659_v42 = vadd.f32 %v9658_v39, %v9657_v59  ;;  %v9681_v14 = vadd.f32 %v9680_v40, %v9679_v36  ;;  %v6051_v36 = vrot.slane %v9284_v62, %v4332_v16 }
 0x60c   : > { %v5675_v44 = vadd.f32 %v9659_v42, %v4333_v33  ;;  %9726 = vmatpush3.bf16.msra.mxu0 %v11239_v37  ;;  %9876 = vmatpush3.bf16.msra.mxu1 %v11240_v38  ;;  %v5713_v47 = vadd.f32 %v9678_v35, %v5672_v41 }
 0x60d   : > { %9727 = vmatprep.subr.bf16.mxu0 %v11241_v8  ;;  %9877 = vmatprep.subr.bf16.mxu1 %v11553_v24  ;;  %v6035_v24 = vrot.slane %v9284_v62, %v4316_v11  ;;  %v6043_v11 = vrot.slane %v9284_v62, %v4324_v12 }
 0x60e   : > { %v5716_v48 = vadd.f32 %v9681_v14, %v5675_v44 }
 0x610   : > { %9728 = vmatpush3.bf16.msra.mxu0 %v11242_v45  ;;  %9878 = vmatpush3.bf16.msra.mxu1 %v11243_v46 }
 0x613   : > { %7429 = vmatmul.mubr.bf16.vlgmr.msra.gmra.mrb[16].mxu0 %v12771_v30  ;;  %9880 = vmatmul.mubr.bf16.vlgmr.msra.gmra.mrb[16].mxu1 %v12805_v54 }
 0x626   : > { %v5753_v50 = vpop.f32.mrb[8].mxu0 }
 0x627   : > { %v5754_v51 = vadd.f32 %v5753_v50, %v5713_v47  ;;  %v9861_v15 = vpop.f32.mrb[9].mxu0 }
 0x628   : > { %v5756_v53 = vpop.f32.mrb[10].mxu0 }
 0x629   : > { %v5757_v55 = vadd.f32 %v5756_v53, %v5716_v48  ;;  %v9862_v57 = vpop.f32.mrb[11].mxu0  ;;  %v5764_v60 = vmax.f32 %v5754_v51, 0.0 }
 0x62b   : > { %v5769_v61 = vmax.f32 %v5757_v55, 0.0 }
 0x62d   : > { %v5774_v43 = vpack.c.bf16 %v5769_v61, %v5764_v60 }
 0x62f   : > { %5779 = vst [vmem:[#allocation2 + $0x20] sm:$0xff] %v5774_v43 }
 0x6a6   : > { %v7217_v30 = vpop.f32.mrb[8].mxu1 }
 0x6a7   : > { %v9959_v52 = vadd.f32 %v7217_v30, %v6035_v24  ;;  %v7219_v54 = vpop.f32.mrb[9].mxu1 }
 0x6a8   : > { %v9960_v63 = vadd.f32 %v7219_v54, %v6039_v49  ;;  %v7221_v13 = vpop.f32.mrb[10].mxu1 }
 0x6a9   : > { %v9961_v27 = vadd.f32 %v7221_v13, %v6035_v24  ;;  %v7223_v56 = vpop.f32.mrb[11].mxu1  ;;  %v7478_v9 = vmax.f32 %v9959_v52, 0.0 }
 0x6aa   : > { %v9962_v1 = vadd.f32 %v7223_v56, %v6039_v49  ;;  %v7479_v0 = vmax.f32 %v9960_v63, 0.0 }
 0x6ab   : > { %v7483_v26 = vmax.f32 %v9961_v27, 0.0 }
 0x6ac   : > { %v7484_v4 = vmax.f32 %v9962_v1, 0.0 }
 0x6ad   : > { %v7488_v10 = vpack.c.bf16 %v7483_v26, %v7478_v9 }
 0x6ae   : > { %v7489_v3 = vpack.c.bf16 %v7484_v4, %v7479_v0 }
 0x6af   : > { %7493 = vst [vmem:[#allocation2 + $0x28] sm:$0xff] %v7488_v10 }
 0x6b0   : > { %7494 = vst [vmem:[#allocation2 + $0x30] sm:$0xff] %v7489_v3 }
 0x6c6   : > { %v7346_v17 = vpop.f32.mrb[12].mxu0  ;;  %v9707_v22 = vpop.f32.mrb[12].mxu1 }
 0x6c7   : > { %v9963_v23 = vadd.f32 %v7346_v17, %v6043_v11  ;;  %v7348_v25 = vpop.f32.mrb[13].mxu0  ;;  %v9708_v28 = vpop.f32.mrb[13].mxu1 }
 0x6c8   : > { %v9964_v29 = vadd.f32 %v7348_v25, %v6047_v5  ;;  %v7350_v7 = vpop.f32.mrb[14].mxu0  ;;  %v9709_v58 = vadd.f32 %v9708_v28, %v9707_v22  ;;  %v9710_v31 = vpop.f32.mrb[14].mxu1 }
 0x6c9   : > { %v9965_v32 = vadd.f32 %v7350_v7, %v6043_v11  ;;  %v7352_v18 = vpop.f32.mrb[15].mxu0  ;;  %v9711_v33 = vpop.f32.mrb[15].mxu1  ;;  %v7480_v19 = vmax.f32 %v9963_v23, 0.0 }
 0x6ca   : > { %v9966_v20 = vadd.f32 %v7352_v18, %v6047_v5  ;;  %v9712_v34 = vadd.f32 %v9711_v33, %v9710_v31  ;;  %v7481_v12 = vmax.f32 %v9964_v29, 0.0  ;;  %v7390_v8 = vadd.f32 %v9709_v58, %v6051_v36 }
 0x6cb   : > { %v7485_v21 = vmax.f32 %v9965_v32, 0.0 }
 0x6cc   : > { %v7486_v59 = vmax.f32 %v9966_v20, 0.0  ;;  %v7393_v46 = vadd.f32 %v9712_v34, %v6051_v36 }
 0x6cd   : > { %v7490_v35 = vpack.c.bf16 %v7485_v21, %v7480_v19 }
 0x6ce   : > { %v7491_v6 = vpack.c.bf16 %v7486_v59, %v7481_v12 }
 0x6cf   : > { %7495 = vst [vmem:[#allocation2 + $0x38] sm:$0xff] %v7490_v35 }
 0x6d0   : > { %7496 = vst [vmem:[#allocation2 + $0x40] sm:$0xff] %v7491_v6 }
 0x6e6   : > { %v9729_v37 = vpop.f32.mrb[16].mxu0  ;;  %v7471_v38 = vpop.f32.mrb[16].mxu1 }
 0x6e7   : > { %v9730_v39 = vpop.f32.mrb[17].mxu0  ;;  %v9881_v40 = vpop.f32.mrb[17].mxu1 }
 0x6e8   : > { %v9731_v41 = vadd.f32 %v9730_v39, %v9729_v37  ;;  %v9732_v42 = vpop.f32.mrb[18].mxu0  ;;  %v7474_v14 = vpop.f32.mrb[18].mxu1 }
 0x6e9   : > { %v9733_v44 = vpop.f32.mrb[19].mxu0  ;;  %v9882_v45 = vpop.f32.mrb[19].mxu1 }
 0x6ea   : > { %v7431_v47 = vadd.f32 %v9731_v41, %v7390_v8  ;;  %v9734_v48 = vadd.f32 %v9733_v44, %v9732_v42 }
 0x6ec   : > { %v7472_v50 = vadd.f32 %v7471_v38, %v7431_v47  ;;  %v7434_v51 = vadd.f32 %v9734_v48, %v7393_v46 }
 0x6ee   : > { %v7475_v15 = vadd.f32 %v7474_v14, %v7434_v51  ;;  %v7482_v53 = vmax.f32 %v7472_v50, 0.0 }
 0x6f0   : > { %v7487_v55 = vmax.f32 %v7475_v15, 0.0 }
 0x6f2   : > { %v7492_v2 = vpack.c.bf16 %v7487_v55, %v7482_v53 }
 0x6f4   : > { %7497 = vst [vmem:[#allocation2 + $0x48] sm:$0xff] %v7492_v2 }
 0x6f5 PF: > { %p9485_p10 = scmp.ne.s32.totalorder %s11632_s16, 3 }
 0x6f6   : > { %v11246_v16 = vld [vmem:[%s13079_s7 + $0x40] sm:$0xff] (!%p9485_p10)   ;;  %v11250_v43 = vld [vmem:[%s13079_s7 + $0x48] sm:$0xff] (!%p9485_p10)   ;;  %v11254_v30 = vld [vmem:[%s13079_s7 + $0x50] sm:$0xff] (!%p9485_p10)   ;;  %v7519_v31 = vlaneseq (!%p9485_p10)  ;;  %v11555_v20 = vmov (!%p9485_p10), 0.0   ;;  %vm11556_vm3 = vmmov (!%p9485_p10), 0   ;;  %vm8031_vm4 = vcmask (!%p9485_p10), 31744  }
 0x6f7   : > { %7501 = sbr.rel (%p9485_p10) target bundleno = 2215 (0x8a7), region = 96  ;;  %v11247_v57 = vld [vmem:[%s13079_s7] sm:$0xff] (!%p9485_p10)   ;;  %9744 = vmatprep.subr.bf16.mxu0 (!%p9485_p10), %v11246_v16  ;;  %v11251_v62 = vld [vmem:[%s13079_s7 + $0x8] sm:$0xff] (!%p9485_p10)   ;;  %v11255_v52 = vld [vmem:[%s13079_s7 + $0x10] sm:$0xff] (!%p9485_p10)  }
 0x6f8   : > { %v11248_v60 = vld [vmem:[%s13079_s7 + $0xc0] sm:$0xff] (!%p9485_p10)   ;;  %9745 = vmatpush3.bf16.msra.mxu0 (!%p9485_p10), %v11247_v57  ;;  %v11252_v24 = vld [vmem:[%s13079_s7 + $0xc8] sm:$0xff] (!%p9485_p10)   ;;  %v11256_v54 = vld [vmem:[%s13079_s7 + $0xd0] sm:$0xff] (!%p9485_p10)   ;;  %v7520_v12 = vshrl.u32 (!%p9485_p10), %v7519_v31, 7 }
 0x6f9   : > { %v11249_v61 = vld [vmem:[%s13079_s7 + $0x80] sm:$0xff] (!%p9485_p10)   ;;  %9766 = vmatprep.subr.bf16.mxu1 (!%p9485_p10), %v11248_v60  ;;  %9746 = vmatprep.subr.bf16.mxu0 (!%p9485_p10), %v11250_v43  ;;  %v11253_v49 = vld [vmem:[%s13079_s7 + $0x88] sm:$0xff] (!%p9485_p10)   ;;  %v11257_v63 = vld [vmem:[%s13079_s7 + $0x90] sm:$0xff] (!%p9485_p10)  }
 0x6fa   : > { %9767 = vmatpush3.bf16.msra.mxu1 (!%p9485_p10), %v11249_v61  ;;  %v11258_v13 = vld [vmem:[%s13079_s7 + $0x58] sm:$0xff] (!%p9485_p10)   ;;  %v11262_v9 = vld [vmem:[%s13079_s7 + $0x60] sm:$0xff] (!%p9485_p10)   ;;  %v11266_v10 = vld [vmem:[%s13079_s7 + $0x68] sm:$0xff] (!%p9485_p10)   ;;  %v7521_v35 = vsub.s32 (!%p9485_p10), 0, %v7520_v12  ;;  %v7525_v6 = vsub.s32 (!%p9485_p10), 1, %v7520_v12  ;;  %v7529_v36 = vsub.s32 (!%p9485_p10), 2, %v7520_v12 }
 0x6fb   : > { %9768 = vmatprep.subr.bf16.mxu1 (!%p9485_p10), %v11252_v24  ;;  %v11259_v27 = vld [vmem:[%s13079_s7 + $0x18] sm:$0xff] (!%p9485_p10)   ;;  %v11263_v26 = vld [vmem:[%s13079_s7 + $0x20] sm:$0xff] (!%p9485_p10)   ;;  %v11267_v3 = vld [vmem:[%s13079_s7 + $0x28] sm:$0xff] (!%p9485_p10)   ;;  %v7533_v38 = vsub.s32 (!%p9485_p10), 3, %v7520_v12  ;;  %v7537_v42 = vsub.s32 (!%p9485_p10), 4, %v7520_v12 }
 0x6fc   : > { %9747 = vmatpush3.bf16.msra.mxu0 (!%p9485_p10), %v11251_v62  ;;  %v11260_v56 = vld [vmem:[%s13079_s7 + $0xd8] sm:$0xff] (!%p9485_p10)   ;;  %v11264_v0 = vld [vmem:[%s13079_s7 + $0xe0] sm:$0xff] (!%p9485_p10)   ;;  %v11268_v11 = vld [vmem:[%s13079_s7 + $0xe8] sm:$0xff] (!%p9485_p10)  }
 0x6fd   : > { %9748 = vmatprep.subr.bf16.mxu0 (!%p9485_p10), %v11254_v30  ;;  %v11261_v1 = vld [vmem:[%s13079_s7 + $0x98] sm:$0xff] (!%p9485_p10)   ;;  %v11265_v4 = vld [vmem:[%s13079_s7 + $0xa0] sm:$0xff] (!%p9485_p10)   ;;  %v11269_v5 = vld [vmem:[%s13079_s7 + $0xa8] sm:$0xff] (!%p9485_p10)  }
 0x6fe   : > { %9769 = vmatpush3.bf16.msra.mxu1 %v11253_v49  ;;  %v11270_v17 = vld [vmem:[%s13079_s7 + $0x70] sm:$0xff]   ;;  %v11274_v28 = vld [vmem:[%s13079_s7 + $0x78] sm:$0xff]   ;;  %v7576_v18 = vld [vmem:[#allocation2 + $0x28] sm:$0xff] }
 0x6ff   : > { %9770 = vmatprep.subr.bf16.mxu1 %v11256_v54  ;;  %v11271_v22 = vld [vmem:[%s13079_s7 + $0x30] sm:$0xff]   ;;  %v11275_v29 = vld [vmem:[%s13079_s7 + $0x38] sm:$0xff]   ;;  %v7579_v33 = vld [vmem:[#allocation2 + $0x40] sm:$0xff] }
 0x700   : > { %9749 = vmatpush3.bf16.msra.mxu0 %v11255_v52  ;;  %v11272_v23 = vld [vmem:[%s13079_s7 + $0xf0] sm:$0xff]   ;;  %v11276_v7 = vld [vmem:[%s13079_s7 + $0xf8] sm:$0xff]   ;;  %7981 = vmatprep.mubr.bf16.mxu1 %v7579_v33  ;;  %v11278_v34 = vld [vmem:[%s13079_s7 + $0x100] sm:$0xff]  }
 0x701   : > { %9750 = vmatprep.subr.bf16.mxu0 %v11258_v13  ;;  %v11273_v25 = vld [vmem:[%s13079_s7 + $0xb0] sm:$0xff]   ;;  %v11277_v32 = vld [vmem:[%s13079_s7 + $0xb8] sm:$0xff]   ;;  %v11279_v21 = vld [vmem:[%s13079_s7 + $0x108] sm:$0xff]  }
 0x702   : > { %9771 = vmatpush3.bf16.msra.mxu1 %v11257_v63  ;;  %v7577_v58 = vld [vmem:[#allocation2 + $0x30] sm:$0xff]  ;;  %v7578_v19 = vld [vmem:[#allocation2 + $0x38] sm:$0xff]  ;;  %v7502_v37 = vld [vmem:[#allocation2] sm:$0xff] }
 0x703   : > { %9772 = vmatprep.subr.bf16.mxu1 %v11260_v56  ;;  %7940 = vmatprep.mubr.bf16.mxu0 %v7577_v58  ;;  %v11280_v59 = vld [vmem:[%s13079_s7 + $0x110] sm:$0xff]   ;;  %v7503_v39 = vld [vmem:[#allocation2 + $0x8] sm:$0xff]  ;;  %v7505_v8 = vld [vmem:[#allocation2 + $0x18] sm:$0xff]  ;;  %v7507_v41 = vunpack.c.l.bf16 %v7502_v37  ;;  %v7512_v48 = vunpack.c.h.bf16 %v7502_v37 }
 0x704   : > { %9751 = vmatpush3.bf16.msra.mxu0 %v11259_v27  ;;  %v7504_v40 = vld [vmem:[#allocation2 + $0x10] sm:$0xff]  ;;  %v11281_v14 = vld [vmem:[%s13079_s7 + $0x118] sm:$0xff]   ;;  %v7506_v44 = vld [vmem:[#allocation2 + $0x20] sm:$0xff]  ;;  %v7508_v45 = vunpack.c.l.bf16 %v7503_v39  ;;  %v7513_v50 = vunpack.c.h.bf16 %v7503_v39  ;;  %v7510_v51 = vunpack.c.l.bf16 %v7505_v8  ;;  %v7515_v60 = vunpack.c.h.bf16 %v7505_v8 }
 0x705   : > { %9752 = vmatprep.subr.bf16.mxu0 %v11262_v9  ;;  %v7509_v46 = vunpack.c.l.bf16 %v7504_v40  ;;  %v7517_v47 = vld [vmem:[#allocation12] sm:$0x1f]  ;;  %v7511_v2 = vunpack.c.l.bf16 %v7506_v44  ;;  %v7514_v57 = vunpack.c.h.bf16 %v7504_v40  ;;  %v11282_v49 = vld [vmem:[%s13079_s7 + $0x120] sm:$0xff]   ;;  %v7516_v13 = vunpack.c.h.bf16 %v7506_v44 }
 0x706   : > { %9773 = vmatpush3.bf16.msra.mxu1 %v11261_v1  ;;  %v7522_v15 = vrot.slane %v7517_v47, %v7521_v35  ;;  %v7526_v53 = vrot.slane %v7517_v47, %v7525_v6  ;;  %v7530_v55 = vrot.slane %v7517_v47, %v7529_v36  ;;  %v7534_v16 = vrot.slane %v7517_v47, %v7533_v38 }
 0x707   : > { %9774 = vmatprep.subr.bf16.mxu1 %v11264_v0  ;;  %v7538_v61 = vrot.slane %v7517_v47, %v7537_v42  ;;  %v11283_v0 = vld [vmem:[%s13079_s7 + $0x128] sm:$0xff]  }
 0x708   : > { %9753 = vmatpush3.bf16.msra.mxu0 %v11263_v26  ;;  %v7544_v43 = vmul.f32 %v7522_v15, %v7507_v41  ;;  %v7545_v62 = vmul.f32 %v7526_v53, %v7508_v45  ;;  %v7546_v24 = vmul.f32 %v7530_v55, %v7509_v46  ;;  %v7549_v30 = vmul.f32 %v7522_v15, %v7512_v48 }
 0x709   : > { %9754 = vmatprep.subr.bf16.mxu0 %v11266_v10  ;;  %v7550_v52 = vmul.f32 %v7526_v53, %v7513_v50  ;;  %v7547_v54 = vmul.f32 %v7534_v16, %v7510_v51  ;;  %v7551_v27 = vmul.f32 %v7530_v55, %v7514_v57  ;;  %v7552_v56 = vmul.f32 %v7534_v16, %v7515_v60 }
 0x70a   : > { %9775 = vmatpush3.bf16.msra.mxu1 %v11265_v4  ;;  %v7554_v63 = vadd.f32 %v7545_v62, %v7544_v43  ;;  %v7548_v9 = vmul.f32 %v7538_v61, %v7511_v2 }
 0x70b   : > { %9776 = vmatprep.subr.bf16.mxu1 %v11268_v11  ;;  %v7560_v1 = vadd.f32 %v7550_v52, %v7549_v30 }
 0x70c   : > { %9755 = vmatpush3.bf16.msra.mxu0 %v11267_v3  ;;  %v7555_v26 = vadd.f32 %v7554_v63, %v7546_v24  ;;  %v7553_v3 = vmul.f32 %v7538_v61, %v7516_v13 }
 0x70d   : > { %9756 = vmatprep.subr.bf16.mxu0 %v11270_v17  ;;  %v7561_v4 = vadd.f32 %v7560_v1, %v7551_v27  ;;  %v11284_v17 = vld [vmem:[%s13079_s7 + $0x130] sm:$0xff]  }
 0x70e   : > { %9777 = vmatpush3.bf16.msra.mxu1 %v11269_v5  ;;  %v7556_v10 = vadd.f32 %v7555_v26, %v7547_v54 }
 0x70f   : > { %9778 = vmatprep.subr.bf16.mxu1 %v11272_v23  ;;  %v7562_v11 = vadd.f32 %v7561_v4, %v7552_v56  ;;  %v11285_v23 = vld [vmem:[%s13079_s7 + $0x138] sm:$0xff]  }
 0x710   : > { %9757 = vmatpush3.bf16.msra.mxu0 %v11271_v22  ;;  %v7557_v5 = vadd.f32 %v7556_v10, %v7548_v9 }
 0x711   : > { %9758 = vmatprep.subr.bf16.mxu0 %v11274_v28  ;;  %v7563_v22 = vadd.f32 %v7562_v11, %v7553_v3  ;;  %v11557_v28 = vmov 0  }
 0x712   : > { %9779 = vmatpush3.bf16.msra.mxu1 %v11273_v25  ;;  %7558 = vadd.xlane.f32.xlu0 %v7557_v5  ;;  %v7580_v25 = vld [vmem:[#allocation2 + $0x48] sm:$0xff] }
 0x713   : > { %9780 = vmatprep.subr.bf16.mxu1 %v11276_v7  ;;  %11244 = vset.pattern.permute.xlu0 %v11557_v28 }
 0x714   : > { %9759 = vmatpush3.bf16.msra.mxu0 %v11275_v29  ;;  %11245 = vset.pattern.permute.xlu1 %v11557_v28  ;;  %v9486_v29 = vld [vmem:[#allocation3] ss:$0 sm:$0xff] }
 0x715   : > { %9883 = vmatprep.subr.bf16.mxu0 %v11555_v20 }
 0x716   : > { %9781 = vmatpush3.bf16.msra.mxu1 %v11277_v32  ;;  %7564 = vadd.xlane.f32.xlu0 %v7563_v22  ;;  %v9487_v32 = vld [vmem:[#allocation14] ss:$0 sm:$0xff] }
 0x717   : > { %7941 = vmatmul.mubr.bf16.vlgmr.msra.gmra.mrb[0].mxu0 %v7576_v18 }
 0x718   : > { %9884 = vmatpush3.bf16.msra.mxu0 %v11278_v34  ;;  %9899 = vmatprep.mubr.msk.bf16.mxu0 %vm11556_vm3, %v11555_v20 }
 0x719   : > { %9885 = vmatprep.subr.bf16.mxu0 %v11555_v20  ;;  %7982 = vmatmul.mubr.bf16.vlgmr.msra.gmra.mrb[0].mxu1 %v7578_v19 }
 0x71c   : > { %9886 = vmatpush3.bf16.msra.mxu0 %v11279_v21 }
 0x71d   : > { %9887 = vmatprep.subr.bf16.mxu0 %v11555_v20 }
 0x720   : > { %9888 = vmatpush3.bf16.msra.mxu0 %v11280_v59 }
 0x721   : > { %9889 = vmatprep.subr.bf16.mxu0 %v11555_v20 }
 0x724   : > { %9890 = vmatpush3.bf16.msra.mxu0 %v11281_v14 }
 0x725   : > { %9891 = vmatprep.subr.bf16.mxu0 %v11555_v20 }
 0x728   : > { %9892 = vmatpush3.bf16.msra.mxu0 %v11282_v49 }
 0x729   : > { %9893 = vmatprep.subr.bf16.mxu0 %v11555_v20 }
 0x72c   : > { %9894 = vmatpush3.bf16.msra.mxu0 %v11283_v0 }
 0x72d   : > { %9895 = vmatprep.subr.bf16.mxu0 %v11555_v20 }
 0x730   : > { %9896 = vmatpush3.bf16.msra.mxu0 %v11284_v17 }
 0x731   : > { %9897 = vmatprep.subr.bf16.mxu0 %v11555_v20 }
 0x734   : > { %9898 = vmatpush3.bf16.msra.mxu0 %v11285_v23 }
 0x737   : > { %9900 = vmatmul.mubr.bf16.vlgmr.msra.gmra.mrb[4].mxu0 %v7580_v25 }
 0x79f   : > { %v7559_v7 = vpop.xlane.xlu0 %7558 }
 0x7a0   : > { %v7573_v58 = vadd.f32 %v9486_v29, %v7559_v7 }
 0x7a2   : > { %8044 = vperm.xlu0 %11244, %v7573_v58  }
 0x7a3   : > { %v7565_v48 = vpop.xlane.xlu0 %7564 }
 0x7a4   : > { %v7574_v50 = vadd.f32 %v9486_v29, %v7565_v48 }
 0x7ea   : > { %v9760_v31 = vpop.f32.mrb[0].mxu0 }
 0x7eb   : > { %v9761_v18 = vpop.f32.mrb[1].mxu0 }
 0x7ec   : > { %v9762_v33 = vadd.f32 %v9761_v18, %v9760_v31  ;;  %v9763_v34 = vpop.f32.mrb[2].mxu0  ;;  %v9782_v19 = vpop.f32.mrb[0].mxu1 }
 0x7ed   : > { %v9764_v21 = vpop.f32.mrb[3].mxu0  ;;  %v9783_v59 = vpop.f32.mrb[1].mxu1 }
 0x7ee   : > { %v7943_v12 = vadd.f32 %v9762_v33, %v9487_v32  ;;  %v9765_v20 = vadd.f32 %v9764_v21, %v9763_v34  ;;  %v9784_v35 = vadd.f32 %v9783_v59, %v9782_v19  ;;  %v9785_v6 = vpop.f32.mrb[2].mxu1 }
 0x7ef   : > { %v9786_v37 = vpop.f32.mrb[3].mxu1 }
 0x7f0   : > { %v7946_v36 = vadd.f32 %v9765_v20, %v9487_v32  ;;  %v9787_v38 = vadd.f32 %v9786_v37, %v9785_v6  ;;  %v7984_v39 = vadd.f32 %v9784_v35, %v7943_v12 }
 0x7f2   : > { %v7987_v40 = vadd.f32 %v9787_v38, %v7946_v36 }
 0x80a   : > { %v8024_v8 = vpop.f32.mrb[4].mxu0 }
 0x80b   : > { %v8025_v41 = vadd.f32 %v8024_v8, %v7984_v39  ;;  %v9901_v42 = vpop.f32.mrb[5].mxu0 }
 0x80c   : > { %v8027_v14 = vpop.f32.mrb[6].mxu0 }
 0x80d   : > { %v8028_v44 = vadd.f32 %v8027_v14, %v7987_v40  ;;  %v9902_v45 = vpop.f32.mrb[7].mxu0  ;;  %v8032_v46 = vsel %vm8031_vm4, %v8025_v41, 0.0 }
 0x80e   : > { %8033 = vadd.xlane.f32.xlu1 %v8032_v46 }
 0x80f   : > { %v8035_v47 = vsel %vm8031_vm4, %v8028_v44, 0.0 }
 0x812   : > { %8036 = vadd.xlane.f32.xlu1 %v8035_v47 }
 0x821   : > { %v8045_v53 = vpop.permute.xlu0 %8044 }
 0x823   : > { %8049 = vperm.xlu1 %11245, %v7574_v50  }
 0x89b   : > { %v8034_v51 = vpop.xlane.xlu1 %8033 }
 0x89c   : > { %v8038_v15 = vmul.f32 0.25, %v8034_v51 }
 0x89e   : > { %v8040_v55 = vsub.f32 %v8025_v41, %v8038_v15 }
 0x89f   : > { %v8037_v2 = vpop.xlane.xlu1 %8036 }
 0x8a0   : > { %v8039_v16 = vmul.f32 0.25, %v8037_v2  ;;  %v8052_v57 = vadd.f32 %v8045_v53, %v8040_v55 }
 0x8a2   : > { %8054 = vst.msk [vmem:[%s13081_s9] sm:$0xff] %vm8031_vm4, %v8052_v57  ;;  %v8041_v60 = vsub.f32 %v8028_v44, %v8039_v16 }
 0x8a3   : > { %v8050_v61 = vpop.permute.xlu1 %8049 }
 0x8a4   : > { %v8053_v43 = vadd.f32 %v8050_v61, %v8041_v60 }
 0x8a6   : > { %8055 = vst.msk [vmem:[%s13081_s9 + $0x8] sm:$0xff] %vm8031_vm4, %v8053_v43 }
 0x8a7 PF: > { %p24_p8 = scmp.ge.s32.totalorder %s11793_s20, 6   ;;  %s13104_s11 = smov %s11526_s12 }
 0x8a8   : > { %s13105_s12 = smov %s11530_s13  ;;  %s13106_s13 = smov %s11805_s6 }
 0x8a9   : > { %s13107_s14 = smov %s11793_s20  ;;  %26 = sbr.rel (!%p24_p8) target bundleno = 9 (0x9), region = 138 }
 0x8b0   :  { %8067 = vsyncpa [#allocation5], 1 }
 0x8b1   :  { %8069 = vsyncpa [#allocation5 + $0x1], 1 }
 0x8b2   :  { %8070 = vsyncpa [#allocation7], 1 }
 0x8b3   :  { %8071 = vsyncpa [#allocation10], 1 }
 0x8b4   :  { %8073 = vsyncpa [#allocation10 + $0x1], 1 }
 0x8b5   :  { %8074 = vsyncpa [#allocation13], 1 }

</bundles_post_ra>
